<compile_context>
chip_gen: v5e
topology: v5e:2x2
jax: 0.10.0
libtpu: 0.0.40
codegen_flags: <defaults>
</compile_context>

<pallas_src>
from math import pi

import jax
import jax.numpy as jnp
from jax.experimental import pallas as pl
from jax.experimental.pallas import tpu as pltpu

# ---------------- configuration (mirrors DiffusionAutoencoder1d.__init__) ------------
BATCH = 2
IN_CHANNELS = 2
LENGTH = 64
ENCODER_CHANNELS = 32
ENCODER_MULTIPLIERS = (1, 1)
ENCODER_FACTORS = (2,)
ENCODER_PATCH_SIZE = 1
HIDDEN = 32                                          # surrogate UNet width
N_TIME_FREQS = 8
LATENT_CHANNELS = ENCODER_CHANNELS * ENCODER_MULTIPLIERS[-1]     # 32
DOWN_FACTOR = ENCODER_PATCH_SIZE * ENCODER_FACTORS[0]            # 2
LATENT_LEN = LENGTH // DOWN_FACTOR                               # 32
K_DOWN = 2 * ENCODER_FACTORS[0]                                  # 4

CPAD = 128                       # lane-dense channel padding
SEP = 8                          # zero separator rows between the two batch items
TOT = BATCH * LENGTH + SEP       # 136 combined rows (batch0 | zeros | batch1)
DATA0 = 8                        # front zero-pad rows inside the conv scratch
BUF_ROWS = DATA0 + TOT + 8       # 152 (front pad | data | tail pad)
LAT_TOT = BATCH * LATENT_LEN     # 64 combined latent rows

# Packed 128x128 weight blocks (one per conv stage; taps packed along the K lanes).
W_PATCH, W_DOWN, W_C0, W_CTX, W_C1, W_C2 = range(6)
N_W = 6
# Bias rows inside the packed (8, CPAD) f32 tensor.
B_PATCH, B_DOWN, B_C0, B_CTX, B_C1, B_C2 = range(6)


# ============================ fused Pallas kernel ====================================

def _fused_forward_kernel(scal_ref, temb_ref, x_ref, n_ref, dsel_ref, up_ref,
                          w_ref, b_ref, sse_ref, buf_ref):
    f32 = jnp.float32
    bf16 = jnp.bfloat16

    def bias(i):
        return b_ref[pl.ds(i, 1), :]                               # (1, CPAD) f32

    def mm(a_bf16, widx):
        # bf16 operands, f32 accumulation on the MXU; one matmul per conv stage.
        return jnp.dot(a_bf16, w_ref[widx], preferred_element_type=f32)

    def store_data(h):
        # Store only the real per-batch rows (8-sublane aligned, full-tile stores);
        # separator / pad rows stay zero and provide the conv "same" padding.
        buf_ref[pl.ds(DATA0, LENGTH), :] = h[:LENGTH]
        buf_ref[pl.ds(DATA0 + LENGTH + SEP, LENGTH), :] = h[LENGTH + SEP:TOT]

    def packed_taps(ksz):
        # Lane-packed operand for a pad=1 conv of kernel size `ksz`:
        #   packed[r, 32*k + c] = buf[DATA0 - 1 + k + r, c]
        # Activations only occupy lanes 0..31 (rest exactly zero), so rolling tap k by
        # 32*k lanes (XLU) and summing packs all taps into one 128-wide contraction.
        base = DATA0 - 1
        p = buf_ref[pl.ds(base, TOT), :]
        for k in range(1, ksz):
            p = p + pltpu.roll(buf_ref[pl.ds(base + k, TOT), :], 32 * k, axis=1)
        return p.astype(bf16)                                      # single cast / stage

    # Zero only the pad rows (front / separator / tail); data rows get fully rewritten.
    zero8 = jnp.zeros((8, CPAD), f32)
    buf_ref[pl.ds(0, DATA0), :] = zero8
    buf_ref[pl.ds(DATA0 + LENGTH, SEP), :] = zero8
    buf_ref[pl.ds(DATA0 + TOT, 8), :] = zero8

    # Per-row batch selectors for the combined (batch0 | sep | batch1) layout.
    ridx = jax.lax.broadcasted_iota(jnp.int32, (TOT, 1), 0)
    in_b1 = ridx >= (LENGTH + SEP)
    valid = jnp.logical_or(ridx < LENGTH, in_b1)
    alpha = jnp.where(in_b1, scal_ref[1, 0], scal_ref[0, 0])       # (TOT, 1) f32
    beta = jnp.where(in_b1, scal_ref[1, 1], scal_ref[0, 1])

    xb = x_ref[...]                                                # (TOT, CPAD) bf16
    nb = n_ref[...]

    # ---- Encoder1d: patcher conv (k=1) + k=4 / s=2 / p=1 downsample block ------------
    h0 = jax.nn.gelu(mm(xb, W_PATCH) + bias(B_PATCH))              # (TOT, CPAD) f32
    store_data(h0)

    pk = packed_taps(K_DOWN)                                       # (TOT, CPAD) bf16
    # Stride-2 row selection folded into a bf16 0/1 matmul (exact), then one MXU matmul.
    sel = jnp.dot(dsel_ref[...], pk, preferred_element_type=f32)   # (LAT_TOT, CPAD)
    latent = jax.nn.gelu(mm(sel.astype(bf16), W_DOWN) + bias(B_DOWN))   # (LAT_TOT, CPAD)

    # ---- v-diffusion forward mixing (x_noisy / v_target never touch HBM) -------------
    x_noisy = alpha * xb + beta * nb                               # f32
    store_data(x_noisy)

    # ---- surrogate UNet1d -------------------------------------------------------------
    h = jax.nn.gelu(mm(packed_taps(3), W_C0) + bias(B_C0))         # conv0 (k=3, p=1)

    # Latent context: pointwise conv + nearest x2 upsample (bf16 0/1 matmul).
    ctx_half = mm(latent.astype(bf16), W_CTX) + bias(B_CTX)        # (LAT_TOT, CPAD)
    ctx = jnp.dot(up_ref[...], ctx_half.astype(bf16), preferred_element_type=f32)

    t0 = temb_ref[pl.ds(0, 1), :]                                  # per-batch time emb
    t1 = temb_ref[pl.ds(1, 1), :]
    h = h + jnp.where(in_b1, t1, t0) + ctx
    store_data(h)

    h = jax.nn.gelu(mm(packed_taps(3), W_C1) + bias(B_C1))         # conv1 (k=3, p=1)
    store_data(h)

    v_pred = mm(packed_taps(3), W_C2) + bias(B_C2)                 # v-head (k=3, p=1)

    # ---- masked sum of squared error --------------------------------------------------
    # NOTE: padded lanes contribute exactly zero only because B_all and the W_C2 columns
    # >= IN_CHANNELS are zero at init; mask the lanes if these weights are ever trained.
    v_target = alpha * nb - beta * xb
    d = jnp.where(valid, v_pred - v_target, 0.0)                   # drop separator rows
    sse_ref[...] = jnp.sum(d * d, axis=0, keepdims=True)           # (1, CPAD) lane-dense


# ============================ wrapper ================================================

def diffusion_autoencoder_forward(params, x, noise, sigmas):
    """DiffusionAutoencoder1d.forward: latent = encoder(x); loss = v-diffusion(x | latent)."""
    B, C, L = x.shape
    assert B == BATCH and C == IN_CHANNELS and L == LENGTH

    def to_combined(a):      # (B, C, L) -> (TOT, CPAD): channel-last, lane-padded, zero sep
        a = jnp.transpose(a, (0, 2, 1))
        a = jnp.pad(a, ((0, 0), (0, 0), (0, CPAD - C))).astype(jnp.bfloat16)
        return jnp.concatenate([a[0], jnp.zeros((SEP, CPAD), jnp.bfloat16), a[1]], axis=0)

    x_comb = to_combined(x)
    n_comb = to_combined(noise)

    # v-diffusion schedule scalars (read as SMEM scalars inside the kernel).
    scal = jnp.stack([jnp.cos(sigmas * (pi / 2.0)),
                      jnp.sin(sigmas * (pi / 2.0))], axis=-1)                  # (B, 2)

    # Time-conditioning MLP hoisted out of the kernel (tiny; was recomputed per step).
    ang = sigmas[:, None] * params["t_freqs"][None, :] * (2.0 * pi)            # (B, NF)
    feats = jnp.concatenate([jnp.sin(ang), jnp.cos(ang)], axis=-1)             # (B, 2NF)
    temb = jax.nn.gelu(feats @ params["w_t1"]) @ params["w_t2"]                # (B, HIDDEN)
    temb_pad = jnp.zeros((8, CPAD), jnp.float32).at[:B, :HIDDEN].set(temb)

    sse = pl.pallas_call(
        _fused_forward_kernel,
        out_shape=jax.ShapeDtypeStruct((1, CPAD), jnp.float32),
        grid_spec=pltpu.PrefetchScalarGridSpec(
            num_scalar_prefetch=1,                                   # scal -> SMEM
            grid=(1,),                                               # batch folded into M
            in_specs=[
                pl.BlockSpec((8, CPAD), lambda i, s: (0, 0)),        # time embeddings
                pl.BlockSpec((TOT, CPAD), lambda i, s: (0, 0)),      # x   (combined)
                pl.BlockSpec((TOT, CPAD), lambda i, s: (0, 0)),      # eps (combined)
                pl.BlockSpec((LAT_TOT, TOT), lambda i, s: (0, 0)),   # stride-2 select
                pl.BlockSpec((TOT, LAT_TOT), lambda i, s: (0, 0)),   # nearest x2 up
                pl.BlockSpec((N_W, CPAD, CPAD), lambda i, s: (0, 0, 0)),  # packed weights
                pl.BlockSpec((8, CPAD), lambda i, s: (0, 0)),        # biases
            ],
            out_specs=pl.BlockSpec((1, CPAD), lambda i, s: (0, 0)),
            scratch_shapes=[pltpu.VMEM((BUF_ROWS, CPAD), jnp.float32)],
        ),
        compiler_params=pltpu.CompilerParams(
            dimension_semantics=("arbitrary",),
        ),
    )(scal, temb_pad, x_comb, n_comb,
      params["dsel"], params["up"], params["W_all"], params["B_all"])

    # Separator rows and padded lanes contribute exactly zero, so the sum is exact.
    return jnp.sum(sse) / (B * C * L)


# ============================ parameters (pre-packed once) ===========================

def init_params(key):
    ks = jax.random.split(key, 8)

    def conv_w(k, cout, cin, ksz):
        return jax.random.normal(k, (cout, cin, ksz), jnp.float32) / jnp.sqrt(float(cin * ksz))

    c_feat = 2 * N_TIME_FREQS
    w_t1 = jax.random.normal(ks[0], (c_feat, HIDDEN), jnp.float32) / jnp.sqrt(float(c_feat))
    w_t2 = jax.random.normal(ks[1], (HIDDEN, HIDDEN), jnp.float32) / jnp.sqrt(float(HIDDEN))
    w_patch = conv_w(ks[2], ENCODER_CHANNELS, IN_CHANNELS, ENCODER_PATCH_SIZE)
    w_down = conv_w(ks[3], LATENT_CHANNELS, ENCODER_CHANNELS, K_DOWN)
    w_c0 = conv_w(ks[4], HIDDEN, IN_CHANNELS, 3)
    w_ctx = conv_w(ks[5], HIDDEN, LATENT_CHANNELS, 1)
    w_c1 = conv_w(ks[6], HIDDEN, HIDDEN, 3)
    w_c2 = conv_w(ks[7], IN_CHANNELS, HIDDEN, 3)

    # One packed 128x128 block per conv stage: row 32*k + cin carries tap k of input cin.
    W = jnp.zeros((N_W, CPAD, CPAD), jnp.float32)

    def pack_conv(W, idx, wt):
        cout, cin, ksz = wt.shape
        for k in range(ksz):
            W = W.at[idx, 32 * k:32 * k + cin, :cout].set(wt[:, :, k].T)
        return W

    W = pack_conv(W, W_PATCH, w_patch)
    W = pack_conv(W, W_DOWN, w_down)
    W = pack_conv(W, W_C0, w_c0)
    W = pack_conv(W, W_CTX, w_ctx)
    W = pack_conv(W, W_C1, w_c1)
    W = pack_conv(W, W_C2, w_c2)

    # Biases start at zero (padded lanes MUST stay zero so the lane-padded math is exact).
    B_all = jnp.zeros((8, CPAD), jnp.float32)

    # Combined-layout rows: batch0 = 0..63, separator = 64..71, batch1 = 72..135.
    r = jnp.arange(TOT)
    s = jnp.arange(LAT_TOT)
    # stride-2 decimation: latent s selects full-res combined row src_row(s).
    src_row = jnp.where(s < LATENT_LEN, DOWN_FACTOR * s,
                        LENGTH + SEP + DOWN_FACTOR * (s - LATENT_LEN))
    dsel = (r[None, :] == src_row[:, None]).astype(jnp.bfloat16)            # (LAT_TOT, TOT)
    # nearest x2 upsample: combined row r reads latent lat_of_r(r); separator rows = 0.
    lat_of_r = jnp.where(r < LENGTH, r // DOWN_FACTOR,
                         LATENT_LEN + (r - (LENGTH + SEP)) // DOWN_FACTOR)
    valid_r = jnp.logical_or(r < LENGTH, r >= LENGTH + SEP)
    up = ((s[None, :] == lat_of_r[:, None]) & valid_r[:, None]).astype(jnp.bfloat16)

    return {
        "W_all": W.astype(jnp.bfloat16),
        "B_all": B_all,
        "dsel": dsel,
        "up": up,
        "w_t1": w_t1,
        "w_t2": w_t2,
        "t_freqs": jnp.exp(jnp.linspace(0.0, 3.0, N_TIME_FREQS)),
    }


# ============================ main ===================================================

if __name__ == "__main__":
    key = jax.random.PRNGKey(0)
    k_x, k_noise, k_sigma, k_params = jax.random.split(key, 4)

    x = jax.random.normal(k_x, (BATCH, IN_CHANNELS, LENGTH), jnp.float32)
    noise = jax.random.normal(k_noise, (BATCH, IN_CHANNELS, LENGTH), jnp.float32)
    sigmas = jax.random.uniform(k_sigma, (BATCH,), jnp.float32)
    params = init_params(k_params)

    loss = jax.jit(diffusion_autoencoder_forward)(params, x, noise, sigmas)
    loss = jax.block_until_ready(loss)
    assert loss.shape == () and jnp.isfinite(loss)
    print("KERNEL_OK")
</pallas_src>

<mosaic_0001>
module attributes {stable_mosaic.version = 11 : i64} {
  func.func @_fused_forward_kernel(%arg0: i32, %arg1: memref<2x2xf32, #tpu.memory_space<smem>>, %arg2: memref<8x128xf32, #tpu.memory_space<vmem>>, %arg3: memref<136x128xbf16, #tpu.memory_space<vmem>>, %arg4: memref<136x128xbf16, #tpu.memory_space<vmem>>, %arg5: memref<64x136xbf16, #tpu.memory_space<vmem>>, %arg6: memref<136x64xbf16, #tpu.memory_space<vmem>>, %arg7: memref<6x128x128xbf16, #tpu.memory_space<vmem>>, %arg8: memref<8x128xf32, #tpu.memory_space<vmem>>, %arg9: memref<1x128xf32, #tpu.memory_space<vmem>>, %arg10: memref<152x128xf32, #tpu.memory_space<vmem>>) attributes {dimension_semantics = [#tpu.dimension_semantics<arbitrary>], iteration_bounds = array<i64: 1>, scalar_prefetch = 1 : i64, scratch_operands = 1 : i64, tpu.core_type = #tpu.core_type<tc>, window_params = [{pipeline_mode = #tpu.pipeline_mode<synchronous>, transform_indices = @transform_0, window_bounds = array<i64: 8, 128>}, {pipeline_mode = #tpu.pipeline_mode<synchronous>, transform_indices = @transform_1, window_bounds = array<i64: 136, 128>}, {pipeline_mode = #tpu.pipeline_mode<synchronous>, transform_indices = @transform_2, window_bounds = array<i64: 136, 128>}, {pipeline_mode = #tpu.pipeline_mode<synchronous>, transform_indices = @transform_3, window_bounds = array<i64: 64, 136>}, {pipeline_mode = #tpu.pipeline_mode<synchronous>, transform_indices = @transform_4, window_bounds = array<i64: 136, 64>}, {pipeline_mode = #tpu.pipeline_mode<synchronous>, transform_indices = @transform_5, window_bounds = array<i64: 6, 128, 128>}, {pipeline_mode = #tpu.pipeline_mode<synchronous>, transform_indices = @transform_6, window_bounds = array<i64: 8, 128>}, {pipeline_mode = #tpu.pipeline_mode<synchronous>, transform_indices = @transform_7, window_bounds = array<i64: 1, 128>}]} {
    %cst = arith.constant 0.000000e+00 : f32
    %0 = vector.broadcast %cst : f32 to vector<8x128xf32>
    %c0 = arith.constant 0 : index
    %c0_0 = arith.constant 0 : index
    %1 = vector.load %arg10[%c0, %c0_0] : memref<152x128xf32, #tpu.memory_space<vmem>>, vector<8x128xf32>
    tpu.vector_store %arg10[%c0, %c0_0], %0 {strides = array<i32>} : memref<152x128xf32, #tpu.memory_space<vmem>>, vector<8x128xf32>,
    %c72 = arith.constant 72 : index
    %c0_1 = arith.constant 0 : index
    %2 = vector.load %arg10[%c72, %c0_1] : memref<152x128xf32, #tpu.memory_space<vmem>>, vector<8x128xf32>
    tpu.vector_store %arg10[%c72, %c0_1], %0 {strides = array<i32>} : memref<152x128xf32, #tpu.memory_space<vmem>>, vector<8x128xf32>,
    %c144 = arith.constant 144 : index
    %c0_2 = arith.constant 0 : index
    %3 = vector.load %arg10[%c144, %c0_2] : memref<152x128xf32, #tpu.memory_space<vmem>>, vector<8x128xf32>
    tpu.vector_store %arg10[%c144, %c0_2], %0 {strides = array<i32>} : memref<152x128xf32, #tpu.memory_space<vmem>>, vector<8x128xf32>,
    %4 = tpu.iota {dimensions = array<i32: 0>} : vector<136x1xi32>
    %c72_i32 = arith.constant 72 : i32
    %5 = vector.broadcast %c72_i32 : i32 to vector<136x1xi32>
    %6 = arith.cmpi sge, %4, %5 : vector<136x1xi32>
    %c64_i32 = arith.constant 64 : i32
    %7 = vector.broadcast %c64_i32 : i32 to vector<136x1xi32>
    %8 = arith.cmpi slt, %4, %7 : vector<136x1xi32>
    %9 = arith.ori %8, %6 : vector<136x1xi1>
    %c1 = arith.constant 1 : index
    %c0_3 = arith.constant 0 : index
    %10 = memref.load %arg1[%c1, %c0_3] : memref<2x2xf32, #tpu.memory_space<smem>>
    %c0_4 = arith.constant 0 : index
    %c0_5 = arith.constant 0 : index
    %11 = memref.load %arg1[%c0_4, %c0_5] : memref<2x2xf32, #tpu.memory_space<smem>>
    %12 = vector.broadcast %10 : f32 to vector<136x1xf32>
    %13 = vector.broadcast %11 : f32 to vector<136x1xf32>
    %14 = arith.select %6, %12, %13 : vector<136x1xi1>, vector<136x1xf32>
    %c1_6 = arith.constant 1 : index
    %c1_7 = arith.constant 1 : index
    %15 = memref.load %arg1[%c1_6, %c1_7] : memref<2x2xf32, #tpu.memory_space<smem>>
    %c0_8 = arith.constant 0 : index
    %c1_9 = arith.constant 1 : index
    %16 = memref.load %arg1[%c0_8, %c1_9] : memref<2x2xf32, #tpu.memory_space<smem>>
    %17 = vector.broadcast %15 : f32 to vector<136x1xf32>
    %18 = vector.broadcast %16 : f32 to vector<136x1xf32>
    %19 = arith.select %6, %17, %18 : vector<136x1xi1>, vector<136x1xf32>
    %c0_10 = arith.constant 0 : index
    %c0_11 = arith.constant 0 : index
    %20 = vector.load %arg3[%c0_10, %c0_11] : memref<136x128xbf16, #tpu.memory_space<vmem>>, vector<136x128xbf16>
    %c0_12 = arith.constant 0 : index
    %c0_13 = arith.constant 0 : index
    %21 = vector.load %arg4[%c0_12, %c0_13] : memref<136x128xbf16, #tpu.memory_space<vmem>>, vector<136x128xbf16>
    %c0_14 = arith.constant 0 : index
    %c0_15 = arith.constant 0 : index
    %c0_16 = arith.constant 0 : index
    %22 = vector.load %arg7[%c0_14, %c0_15, %c0_16] : memref<6x128x128xbf16, #tpu.memory_space<vmem>>, vector<1x128x128xbf16>
    %23 = vector.shape_cast %22 : vector<1x128x128xbf16> to vector<128x128xbf16>
    %cst_17 = arith.constant dense<0.000000e+00> : vector<136x128xf32>
    %24 = tpu.matmul %20, %23, %cst_17 {dimension_numbers = #tpu.dot_dimension_numbers<[1], [0], [0], [1], [0, 0, 1, 1], [], []>} : vector<136x128xbf16>, vector<128x128xbf16>, vector<136x128xf32> -> vector<136x128xf32>
    %c0_18 = arith.constant 0 : index
    %c0_19 = arith.constant 0 : index
    %25 = vector.load %arg8[%c0_18, %c0_19] : memref<8x128xf32, #tpu.memory_space<vmem>>, vector<1x128xf32>
    %26 = vector.broadcast %25 : vector<1x128xf32> to vector<136x128xf32>
    %27 = arith.addf %24, %26 : vector<136x128xf32>
    %28 = arith.mulf %27, %27 : vector<136x128xf32>
    %29 = arith.mulf %27, %28 : vector<136x128xf32>
    %cst_20 = arith.constant 4.471500e-02 : f32
    %30 = vector.broadcast %cst_20 : f32 to vector<136x128xf32>
    %31 = arith.mulf %30, %29 : vector<136x128xf32>
    %32 = arith.addf %27, %31 : vector<136x128xf32>
    %cst_21 = arith.constant 0.797884583 : f32
    %33 = vector.broadcast %cst_21 : f32 to vector<136x128xf32>
    %34 = arith.mulf %33, %32 : vector<136x128xf32>
    %35 = math.tanh %34 : vector<136x128xf32>
    %cst_22 = arith.constant 1.000000e+00 : f32
    %36 = vector.broadcast %cst_22 : f32 to vector<136x128xf32>
    %37 = arith.addf %36, %35 : vector<136x128xf32>
    %cst_23 = arith.constant 5.000000e-01 : f32
    %38 = vector.broadcast %cst_23 : f32 to vector<136x128xf32>
    %39 = arith.mulf %38, %37 : vector<136x128xf32>
    %40 = arith.mulf %27, %39 : vector<136x128xf32>
    %41 = vector.extract_strided_slice %40 {offsets = [0, 0], sizes = [64, 128], strides = [1, 1]} : vector<136x128xf32> to vector<64x128xf32>
    %c8 = arith.constant 8 : index
    %c0_24 = arith.constant 0 : index
    %42 = vector.load %arg10[%c8, %c0_24] : memref<152x128xf32, #tpu.memory_space<vmem>>, vector<64x128xf32>
    tpu.vector_store %arg10[%c8, %c0_24], %41 {strides = array<i32>} : memref<152x128xf32, #tpu.memory_space<vmem>>, vector<64x128xf32>,
    %43 = vector.extract_strided_slice %40 {offsets = [72, 0], sizes = [64, 128], strides = [1, 1]} : vector<136x128xf32> to vector<64x128xf32>
    %c80 = arith.constant 80 : index
    %c0_25 = arith.constant 0 : index
    %44 = vector.load %arg10[%c80, %c0_25] : memref<152x128xf32, #tpu.memory_space<vmem>>, vector<64x128xf32>
    tpu.vector_store %arg10[%c80, %c0_25], %43 {strides = array<i32>} : memref<152x128xf32, #tpu.memory_space<vmem>>, vector<64x128xf32>,
    %c7 = arith.constant 7 : index
    %c0_26 = arith.constant 0 : index
    %45 = vector.load %arg10[%c7, %c0_26] : memref<152x128xf32, #tpu.memory_space<vmem>>, vector<136x128xf32>
    %c8_27 = arith.constant 8 : index
    %c0_28 = arith.constant 0 : index
    %46 = vector.load %arg10[%c8_27, %c0_28] : memref<152x128xf32, #tpu.memory_space<vmem>>, vector<136x128xf32>
    %c32_i32 = arith.constant 32 : i32
    %47 = tpu.dynamic_rotate %46 by %c32_i32 dim 1 : vector<136x128xf32>, i32 -> vector<136x128xf32>
    %48 = arith.addf %45, %47 : vector<136x128xf32>
    %c9 = arith.constant 9 : index
    %c0_29 = arith.constant 0 : index
    %49 = vector.load %arg10[%c9, %c0_29] : memref<152x128xf32, #tpu.memory_space<vmem>>, vector<136x128xf32>
    %c64_i32_30 = arith.constant 64 : i32
    %50 = tpu.dynamic_rotate %49 by %c64_i32_30 dim 1 : vector<136x128xf32>, i32 -> vector<136x128xf32>
    %51 = arith.addf %48, %50 : vector<136x128xf32>
    %c10 = arith.constant 10 : index
    %c0_31 = arith.constant 0 : index
    %52 = vector.load %arg10[%c10, %c0_31] : memref<152x128xf32, #tpu.memory_space<vmem>>, vector<136x128xf32>
    %c96_i32 = arith.constant 96 : i32
    %53 = tpu.dynamic_rotate %52 by %c96_i32 dim 1 : vector<136x128xf32>, i32 -> vector<136x128xf32>
    %54 = arith.addf %51, %53 : vector<136x128xf32>
    %55 = arith.truncf %54 : vector<136x128xf32> to vector<136x128xbf16>
    %c0_32 = arith.constant 0 : index
    %c0_33 = arith.constant 0 : index
    %56 = vector.load %arg5[%c0_32, %c0_33] : memref<64x136xbf16, #tpu.memory_space<vmem>>, vector<64x136xbf16>
    %cst_34 = arith.constant dense<0.000000e+00> : vector<64x128xf32>
    %57 = tpu.matmul %56, %55, %cst_34 {dimension_numbers = #tpu.dot_dimension_numbers<[1], [0], [0], [1], [0, 0, 1, 1], [], []>} : vector<64x136xbf16>, vector<136x128xbf16>, vector<64x128xf32> -> vector<64x128xf32>
    %58 = arith.truncf %57 : vector<64x128xf32> to vector<64x128xbf16>
    %c1_35 = arith.constant 1 : index
    %c0_36 = arith.constant 0 : index
    %c0_37 = arith.constant 0 : index
    %59 = vector.load %arg7[%c1_35, %c0_36, %c0_37] : memref<6x128x128xbf16, #tpu.memory_space<vmem>>, vector<1x128x128xbf16>
    %60 = vector.shape_cast %59 : vector<1x128x128xbf16> to vector<128x128xbf16>
    %cst_38 = arith.constant dense<0.000000e+00> : vector<64x128xf32>
    %61 = tpu.matmul %58, %60, %cst_38 {dimension_numbers = #tpu.dot_dimension_numbers<[1], [0], [0], [1], [0, 0, 1, 1], [], []>} : vector<64x128xbf16>, vector<128x128xbf16>, vector<64x128xf32> -> vector<64x128xf32>
    %c1_39 = arith.constant 1 : index
    %c0_40 = arith.constant 0 : index
    %62 = vector.load %arg8[%c1_39, %c0_40] : memref<8x128xf32, #tpu.memory_space<vmem>>, vector<1x128xf32>
    %63 = vector.broadcast %62 : vector<1x128xf32> to vector<64x128xf32>
    %64 = arith.addf %61, %63 : vector<64x128xf32>
    %65 = arith.mulf %64, %64 : vector<64x128xf32>
    %66 = arith.mulf %64, %65 : vector<64x128xf32>
    %cst_41 = arith.constant 4.471500e-02 : f32
    %67 = vector.broadcast %cst_41 : f32 to vector<64x128xf32>
    %68 = arith.mulf %67, %66 : vector<64x128xf32>
    %69 = arith.addf %64, %68 : vector<64x128xf32>
    %cst_42 = arith.constant 0.797884583 : f32
    %70 = vector.broadcast %cst_42 : f32 to vector<64x128xf32>
    %71 = arith.mulf %70, %69 : vector<64x128xf32>
    %72 = math.tanh %71 : vector<64x128xf32>
    %cst_43 = arith.constant 1.000000e+00 : f32
    %73 = vector.broadcast %cst_43 : f32 to vector<64x128xf32>
    %74 = arith.addf %73, %72 : vector<64x128xf32>
    %cst_44 = arith.constant 5.000000e-01 : f32
    %75 = vector.broadcast %cst_44 : f32 to vector<64x128xf32>
    %76 = arith.mulf %75, %74 : vector<64x128xf32>
    %77 = arith.mulf %64, %76 : vector<64x128xf32>
    %78 = arith.extf %20 : vector<136x128xbf16> to vector<136x128xf32>
    %79 = vector.broadcast %14 : vector<136x1xf32> to vector<136x128xf32>
    %80 = arith.mulf %79, %78 : vector<136x128xf32>
    %81 = arith.extf %21 : vector<136x128xbf16> to vector<136x128xf32>
    %82 = vector.broadcast %19 : vector<136x1xf32> to vector<136x128xf32>
    %83 = arith.mulf %82, %81 : vector<136x128xf32>
    %84 = arith.addf %80, %83 : vector<136x128xf32>
    %85 = vector.extract_strided_slice %84 {offsets = [0, 0], sizes = [64, 128], strides = [1, 1]} : vector<136x128xf32> to vector<64x128xf32>
    %c8_45 = arith.constant 8 : index
    %c0_46 = arith.constant 0 : index
    %86 = vector.load %arg10[%c8_45, %c0_46] : memref<152x128xf32, #tpu.memory_space<vmem>>, vector<64x128xf32>
    tpu.vector_store %arg10[%c8_45, %c0_46], %85 {strides = array<i32>} : memref<152x128xf32, #tpu.memory_space<vmem>>, vector<64x128xf32>,
    %87 = vector.extract_strided_slice %84 {offsets = [72, 0], sizes = [64, 128], strides = [1, 1]} : vector<136x128xf32> to vector<64x128xf32>
    %c80_47 = arith.constant 80 : index
    %c0_48 = arith.constant 0 : index
    %88 = vector.load %arg10[%c80_47, %c0_48] : memref<152x128xf32, #tpu.memory_space<vmem>>, vector<64x128xf32>
    tpu.vector_store %arg10[%c80_47, %c0_48], %87 {strides = array<i32>} : memref<152x128xf32, #tpu.memory_space<vmem>>, vector<64x128xf32>,
    %c7_49 = arith.constant 7 : index
    %c0_50 = arith.constant 0 : index
    %89 = vector.load %arg10[%c7_49, %c0_50] : memref<152x128xf32, #tpu.memory_space<vmem>>, vector<136x128xf32>
    %c8_51 = arith.constant 8 : index
    %c0_52 = arith.constant 0 : index
    %90 = vector.load %arg10[%c8_51, %c0_52] : memref<152x128xf32, #tpu.memory_space<vmem>>, vector<136x128xf32>
    %c32_i32_53 = arith.constant 32 : i32
    %91 = tpu.dynamic_rotate %90 by %c32_i32_53 dim 1 : vector<136x128xf32>, i32 -> vector<136x128xf32>
    %92 = arith.addf %89, %91 : vector<136x128xf32>
    %c9_54 = arith.constant 9 : index
    %c0_55 = arith.constant 0 : index
    %93 = vector.load %arg10[%c9_54, %c0_55] : memref<152x128xf32, #tpu.memory_space<vmem>>, vector<136x128xf32>
    %c64_i32_56 = arith.constant 64 : i32
    %94 = tpu.dynamic_rotate %93 by %c64_i32_56 dim 1 : vector<136x128xf32>, i32 -> vector<136x128xf32>
    %95 = arith.addf %92, %94 : vector<136x128xf32>
    %96 = arith.truncf %95 : vector<136x128xf32> to vector<136x128xbf16>
    %c2 = arith.constant 2 : index
    %c0_57 = arith.constant 0 : index
    %c0_58 = arith.constant 0 : index
    %97 = vector.load %arg7[%c2, %c0_57, %c0_58] : memref<6x128x128xbf16, #tpu.memory_space<vmem>>, vector<1x128x128xbf16>
    %98 = vector.shape_cast %97 : vector<1x128x128xbf16> to vector<128x128xbf16>
    %cst_59 = arith.constant dense<0.000000e+00> : vector<136x128xf32>
    %99 = tpu.matmul %96, %98, %cst_59 {dimension_numbers = #tpu.dot_dimension_numbers<[1], [0], [0], [1], [0, 0, 1, 1], [], []>} : vector<136x128xbf16>, vector<128x128xbf16>, vector<136x128xf32> -> vector<136x128xf32>
    %c2_60 = arith.constant 2 : index
    %c0_61 = arith.constant 0 : index
    %100 = vector.load %arg8[%c2_60, %c0_61] : memref<8x128xf32, #tpu.memory_space<vmem>>, vector<1x128xf32>
    %101 = vector.broadcast %100 : vector<1x128xf32> to vector<136x128xf32>
    %102 = arith.addf %99, %101 : vector<136x128xf32>
    %103 = arith.mulf %102, %102 : vector<136x128xf32>
    %104 = arith.mulf %102, %103 : vector<136x128xf32>
    %cst_62 = arith.constant 4.471500e-02 : f32
    %105 = vector.broadcast %cst_62 : f32 to vector<136x128xf32>
    %106 = arith.mulf %105, %104 : vector<136x128xf32>
    %107 = arith.addf %102, %106 : vector<136x128xf32>
    %cst_63 = arith.constant 0.797884583 : f32
    %108 = vector.broadcast %cst_63 : f32 to vector<136x128xf32>
    %109 = arith.mulf %108, %107 : vector<136x128xf32>
    %110 = math.tanh %109 : vector<136x128xf32>
    %cst_64 = arith.constant 1.000000e+00 : f32
    %111 = vector.broadcast %cst_64 : f32 to vector<136x128xf32>
    %112 = arith.addf %111, %110 : vector<136x128xf32>
    %cst_65 = arith.constant 5.000000e-01 : f32
    %113 = vector.broadcast %cst_65 : f32 to vector<136x128xf32>
    %114 = arith.mulf %113, %112 : vector<136x128xf32>
    %115 = arith.mulf %102, %114 : vector<136x128xf32>
    %116 = arith.truncf %77 : vector<64x128xf32> to vector<64x128xbf16>
    %c3 = arith.constant 3 : index
    %c0_66 = arith.constant 0 : index
    %c0_67 = arith.constant 0 : index
    %117 = vector.load %arg7[%c3, %c0_66, %c0_67] : memref<6x128x128xbf16, #tpu.memory_space<vmem>>, vector<1x128x128xbf16>
    %118 = vector.shape_cast %117 : vector<1x128x128xbf16> to vector<128x128xbf16>
    %cst_68 = arith.constant dense<0.000000e+00> : vector<64x128xf32>
    %119 = tpu.matmul %116, %118, %cst_68 {dimension_numbers = #tpu.dot_dimension_numbers<[1], [0], [0], [1], [0, 0, 1, 1], [], []>} : vector<64x128xbf16>, vector<128x128xbf16>, vector<64x128xf32> -> vector<64x128xf32>
    %c3_69 = arith.constant 3 : index
    %c0_70 = arith.constant 0 : index
    %120 = vector.load %arg8[%c3_69, %c0_70] : memref<8x128xf32, #tpu.memory_space<vmem>>, vector<1x128xf32>
    %121 = vector.broadcast %120 : vector<1x128xf32> to vector<64x128xf32>
    %122 = arith.addf %119, %121 : vector<64x128xf32>
    %c0_71 = arith.constant 0 : index
    %c0_72 = arith.constant 0 : index
    %123 = vector.load %arg6[%c0_71, %c0_72] : memref<136x64xbf16, #tpu.memory_space<vmem>>, vector<136x64xbf16>
    %124 = arith.truncf %122 : vector<64x128xf32> to vector<64x128xbf16>
    %cst_73 = arith.constant dense<0.000000e+00> : vector<136x128xf32>
    %125 = tpu.matmul %123, %124, %cst_73 {dimension_numbers = #tpu.dot_dimension_numbers<[1], [0], [0], [1], [0, 0, 1, 1], [], []>} : vector<136x64xbf16>, vector<64x128xbf16>, vector<136x128xf32> -> vector<136x128xf32>
    %c0_74 = arith.constant 0 : index
    %c0_75 = arith.constant 0 : index
    %126 = vector.load %arg2[%c0_74, %c0_75] : memref<8x128xf32, #tpu.memory_space<vmem>>, vector<1x128xf32>
    %c1_76 = arith.constant 1 : index
    %c0_77 = arith.constant 0 : index
    %127 = vector.load %arg2[%c1_76, %c0_77] : memref<8x128xf32, #tpu.memory_space<vmem>>, vector<1x128xf32>
    %128 = vector.shape_cast %6 : vector<136x1xi1> to vector<136x1xi1>
    %129 = vector.broadcast %128 : vector<136x1xi1> to vector<136x128xi1>
    %130 = vector.shape_cast %127 : vector<1x128xf32> to vector<1x128xf32>
    %131 = vector.broadcast %130 : vector<1x128xf32> to vector<136x128xf32>
    %132 = vector.shape_cast %126 : vector<1x128xf32> to vector<1x128xf32>
    %133 = vector.broadcast %132 : vector<1x128xf32> to vector<136x128xf32>
    %134 = arith.select %129, %131, %133 : vector<136x128xi1>, vector<136x128xf32>
    %135 = arith.addf %115, %134 : vector<136x128xf32>
    %136 = arith.addf %135, %125 : vector<136x128xf32>
    %137 = vector.extract_strided_slice %136 {offsets = [0, 0], sizes = [64, 128], strides = [1, 1]} : vector<136x128xf32> to vector<64x128xf32>
    %c8_78 = arith.constant 8 : index
    %c0_79 = arith.constant 0 : index
    %138 = vector.load %arg10[%c8_78, %c0_79] : memref<152x128xf32, #tpu.memory_space<vmem>>, vector<64x128xf32>
    tpu.vector_store %arg10[%c8_78, %c0_79], %137 {strides = array<i32>} : memref<152x128xf32, #tpu.memory_space<vmem>>, vector<64x128xf32>,
    %139 = vector.extract_strided_slice %136 {offsets = [72, 0], sizes = [64, 128], strides = [1, 1]} : vector<136x128xf32> to vector<64x128xf32>
    %c80_80 = arith.constant 80 : index
    %c0_81 = arith.constant 0 : index
    %140 = vector.load %arg10[%c80_80, %c0_81] : memref<152x128xf32, #tpu.memory_space<vmem>>, vector<64x128xf32>
    tpu.vector_store %arg10[%c80_80, %c0_81], %139 {strides = array<i32>} : memref<152x128xf32, #tpu.memory_space<vmem>>, vector<64x128xf32>,
    %c7_82 = arith.constant 7 : index
    %c0_83 = arith.constant 0 : index
    %141 = vector.load %arg10[%c7_82, %c0_83] : memref<152x128xf32, #tpu.memory_space<vmem>>, vector<136x128xf32>
    %c8_84 = arith.constant 8 : index
    %c0_85 = arith.constant 0 : index
    %142 = vector.load %arg10[%c8_84, %c0_85] : memref<152x128xf32, #tpu.memory_space<vmem>>, vector<136x128xf32>
    %c32_i32_86 = arith.constant 32 : i32
    %143 = tpu.dynamic_rotate %142 by %c32_i32_86 dim 1 : vector<136x128xf32>, i32 -> vector<136x128xf32>
    %144 = arith.addf %141, %143 : vector<136x128xf32>
    %c9_87 = arith.constant 9 : index
    %c0_88 = arith.constant 0 : index
    %145 = vector.load %arg10[%c9_87, %c0_88] : memref<152x128xf32, #tpu.memory_space<vmem>>, vector<136x128xf32>
    %c64_i32_89 = arith.constant 64 : i32
    %146 = tpu.dynamic_rotate %145 by %c64_i32_89 dim 1 : vector<136x128xf32>, i32 -> vector<136x128xf32>
    %147 = arith.addf %144, %146 : vector<136x128xf32>
    %148 = arith.truncf %147 : vector<136x128xf32> to vector<136x128xbf16>
    %c4 = arith.constant 4 : index
    %c0_90 = arith.constant 0 : index
    %c0_91 = arith.constant 0 : index
    %149 = vector.load %arg7[%c4, %c0_90, %c0_91] : memref<6x128x128xbf16, #tpu.memory_space<vmem>>, vector<1x128x128xbf16>
    %150 = vector.shape_cast %149 : vector<1x128x128xbf16> to vector<128x128xbf16>
    %cst_92 = arith.constant dense<0.000000e+00> : vector<136x128xf32>
    %151 = tpu.matmul %148, %150, %cst_92 {dimension_numbers = #tpu.dot_dimension_numbers<[1], [0], [0], [1], [0, 0, 1, 1], [], []>} : vector<136x128xbf16>, vector<128x128xbf16>, vector<136x128xf32> -> vector<136x128xf32>
    %c4_93 = arith.constant 4 : index
    %c0_94 = arith.constant 0 : index
    %152 = vector.load %arg8[%c4_93, %c0_94] : memref<8x128xf32, #tpu.memory_space<vmem>>, vector<1x128xf32>
    %153 = vector.broadcast %152 : vector<1x128xf32> to vector<136x128xf32>
    %154 = arith.addf %151, %153 : vector<136x128xf32>
    %155 = arith.mulf %154, %154 : vector<136x128xf32>
    %156 = arith.mulf %154, %155 : vector<136x128xf32>
    %cst_95 = arith.constant 4.471500e-02 : f32
    %157 = vector.broadcast %cst_95 : f32 to vector<136x128xf32>
    %158 = arith.mulf %157, %156 : vector<136x128xf32>
    %159 = arith.addf %154, %158 : vector<136x128xf32>
    %cst_96 = arith.constant 0.797884583 : f32
    %160 = vector.broadcast %cst_96 : f32 to vector<136x128xf32>
    %161 = arith.mulf %160, %159 : vector<136x128xf32>
    %162 = math.tanh %161 : vector<136x128xf32>
    %cst_97 = arith.constant 1.000000e+00 : f32
    %163 = vector.broadcast %cst_97 : f32 to vector<136x128xf32>
    %164 = arith.addf %163, %162 : vector<136x128xf32>
    %cst_98 = arith.constant 5.000000e-01 : f32
    %165 = vector.broadcast %cst_98 : f32 to vector<136x128xf32>
    %166 = arith.mulf %165, %164 : vector<136x128xf32>
    %167 = arith.mulf %154, %166 : vector<136x128xf32>
    %168 = vector.extract_strided_slice %167 {offsets = [0, 0], sizes = [64, 128], strides = [1, 1]} : vector<136x128xf32> to vector<64x128xf32>
    %c8_99 = arith.constant 8 : index
    %c0_100 = arith.constant 0 : index
    %169 = vector.load %arg10[%c8_99, %c0_100] : memref<152x128xf32, #tpu.memory_space<vmem>>, vector<64x128xf32>
    tpu.vector_store %arg10[%c8_99, %c0_100], %168 {strides = array<i32>} : memref<152x128xf32, #tpu.memory_space<vmem>>, vector<64x128xf32>,
    %170 = vector.extract_strided_slice %167 {offsets = [72, 0], sizes = [64, 128], strides = [1, 1]} : vector<136x128xf32> to vector<64x128xf32>
    %c80_101 = arith.constant 80 : index
    %c0_102 = arith.constant 0 : index
    %171 = vector.load %arg10[%c80_101, %c0_102] : memref<152x128xf32, #tpu.memory_space<vmem>>, vector<64x128xf32>
    tpu.vector_store %arg10[%c80_101, %c0_102], %170 {strides = array<i32>} : memref<152x128xf32, #tpu.memory_space<vmem>>, vector<64x128xf32>,
    %c7_103 = arith.constant 7 : index
    %c0_104 = arith.constant 0 : index
    %172 = vector.load %arg10[%c7_103, %c0_104] : memref<152x128xf32, #tpu.memory_space<vmem>>, vector<136x128xf32>
    %c8_105 = arith.constant 8 : index
    %c0_106 = arith.constant 0 : index
    %173 = vector.load %arg10[%c8_105, %c0_106] : memref<152x128xf32, #tpu.memory_space<vmem>>, vector<136x128xf32>
    %c32_i32_107 = arith.constant 32 : i32
    %174 = tpu.dynamic_rotate %173 by %c32_i32_107 dim 1 : vector<136x128xf32>, i32 -> vector<136x128xf32>
    %175 = arith.addf %172, %174 : vector<136x128xf32>
    %c9_108 = arith.constant 9 : index
    %c0_109 = arith.constant 0 : index
    %176 = vector.load %arg10[%c9_108, %c0_109] : memref<152x128xf32, #tpu.memory_space<vmem>>, vector<136x128xf32>
    %c64_i32_110 = arith.constant 64 : i32
    %177 = tpu.dynamic_rotate %176 by %c64_i32_110 dim 1 : vector<136x128xf32>, i32 -> vector<136x128xf32>
    %178 = arith.addf %175, %177 : vector<136x128xf32>
    %179 = arith.truncf %178 : vector<136x128xf32> to vector<136x128xbf16>
    %c5 = arith.constant 5 : index
    %c0_111 = arith.constant 0 : index
    %c0_112 = arith.constant 0 : index
    %180 = vector.load %arg7[%c5, %c0_111, %c0_112] : memref<6x128x128xbf16, #tpu.memory_space<vmem>>, vector<1x128x128xbf16>
    %181 = vector.shape_cast %180 : vector<1x128x128xbf16> to vector<128x128xbf16>
    %cst_113 = arith.constant dense<0.000000e+00> : vector<136x128xf32>
    %182 = tpu.matmul %179, %181, %cst_113 {dimension_numbers = #tpu.dot_dimension_numbers<[1], [0], [0], [1], [0, 0, 1, 1], [], []>} : vector<136x128xbf16>, vector<128x128xbf16>, vector<136x128xf32> -> vector<136x128xf32>
    %c5_114 = arith.constant 5 : index
    %c0_115 = arith.constant 0 : index
    %183 = vector.load %arg8[%c5_114, %c0_115] : memref<8x128xf32, #tpu.memory_space<vmem>>, vector<1x128xf32>
    %184 = vector.broadcast %183 : vector<1x128xf32> to vector<136x128xf32>
    %185 = arith.addf %182, %184 : vector<136x128xf32>
    %186 = arith.extf %21 : vector<136x128xbf16> to vector<136x128xf32>
    %187 = vector.broadcast %14 : vector<136x1xf32> to vector<136x128xf32>
    %188 = arith.mulf %187, %186 : vector<136x128xf32>
    %189 = arith.extf %20 : vector<136x128xbf16> to vector<136x128xf32>
    %190 = vector.broadcast %19 : vector<136x1xf32> to vector<136x128xf32>
    %191 = arith.mulf %190, %189 : vector<136x128xf32>
    %192 = arith.subf %188, %191 : vector<136x128xf32>
    %193 = arith.subf %185, %192 : vector<136x128xf32>
    %cst_116 = arith.constant 0.000000e+00 : f32
    %194 = vector.shape_cast %9 : vector<136x1xi1> to vector<136x1xi1>
    %195 = vector.broadcast %194 : vector<136x1xi1> to vector<136x128xi1>
    %196 = vector.broadcast %cst_116 : f32 to vector<136x128xf32>
    %197 = arith.select %195, %193, %196 : vector<136x128xi1>, vector<136x128xf32>
    %198 = arith.mulf %197, %197 : vector<136x128xf32>
    %cst_117 = arith.constant dense<0.000000e+00> : vector<128xf32>
    %199 = vector.multi_reduction <add>, %198, %cst_117 [0] : vector<136x128xf32> to vector<128xf32>
    %200 = vector.shape_cast %199 : vector<128xf32> to vector<1x128xf32>
    %c0_118 = arith.constant 0 : index
    %c0_119 = arith.constant 0 : index
    %201 = vector.load %arg9[%c0_118, %c0_119] : memref<1x128xf32, #tpu.memory_space<vmem>>, vector<1x128xf32>
    tpu.vector_store %arg9[%c0_118, %c0_119], %200 {strides = array<i32>} : memref<1x128xf32, #tpu.memory_space<vmem>>, vector<1x128xf32>,
    return
  }
  func.func @transform_0(%arg0: i32, %arg1: memref<2x2xf32, #tpu.memory_space<smem>>) -> (i32, i32) {
    %c0_i32 = arith.constant 0 : i32
    %c0_i32_0 = arith.constant 0 : i32
    %c0_i32_1 = arith.constant 0 : i32
    return %c0_i32, %c0_i32_0 : i32, i32
  }
  func.func @transform_1(%arg0: i32, %arg1: memref<2x2xf32, #tpu.memory_space<smem>>) -> (i32, i32) {
    %c0_i32 = arith.constant 0 : i32
    %c0_i32_0 = arith.constant 0 : i32
    %c0_i32_1 = arith.constant 0 : i32
    return %c0_i32, %c0_i32_0 : i32, i32
  }
  func.func @transform_2(%arg0: i32, %arg1: memref<2x2xf32, #tpu.memory_space<smem>>) -> (i32, i32) {
    %c0_i32 = arith.constant 0 : i32
    %c0_i32_0 = arith.constant 0 : i32
    %c0_i32_1 = arith.constant 0 : i32
    return %c0_i32, %c0_i32_0 : i32, i32
  }
  func.func @transform_3(%arg0: i32, %arg1: memref<2x2xf32, #tpu.memory_space<smem>>) -> (i32, i32) {
    %c0_i32 = arith.constant 0 : i32
    %c0_i32_0 = arith.constant 0 : i32
    %c0_i32_1 = arith.constant 0 : i32
    return %c0_i32, %c0_i32_0 : i32, i32
  }
  func.func @transform_4(%arg0: i32, %arg1: memref<2x2xf32, #tpu.memory_space<smem>>) -> (i32, i32) {
    %c0_i32 = arith.constant 0 : i32
    %c0_i32_0 = arith.constant 0 : i32
    %c0_i32_1 = arith.constant 0 : i32
    return %c0_i32, %c0_i32_0 : i32, i32
  }
  func.func @transform_5(%arg0: i32, %arg1: memref<2x2xf32, #tpu.memory_space<smem>>) -> (i32, i32, i32) {
    %c0_i32 = arith.constant 0 : i32
    %c0_i32_0 = arith.constant 0 : i32
    %c0_i32_1 = arith.constant 0 : i32
    %c0_i32_2 = arith.constant 0 : i32
    return %c0_i32, %c0_i32_0, %c0_i32_1 : i32, i32, i32
  }
  func.func @transform_6(%arg0: i32, %arg1: memref<2x2xf32, #tpu.memory_space<smem>>) -> (i32, i32) {
    %c0_i32 = arith.constant 0 : i32
    %c0_i32_0 = arith.constant 0 : i32
    %c0_i32_1 = arith.constant 0 : i32
    return %c0_i32, %c0_i32_0 : i32, i32
  }
  func.func @transform_7(%arg0: i32, %arg1: memref<2x2xf32, #tpu.memory_space<smem>>) -> (i32, i32) {
    %c0_i32 = arith.constant 0 : i32
    %c0_i32_0 = arith.constant 0 : i32
    %c0_i32_1 = arith.constant 0 : i32
    return %c0_i32, %c0_i32_0 : i32, i32
  }
}

</mosaic_0001>

<bundles_post_ra>
// kernel: diffusion_autoencoder_forward.1
= control target key start
LH: loop header
LB: loop body
LE: loop exit
PB: predicated region body
PF: predicated region fallthrough
CT: control target
= control target key end

     0   :  { %s3436_s30 = smov [#allocation4]   ;;  %s4619_s0 = inlined_call_operand.vmem [shape: f32[2,2], index: 0, kind: input, shape index: {}]   ;;  %s4620_s1 = inlined_call_operand.vmem [shape: f32[8,128], index: 1, kind: input, shape index: {}]   ;;  %s4621_s2 = inlined_call_operand.vmem [shape: bf16[136,128], index: 2, kind: input, shape index: {}]   ;;  %s4622_s3 = inlined_call_operand.vmem [shape: bf16[136,128], index: 3, kind: input, shape index: {}]   ;;  %s4623_s4 = inlined_call_operand.vmem [shape: bf16[64,136], index: 4, kind: input, shape index: {}]   ;;  %s4624_s5 = inlined_call_operand.vmem [shape: bf16[136,64], index: 5, kind: input, shape index: {}]   ;;  %s4625_s6 = inlined_call_operand.vmem [shape: bf16[6,128,128], index: 6, kind: input, shape index: {}]   ;;  %s4626_s7 = inlined_call_operand.vmem [shape: f32[8,128], index: 7, kind: input, shape index: {}]   ;;  %s4627_s8 = inlined_call_operand.vmem [shape: f32[1,128], index: 8, kind: output, shape index: {}]  }
   0x1   :  { %s14_s29 = sshll.u32 %s4619_s0, 4  ;;  %s15_s29 = int_to_ptr.vmem [resolvable:$true] %s14_s29 }
   0x2   :  { %17 = dma.vmem_to_smem %s15_s29, 32, %s3436_s30, [#allocation3] }
   0x3   :  { %3434 = dma.done.wait [#allocation3], 32 }
   0x4   :  { %3435 = vsyncadd [#allocation3], 4294967264 }
   0x5   :  { %20 = sfence }
   0x6   :  { %v3187_v0 = vld [vmem:[%s4625_s6 + $0x38] sm:$0xff]  ;;  %v3186_v1 = vld [vmem:[%s4625_s6 + $0x30] sm:$0xff]  ;;  %v3185_v2 = vld [vmem:[%s4625_s6 + $0x28] sm:$0xff]  ;;  %v3437_v13 = vmov 0.0   ;;  %s3438_s12 = smov 32   ;;  %s3439_s22 = smov 64  }
   0x7   :  { %302 = vmatpush.bf16.msra.mxu0 %v3187_v0  ;;  %v3184_v3 = vld [vmem:[%s4625_s6 + $0x20] sm:$0xff]  ;;  %v3183_v4 = vld [vmem:[%s4625_s6 + $0x18] sm:$0xff]  ;;  %v3182_v5 = vld [vmem:[%s4625_s6 + $0x10] sm:$0xff]  ;;  %37 = vst [vmem:[#allocation2 + $0x48] sm:$0xff] %v3437_v13  ;;  %564 = vrot.lane.b32.xlu1 %v3437_v13, %s3438_s12  ;;  %s3440_s23 = smov 96   ;;  %s109_s24 = sld [smem:[#allocation4]] }
   0x8   :  { %v3181_v6 = vld [vmem:[%s4625_s6 + $0x8] sm:$0xff]  ;;  %v3180_v7 = vld [vmem:[%s4625_s6] sm:$0xff]  ;;  %v3174_v10 = vld [vmem:[%s4621_s2 + $0x10] sm:$0xff]  ;;  %36 = vst [vmem:[#allocation2] sm:$0xff] %v3437_v13  ;;  %s2790_s25 = sld [smem:[#allocation4 + $0x1]]  ;;  %vm801_vm0 = vcmask 1043456  }
   0x9   :  { %v3172_v8 = vld [vmem:[%s4621_s2] sm:$0xff]  ;;  %v3173_v9 = vld [vmem:[%s4621_s2 + $0x8] sm:$0xff]  ;;  %v3175_v11 = vld [vmem:[%s4621_s2 + $0x18] sm:$0xff]  ;;  %38 = vst [vmem:[#allocation2 + $0x90] sm:$0xff] %v3437_v13  ;;  %s2788_s26 = sld [smem:[#allocation4 + $0x80]]  ;;  %vm788_vm1 = vcmask 64512  }
   0xa   :  { %v3176_v12 = vld [vmem:[%s4621_s2 + $0x20] sm:$0xff]  ;;  %v3177_v14 = vld [vmem:[%s4621_s2 + $0x28] sm:$0xff]  ;;  %v3178_v15 = vld [vmem:[%s4621_s2 + $0x30] sm:$0xff]  ;;  %s2789_s27 = sld [smem:[#allocation4 + $0x81]]  ;;  %vm1722_vm2 = vcmask 523264  }
   0xb   :  { %303 = vmatpush.bf16.msra.mxu0 %v3186_v1  ;;  %v3179_v16 = vld [vmem:[%s4621_s2 + $0x38] sm:$0xff]  ;;  %v3541_v17 = vld [vmem:[%s4621_s2 + $0x40] sm:$0xf] }
   0xc   :  { %4701 = vst [vmem:[#allocation6_spill] sm:$0xff] %v3541_v17  ;;  %v235_v18 = vunpack.c.l.b16 %v3541_v17  ;;  %v3547_v19 = vld [vmem:[%s4626_s7] ss:$0 sm:$0xff] }
   0xe   :  { %v244_v20 = vpack.c.b16 %v235_v18, %v235_v18 }
   0xf   :  { %304 = vmatpush.bf16.msra.mxu0 %v3185_v2 }
  0x13   :  { %305 = vmatpush.bf16.msra.mxu0 %v3184_v3 }
  0x17   :  { %306 = vmatpush.bf16.msra.mxu0 %v3183_v4 }
  0x1b   :  { %307 = vmatpush.bf16.msra.mxu0 %v3182_v5 }
  0x1f   :  { %308 = vmatpush.bf16.msra.mxu0 %v3181_v6 }
  0x23   :  { %309 = vmatpush.bf16.msra.mxu0 %v3180_v7 }
  0x26   :  { %310 = vmatmul.bf16.vlgmr.msra.gmra.mxu0 %v3172_v8 }
  0x36   :  { %315 = vmatmul.bf16.gmra.mxu0 %v3173_v9 }
  0x46   :  { %320 = vmatmul.bf16.gmra.mxu0 %v3174_v10 }
  0x56   :  { %325 = vmatmul.bf16.gmra.mxu0 %v3175_v11 }
  0x66   :  { %330 = vmatmul.bf16.gmra.mxu0 %v3176_v12 }
  0x76   :  { %334 = vmatmul.bf16.gmra.mxu0 %v3177_v14 }
  0x86   :  { %339 = vmatmul.bf16.gmra.mxu0 %v3178_v15 }
  0x96   :  { %344 = vmatmul.bf16.gmra.mxu0 %v3179_v16 }
  0xa3   :  { %v311_v21 = vpop.f32.mrf.mxu0 }
  0xa4   :  { %v312_v22 = vadd.f32 %v3547_v19, %v311_v21 }
  0xa6   :  { %v354_v23 = vmul.f32 %v312_v22, %v312_v22  ;;  %349 = vmatmul.bf16.gmra.mxu0 %v244_v20 }
  0xa8   :  { %v370_v24 = vmul.f32 %v354_v23, %v312_v22 }
  0xaa   :  { %v386_v25 = vmul.f32 0.044715, %v370_v24 }
  0xab   :  { %v313_v26 = vpop.f32.mrf.mxu0 }
  0xac   :  { %v402_v27 = vadd.f32 %v386_v25, %v312_v22  ;;  %v314_v28 = vadd.f32 %v3547_v19, %v313_v26 }
  0xae   :  { %v418_v29 = vmul.f32 0.7978846, %v402_v27  ;;  %v355_v30 = vmul.f32 %v314_v28, %v314_v28 }
  0xb0   :  { %3307 = vtanh.f32 %v418_v29  ;;  %v371_v31 = vmul.f32 %v355_v30, %v314_v28 }
  0xb2   :  { %v387_v32 = vmul.f32 0.044715, %v371_v31 }
  0xb3   :  { %v316_v33 = vpop.f32.mrf.mxu0 }
  0xb4   :  { %v403_v34 = vadd.f32 %v387_v32, %v314_v28  ;;  %v317_v35 = vadd.f32 %v3547_v19, %v316_v33 }
  0xb6   :  { %v3308_v36 = vpop.eup %3307  ;;  %v419_v37 = vmul.f32 0.7978846, %v403_v34  ;;  %v356_v38 = vmul.f32 %v317_v35, %v317_v35 }
  0xb7   :  { %v450_v39 = vadd.f32 1.0, %v3308_v36 }
  0xb8   :  { %3309 = vtanh.f32 %v419_v37  ;;  %v372_v40 = vmul.f32 %v356_v38, %v317_v35 }
  0xb9   :  { %v466_v41 = vmul.f32 0.5, %v450_v39 }
  0xba   :  { %v388_v42 = vmul.f32 0.044715, %v372_v40 }
  0xbb   :  { %v3552_v43 = vmul.f32 %v466_v41, %v312_v22  ;;  %v318_v44 = vpop.f32.mrf.mxu0 }
  0xbc   :  { %v404_v45 = vadd.f32 %v388_v42, %v317_v35  ;;  %v319_v46 = vadd.f32 %v3547_v19, %v318_v44 }
  0xbd   :  { %498 = vst [vmem:[#allocation2 + $0x8] sm:$0xff] %v3552_v43 }
  0xbe   :  { %v3310_v47 = vpop.eup %3309  ;;  %v420_v48 = vmul.f32 0.7978846, %v404_v45  ;;  %v357_v49 = vmul.f32 %v319_v46, %v319_v46 }
  0xbf   :  { %v451_v50 = vadd.f32 1.0, %v3310_v47 }
  0xc0   :  { %3311 = vtanh.f32 %v420_v48  ;;  %v373_v51 = vmul.f32 %v357_v49, %v319_v46 }
  0xc1   :  { %v467_v52 = vmul.f32 0.5, %v451_v50 }
  0xc2   :  { %v389_v53 = vmul.f32 0.044715, %v373_v51 }
  0xc3   :  { %v3556_v54 = vmul.f32 %v467_v52, %v314_v28  ;;  %v321_v55 = vpop.f32.mrf.mxu0 }
  0xc4   :  { %v405_v56 = vadd.f32 %v389_v53, %v319_v46  ;;  %v322_v57 = vadd.f32 %v3547_v19, %v321_v55 }
  0xc5   :  { %499 = vst [vmem:[#allocation2 + $0x10] sm:$0xff] %v3556_v54 }
  0xc6   :  { %v3312_v58 = vpop.eup %3311  ;;  %v421_v59 = vmul.f32 0.7978846, %v405_v56  ;;  %v358_v60 = vmul.f32 %v322_v57, %v322_v57 }
  0xc7   :  { %v452_v61 = vadd.f32 1.0, %v3312_v58 }
  0xc8   :  { %3313 = vtanh.f32 %v421_v59  ;;  %v374_v62 = vmul.f32 %v358_v60, %v322_v57 }
  0xc9   :  { %v468_v63 = vmul.f32 0.5, %v452_v61 }
  0xca   :  { %v390_v0 = vmul.f32 0.044715, %v374_v62 }
  0xcb   :  { %v484_v1 = vmul.f32 %v468_v63, %v317_v35  ;;  %v323_v2 = vpop.f32.mrf.mxu0 }
  0xcc   :  { %v406_v3 = vadd.f32 %v390_v0, %v322_v57  ;;  %v324_v4 = vadd.f32 %v3547_v19, %v323_v2 }
  0xcd   :  { %500 = vst [vmem:[#allocation2 + $0x18] sm:$0xff] %v484_v1  ;;  %552 = vrot.lane.b32.xlu0 %v484_v1, %s3438_s12 }
  0xce   :  { %v3314_v5 = vpop.eup %3313  ;;  %v422_v6 = vmul.f32 0.7978846, %v406_v3  ;;  %v359_v7 = vmul.f32 %v324_v4, %v324_v4 }
  0xcf   :  { %v453_v8 = vadd.f32 1.0, %v3314_v5 }
  0xd0   :  { %3315 = vtanh.f32 %v422_v6  ;;  %v375_v9 = vmul.f32 %v359_v7, %v324_v4 }
  0xd1   :  { %v469_v10 = vmul.f32 0.5, %v453_v8 }
  0xd2   :  { %v391_v11 = vmul.f32 0.044715, %v375_v9 }
  0xd3   :  { %v485_v12 = vmul.f32 %v469_v10, %v319_v46  ;;  %v326_v13 = vpop.f32.mrf.mxu0 }
  0xd4   :  { %v407_v14 = vadd.f32 %v391_v11, %v324_v4  ;;  %v327_v15 = vadd.f32 %v3547_v19, %v326_v13 }
  0xd5   :  { %501 = vst [vmem:[#allocation2 + $0x20] sm:$0xff] %v485_v12  ;;  %554 = vrot.lane.b32.xlu1 %v485_v12, %s3438_s12 }
  0xd6   :  { %v3316_v16 = vpop.eup %3315  ;;  %v423_v18 = vmul.f32 0.7978846, %v407_v14  ;;  %v360_v20 = vmul.f32 %v327_v15, %v327_v15 }
  0xd7   :  { %v454_v21 = vadd.f32 1.0, %v3316_v16 }
  0xd8   :  { %3317 = vtanh.f32 %v423_v18  ;;  %v376_v22 = vmul.f32 %v360_v20, %v327_v15 }
  0xd9   :  { %v470_v23 = vmul.f32 0.5, %v454_v21 }
  0xda   :  { %v392_v24 = vmul.f32 0.044715, %v376_v22 }
  0xdb   :  { %v486_v25 = vmul.f32 %v470_v23, %v322_v57  ;;  %v328_v26 = vpop.f32.mrf.mxu0 }
  0xdc   :  { %v408_v27 = vadd.f32 %v392_v24, %v327_v15  ;;  %v329_v28 = vadd.f32 %v3547_v19, %v328_v26 }
  0xdd   :  { %502 = vst [vmem:[#allocation2 + $0x28] sm:$0xff] %v486_v25  ;;  %556 = vrot.lane.b32.xlu1 %v486_v25, %s3438_s12 }
  0xde   :  { %v3318_v29 = vpop.eup %3317  ;;  %v424_v30 = vmul.f32 0.7978846, %v408_v27  ;;  %v361_v31 = vmul.f32 %v329_v28, %v329_v28 }
  0xdf   :  { %v455_v32 = vadd.f32 1.0, %v3318_v29 }
  0xe0   :  { %3319 = vtanh.f32 %v424_v30  ;;  %v377_v33 = vmul.f32 %v361_v31, %v329_v28 }
  0xe1   :  { %v471_v34 = vmul.f32 0.5, %v455_v32 }
  0xe2   :  { %v393_v35 = vmul.f32 0.044715, %v377_v33 }
  0xe3   :  { %v487_v36 = vmul.f32 %v471_v34, %v324_v4  ;;  %v331_v37 = vpop.f32.mrf.mxu0 }
  0xe4   :  { %v409_v38 = vadd.f32 %v393_v35, %v329_v28 }
  0xe5   :  { %503 = vst [vmem:[#allocation2 + $0x30] sm:$0xff] %v487_v36  ;;  %558 = vrot.lane.b32.xlu2 %v487_v36, %s3438_s12 }
  0xe6   :  { %v3320_v39 = vpop.eup %3319  ;;  %v425_v40 = vmul.f32 0.7978846, %v409_v38 }
  0xe7   :  { %v456_v41 = vadd.f32 1.0, %v3320_v39 }
  0xe8   :  { %3321 = vtanh.f32 %v425_v40 }
  0xe9   :  { %v472_v42 = vmul.f32 0.5, %v456_v41 }
  0xeb   :  { %v488_v44 = vmul.f32 %v472_v42, %v327_v15  ;;  %v332_v45 = vpop.f32.mrf.mxu0 }
  0xec   :  { %v333_v46 = vadd.f32 %v3547_v19, %v332_v45  ;;  %v603_v47 = vld [vmem:[#allocation2 + $0x29] sm:$0xff] }
  0xed   :  { %v671_v48 = vld [vmem:[#allocation2 + $0x2a] sm:$0xff]  ;;  %504 = vst [vmem:[#allocation2 + $0x38] sm:$0xff] %v488_v44  ;;  %624 = vrot.lane.b32.xlu0 %v603_v47, %s3439_s22  ;;  %560 = vrot.lane.b32.xlu1 %v488_v44, %s3438_s12 }
  0xee   :  { %692 = vrot.lane.b32.xlu2 %v671_v48, %s3440_s23  ;;  %v3322_v49 = vpop.eup %3321  ;;  %v362_v50 = vmul.f32 %v333_v46, %v333_v46 }
  0xef   :  { %v457_v51 = vadd.f32 1.0, %v3322_v49 }
  0xf0   :  { %v378_v52 = vmul.f32 %v362_v50, %v333_v46 }
  0xf1   :  { %v473_v53 = vmul.f32 0.5, %v457_v51 }
  0xf2   :  { %v394_v55 = vmul.f32 0.044715, %v378_v52 }
  0xf3   :  { %v489_v56 = vmul.f32 %v473_v53, %v329_v28  ;;  %v335_v57 = vpop.f32.mrf.mxu0 }
  0xf4   :  { %v410_v58 = vadd.f32 %v394_v55, %v333_v46  ;;  %v336_v59 = vadd.f32 %v3547_v19, %v335_v57  ;;  %v604_v60 = vld [vmem:[#allocation2 + $0x31] sm:$0xff] }
  0xf5   :  { %505 = vst [vmem:[#allocation2 + $0x40] sm:$0xff] %v489_v56  ;;  %626 = vrot.lane.b32.xlu1 %v604_v60, %s3439_s22 }
  0xf6   :  { %562 = vrot.lane.b32.xlu2 %v489_v56, %s3438_s12  ;;  %v426_v61 = vmul.f32 0.7978846, %v410_v58  ;;  %v363_v62 = vmul.f32 %v336_v59, %v336_v59 }
  0xf8   :  { %3323 = vtanh.f32 %v426_v61  ;;  %v379_v63 = vmul.f32 %v363_v62, %v336_v59 }
  0xfa   :  { %v395_v0 = vmul.f32 0.044715, %v379_v63 }
  0xfb   :  { %v337_v1 = vpop.f32.mrf.mxu0 }
  0xfc   :  { %v411_v2 = vadd.f32 %v395_v0, %v336_v59  ;;  %v338_v3 = vadd.f32 %v3547_v19, %v337_v1  ;;  %v606_v4 = vld [vmem:[#allocation2 + $0x41] sm:$0xff]  ;;  %v605_v5 = vld [vmem:[#allocation2 + $0x39] sm:$0xff] }
  0xfd   :  { %630 = vrot.lane.b32.xlu0 %v606_v4, %s3439_s22  ;;  %v674_v6 = vld [vmem:[#allocation2 + $0x42] sm:$0xff]  ;;  %v673_v20 = vld [vmem:[#allocation2 + $0x3a] sm:$0xff] }
  0xfe   :  { %628 = vrot.lane.b32.xlu2 %v605_v5, %s3439_s22  ;;  %v3324_v7 = vpop.eup %3323  ;;  %v427_v8 = vmul.f32 0.7978846, %v411_v2  ;;  %v364_v9 = vmul.f32 %v338_v3, %v338_v3  ;;  %698 = vrot.lane.b32.xlu1 %v674_v6, %s3440_s23 }
  0xff   :  { %v458_v10 = vadd.f32 1.0, %v3324_v7 }
 0x100   :  { %3325 = vtanh.f32 %v427_v8  ;;  %v380_v11 = vmul.f32 %v364_v9, %v338_v3 }
 0x101   :  { %v474_v12 = vmul.f32 0.5, %v458_v10 }
 0x102   :  { %v396_v13 = vmul.f32 0.044715, %v380_v11 }
 0x103   :  { %v490_v14 = vmul.f32 %v474_v12, %v333_v46  ;;  %v340_v15 = vpop.f32.mrf.mxu0 }
 0x104   :  { %v412_v16 = vadd.f32 %v396_v13, %v338_v3  ;;  %v341_v18 = vadd.f32 %v3547_v19, %v340_v15 }
 0x105   :  { %506 = vst [vmem:[#allocation2 + $0x50] sm:$0xff] %v490_v14  ;;  %696 = vrot.lane.b32.xlu0 %v673_v20, %s3440_s23 }
 0x106   :  { %566 = vrot.lane.b32.xlu2 %v490_v14, %s3438_s12  ;;  %v3326_v21 = vpop.eup %3325  ;;  %v428_v22 = vmul.f32 0.7978846, %v412_v16  ;;  %v365_v23 = vmul.f32 %v341_v18, %v341_v18 }
 0x107   :  { %v459_v24 = vadd.f32 1.0, %v3326_v21 }
 0x108   :  { %3327 = vtanh.f32 %v428_v22  ;;  %v381_v25 = vmul.f32 %v365_v23, %v341_v18 }
 0x109   :  { %v475_v26 = vmul.f32 0.5, %v459_v24 }
 0x10a   :  { %v397_v27 = vmul.f32 0.044715, %v381_v25 }
 0x10b   :  { %v491_v28 = vmul.f32 %v475_v26, %v336_v59  ;;  %v342_v29 = vpop.f32.mrf.mxu0 }
 0x10c   :  { %v413_v30 = vadd.f32 %v397_v27, %v341_v18  ;;  %v343_v31 = vadd.f32 %v3547_v19, %v342_v29  ;;  %v675_v32 = vld [vmem:[#allocation2 + $0x4a] sm:$0xff] }
 0x10d   :  { %v607_v33 = vld [vmem:[#allocation2 + $0x49] sm:$0xff]  ;;  %507 = vst [vmem:[#allocation2 + $0x58] sm:$0xff] %v491_v28  ;;  %700 = vrot.lane.b32.xlu0 %v675_v32, %s3440_s23  ;;  %568 = vrot.lane.b32.xlu1 %v491_v28, %s3438_s12 }
 0x10e   :  { %632 = vrot.lane.b32.xlu2 %v607_v33, %s3439_s22  ;;  %v3328_v34 = vpop.eup %3327  ;;  %v429_v35 = vmul.f32 0.7978846, %v413_v30  ;;  %v366_v36 = vmul.f32 %v343_v31, %v343_v31  ;;  %v3603_v30 = vld [vmem:[%s4621_s2 + $0x18] sm:$0xff]  }
 0x10f   :  { %v460_v37 = vadd.f32 1.0, %v3328_v34  ;;  %4702 = vst [vmem:[#allocation7_spill] sm:$0xff] %v3603_v30  ;;  %v4632_v34 = vunpack.c.h.bf16 %v3603_v30 }
 0x110   :  { %3329 = vtanh.f32 %v429_v35  ;;  %v382_v38 = vmul.f32 %v366_v36, %v343_v31  ;;  %v3616_v35 = vld [vmem:[%s4622_s3 + $0x40] sm:$0xf] }
 0x111   :  { %v476_v39 = vmul.f32 0.5, %v460_v37  ;;  %4704 = vst [vmem:[#allocation9_spill] sm:$0xff] %v3616_v35  ;;  %v3618_v37 = vstv %s109_s24 }
 0x112   :  { %v398_v40 = vmul.f32 0.044715, %v382_v38  ;;  %4705 = vst [vmem:[#allocation10_spill] sm:$0xff] %v3618_v37  ;;  %v3620_v38 = vstv %s2790_s25 }
 0x113   :  { %v492_v41 = vmul.f32 %v476_v39, %v338_v3  ;;  %v345_v42 = vpop.f32.mrf.mxu0  ;;  %4706 = vst [vmem:[#allocation11_spill] sm:$0xff] %v3620_v38  ;;  %v1059_v39 = vmul.f32 %v4632_v34, %v3618_v37 }
 0x114   :  { %v414_v44 = vadd.f32 %v398_v40, %v343_v31  ;;  %v346_v45 = vadd.f32 %v3547_v19, %v345_v42  ;;  %v608_v46 = vld [vmem:[#allocation2 + $0x51] sm:$0xff]  ;;  %v4629_v42 = vunpack.c.l.bf16 %v3541_v17 }
 0x115   :  { %v676_v47 = vld [vmem:[#allocation2 + $0x52] sm:$0xff]  ;;  %508 = vst [vmem:[#allocation2 + $0x60] sm:$0xff] %v492_v41  ;;  %634 = vrot.lane.b32.xlu0 %v608_v46, %s3439_s22  ;;  %v3632_v46 = vld [vmem:[#allocation2 + $0x47] sm:$0xff] }
 0x116   :  { %570 = vrot.lane.b32.xlu2 %v492_v41, %s3438_s12  ;;  %v3330_v48 = vpop.eup %3329  ;;  %v430_v49 = vmul.f32 0.7978846, %v414_v44  ;;  %v367_v50 = vmul.f32 %v346_v45, %v346_v45  ;;  %702 = vrot.lane.b32.xlu1 %v676_v47, %s3440_s23  ;;  %v4628_v44 = vunpack.c.l.bf16 %v3616_v35 }
 0x117   :  { %v461_v51 = vadd.f32 1.0, %v3330_v48  ;;  %v3636_v48 = vld [vmem:[#allocation2 + $0x3f] sm:$0xff] }
 0x118   :  { %3331 = vtanh.f32 %v430_v49  ;;  %v383_v52 = vmul.f32 %v367_v50, %v346_v45  ;;  %v3638_v49 = vstv %s2788_s26  ;;  %v3640_v50 = vstv %s2789_s27 }
 0x119   :  { %v477_v53 = vmul.f32 0.5, %v461_v51  ;;  %4707 = vst [vmem:[#allocation12_spill] sm:$0xff] %v3638_v49 }
 0x11a   :  { %v399_v55 = vmul.f32 0.044715, %v383_v52  ;;  %4708 = vst [vmem:[#allocation13_spill] sm:$0xff] %v3640_v50 }
 0x11b   :  { %v493_v56 = vmul.f32 %v477_v53, %v341_v18  ;;  %v347_v57 = vpop.f32.mrf.mxu0  ;;  %v601_v53 = vld [vmem:[#allocation2 + $0x19] sm:$0xff] }
 0x11c   :  { %v415_v58 = vadd.f32 %v399_v55, %v346_v45  ;;  %v348_v59 = vadd.f32 %v3547_v19, %v347_v57  ;;  %v677_v60 = vld [vmem:[#allocation2 + $0x5a] sm:$0xff]  ;;  %v3649_v55 = vld [vmem:[%s4621_s2 + $0x10] sm:$0xff]   ;;  %v1067_v57 = vmul.f32 %v4629_v42, %v3638_v49 }
 0x11d   :  { %v609_v61 = vld [vmem:[#allocation2 + $0x59] sm:$0xff]  ;;  %509 = vst [vmem:[#allocation2 + $0x68] sm:$0xff] %v493_v56  ;;  %704 = vrot.lane.b32.xlu0 %v677_v60, %s3440_s23  ;;  %v4642_v60 = vunpack.c.l.bf16 %v3649_v55 }
 0x11e   :  { %636 = vrot.lane.b32.xlu2 %v609_v61, %s3439_s22  ;;  %v3332_v62 = vpop.eup %3331  ;;  %v431_v63 = vmul.f32 0.7978846, %v415_v58  ;;  %v368_v0 = vmul.f32 %v348_v59, %v348_v59  ;;  %4709 = vst [vmem:[#allocation14_spill] sm:$0xff] %v3649_v55  ;;  %v1100_v58 = vmul.f32 %v4628_v44, %v3640_v50 }
 0x11f   :  { %v462_v1 = vadd.f32 1.0, %v3332_v62  ;;  %v1056_v62 = vmul.f32 %v4642_v60, %v3618_v37  ;;  %v523_v60 = vld [vmem:[#allocation2 + $0x4f] sm:$0xff] }
 0x120   :  { %3333 = vtanh.f32 %v431_v63  ;;  %v384_v2 = vmul.f32 %v368_v0, %v348_v59  ;;  %v3676_v0 = vld [vmem:[%s4621_s2 + $0x8] sm:$0xff]  }
 0x121   :  { %v478_v3 = vmul.f32 0.5, %v462_v1  ;;  %4711 = vst [vmem:[#allocation16_spill] sm:$0xff] %v3676_v0  ;;  %v3681_v1 = vld [vmem:[%s4622_s3 + $0x8] sm:$0xff]  }
 0x122   :  { %v400_v4 = vmul.f32 0.044715, %v384_v2  ;;  %4712 = vst [vmem:[#allocation17_spill] sm:$0xff] %v3681_v1  ;;  %v4647_v2 = vunpack.c.h.bf16 %v3681_v1 }
 0x123   :  { %v494_v5 = vmul.f32 %v478_v3, %v343_v31  ;;  %v350_v6 = vpop.f32.mrf.mxu0  ;;  %v3608_v31 = vld [vmem:[%s4622_s3 + $0x18] sm:$0xff]   ;;  %v4645_v3 = vunpack.c.h.bf16 %v3676_v0 }
 0x124   :  { %v416_v7 = vadd.f32 %v400_v4, %v348_v59  ;;  %v351_v8 = vadd.f32 %v3547_v19, %v350_v6  ;;  %v610_v9 = vld [vmem:[#allocation2 + $0x61] sm:$0xff]  ;;  %4703 = vst [vmem:[#allocation8_spill] sm:$0xff] %v3608_v31  ;;  %v4633_v33 = vunpack.c.h.bf16 %v3608_v31  ;;  %v1116_v4 = vadd.f32 %v1100_v58, %v1067_v57  ;;  %v3743_v58 = vld [vmem:[#allocation2 + $0x17] sm:$0xff] }
 0x125   :  { %v678_v10 = vld [vmem:[#allocation2 + $0x62] sm:$0xff]  ;;  %510 = vst [vmem:[#allocation2 + $0x70] sm:$0xff] %v494_v5  ;;  %638 = vrot.lane.b32.xlu0 %v610_v9, %s3439_s22 }
 0x126   :  { %706 = vrot.lane.b32.xlu1 %v678_v10, %s3440_s23  ;;  %v3334_v11 = vpop.eup %3333  ;;  %v432_v12 = vmul.f32 0.7978846, %v416_v7  ;;  %v369_v13 = vmul.f32 %v351_v8, %v351_v8  ;;  %572 = vrot.lane.b32.xlu2 %v493_v56, %s3438_s12  ;;  %v1092_v40 = vmul.f32 %v4633_v33, %v3620_v38  ;;  %v3654_v56 = vld [vmem:[%s4622_s3 + $0x10] sm:$0xff]   ;;  %v670_v9 = vld [vmem:[#allocation2 + $0x22] sm:$0xff]  ;;  %v1055_v10 = vmul.f32 %v4645_v3, %v3618_v37 }
 0x127   :  { %v463_v14 = vadd.f32 1.0, %v3334_v11  ;;  %4710 = vst [vmem:[#allocation15_spill] sm:$0xff] %v3654_v56  ;;  %v3689_v7 = vld [vmem:[#allocation2 + $0x2f] sm:$0xff]  ;;  %v1088_v11 = vmul.f32 %v4647_v2, %v3620_v38  ;;  %v3863_v2 = vld [vmem:[%s4621_s2] sm:$0xff]  }
 0x128   :  { %3335 = vtanh.f32 %v432_v12  ;;  %v385_v15 = vmul.f32 %v369_v13, %v351_v8  ;;  %4718 = vst [vmem:[#allocation23_spill] sm:$0xff] %v3863_v2 }
 0x129   :  { %v479_v16 = vmul.f32 0.5, %v463_v14 }
 0x12a   :  { %v401_v18 = vmul.f32 0.044715, %v385_v15  ;;  %v3700_v15 = vadd.f32 %v1088_v11, %v1055_v10 }
 0x12b   :  { %v495_v20 = vmul.f32 %v479_v16, %v346_v45  ;;  %v352_v21 = vpop.f32.mrf.mxu0  ;;  %v3630_v45 = vadd.f32 %v1092_v40, %v1059_v39 }
 0x12c   :  { %v417_v19 = vadd.f32 %v401_v18, %v351_v8  ;;  %v679_v22 = vld [vmem:[#allocation2 + $0x6a] sm:$0xff]  ;;  %v4640_v18 = vunpack.c.h.bf16 %v3654_v56  ;;  %v4636_v21 = vunpack.c.h.bf16 %v3649_v55 }
 0x12d   :  { %511 = vst [vmem:[#allocation2 + $0x78] sm:$0xff] %v495_v20  ;;  %708 = vrot.lane.b32.xlu0 %v679_v22, %s3440_s23  ;;  %v611_v29 = vld [vmem:[#allocation2 + $0x69] sm:$0xff]  ;;  %v3707_v22 = vpop.permute.xlu1 %564 }
 0x12e   :  { %v3336_v23 = vpop.eup %3335  ;;  %v433_v24 = vmul.f32 0.7978846, %v417_v19  ;;  %574 = vrot.lane.b32.xlu2 %v494_v5, %s3438_s12  ;;  %1124 = vst [vmem:[#allocation2 + $0x40] sm:$0xff] %v3630_v45  ;;  %v3685_v5 = vld [vmem:[#allocation2 + $0x27] sm:$0xff] }
 0x12f   :  { %v464_v25 = vadd.f32 1.0, %v3336_v23  ;;  %v3711_v23 = vld [vmem:[#allocation2 + $0x1f] sm:$0xff] }
 0x130   :  { %3337 = vtanh.f32 %v433_v24  ;;  %v669_v24 = vld [vmem:[#allocation2 + $0x1a] sm:$0xff] }
 0x131   :  { %v480_v26 = vmul.f32 0.5, %v464_v25  ;;  %v4634_v25 = vunpack.c.l.bf16 %v3603_v30 }
 0x133   :  { %v496_v27 = vmul.f32 %v480_v26, %v348_v59  ;;  %v4643_v59 = vunpack.c.l.bf16 %v3654_v56  ;;  %v4649_v26 = vunpack.c.l.bf16 %v3681_v1 }
 0x134   :  { %v680_v28 = vld [vmem:[#allocation2 + $0x72] sm:$0xff] }
 0x135   :  { %512 = vst [vmem:[#allocation2 + $0x80] sm:$0xff] %v496_v27  ;;  %576 = vrot.lane.b32.xlu0 %v495_v20, %s3438_s12  ;;  %710 = vrot.lane.b32.xlu1 %v680_v28, %s3440_s23  ;;  %v612_v51 = vld [vmem:[#allocation2 + $0x71] sm:$0xff]  ;;  %v1089_v63 = vmul.f32 %v4643_v59, %v3620_v38  ;;  %v4635_v20 = vunpack.c.l.bf16 %v3608_v31  ;;  %v1057_v28 = vmul.f32 %v4636_v21, %v3618_v37 }
 0x136   :  { %v3338_v32 = vpop.eup %3337  ;;  %640 = vrot.lane.b32.xlu2 %v611_v29, %s3439_s22  ;;  %v1087_v39 = vmul.f32 %v4649_v26, %v3620_v38  ;;  %v667_v21 = vld [vmem:[#allocation2 + $0xa] sm:$0xff]  ;;  %v528_v17 = vld [vmem:[#allocation2 + $0x77] sm:$0xff] }
 0x137   :  { %v465_v36 = vadd.f32 1.0, %v3338_v32  ;;  %v3687_v6 = vadd.f32 %v1089_v63, %v1056_v62  ;;  %v1091_v29 = vmul.f32 %v4635_v20, %v3620_v38  ;;  %v1058_v32 = vmul.f32 %v4634_v25, %v3618_v37  ;;  %v668_v63 = vld [vmem:[#allocation2 + $0x12] sm:$0xff] }
 0x138   :  { %v3893_v26 = vld [vmem:[#allocation2 + $0xf] sm:$0xff] }
 0x139   :  { %v481_v41 = vmul.f32 0.5, %v465_v36 }
 0x13b   :  { %v3634_v47 = vmul.f32 %v481_v41, %v351_v8  ;;  %v602_v8 = vld [vmem:[#allocation2 + $0x21] sm:$0xff] }
 0x13c   :  { %v613_v52 = vld [vmem:[#allocation2 + $0x79] sm:$0xff]  ;;  %1121 = vst [vmem:[#allocation2 + $0x28] sm:$0xff] %v3687_v6 }
 0x13d   :  { %513 = vst [vmem:[#allocation2 + $0x88] sm:$0xff] %v3634_v47  ;;  %642 = vrot.lane.b32.xlu0 %v612_v51, %s3439_s22  ;;  %644 = vrot.lane.b32.xlu1 %v613_v52, %s3439_s22  ;;  %v672_v51 = vld [vmem:[#allocation2 + $0x32] sm:$0xff]  ;;  %v681_v62 = vld [vmem:[#allocation2 + $0x7a] sm:$0xff] }
 0x13e   :  { %620 = vrot.lane.b32.xlu2 %v601_v53, %s3439_s22  ;;  %1120 = vst [vmem:[#allocation2 + $0x20] sm:$0xff] %v3700_v15  ;;  %v520_v52 = vld [vmem:[#allocation2 + $0x37] sm:$0xff]  ;;  %v3739_v53 = vadd.f32 %v1091_v29, %v1058_v32  ;;  %v3768_v29 = vld [vmem:[%s4621_s2 + $0x2c] sm:$0xff]  }
 0x13f   :  { %v3665_v61 = vpop.permute.xlu2 %558  ;;  %4713 = vst [vmem:[#allocation18_spill] sm:$0xff] %v3768_v29 }
 0x140   :  { %1123 = vst [vmem:[#allocation2 + $0x38] sm:$0xff] %v3739_v53 }
 0x144   :  { %v614_v12 = vld [vmem:[#allocation2 + $0x81] sm:$0xff]  ;;  %v615_v14 = vld [vmem:[#allocation2 + $0x89] sm:$0xff] }
 0x145   :  { %v682_v13 = vld [vmem:[#allocation2 + $0x82] sm:$0xff]  ;;  %578 = vrot.lane.b32.xlu0 %v496_v27, %s3438_s12  ;;  %646 = vrot.lane.b32.xlu1 %v614_v12, %s3439_s22  ;;  %v683_v16 = vld [vmem:[#allocation2 + $0x8a] sm:$0xff]  ;;  %v4648_v27 = vunpack.c.l.bf16 %v3676_v0 }
 0x146   :  { %v3705_v19 = vld [vmem:[#allocation2 + $0x87] sm:$0xff]  ;;  %550 = vrot.lane.b32.xlu2 %v3556_v54, %s3438_s12  ;;  %v1090_v54 = vmul.f32 %v4640_v18, %v3620_v38 }
 0x147   :  { %1132 = vst [vmem:[#allocation2 + $0x88] sm:$0xff] %v1116_v4  ;;  %v1054_v36 = vmul.f32 %v4648_v27, %v3618_v37  ;;  %v600_v4 = vld [vmem:[#allocation2 + $0x11] sm:$0xff]  ;;  %v3750_v10 = vpop.permute.xlu1 %554 }
 0x148   :  { %v3735_v40 = vadd.f32 %v1090_v54, %v1057_v28  ;;  %v3737_v41 = vpop.permute.xlu2 %692  ;;  %v3763_v54 = vpop.permute.xlu0 %552 }
 0x149   :  { %v3741_v57 = vadd.f32 %v1087_v39, %v1054_v36 }
 0x14a   :  { %1122 = vst [vmem:[#allocation2 + $0x30] sm:$0xff] %v3735_v40 }
 0x14b   :  { %1119 = vst [vmem:[#allocation2 + $0x18] sm:$0xff] %v3741_v57 }
 0x14d   :  { %712 = vrot.lane.b32.xlu0 %v681_v62, %s3440_s23  ;;  %714 = vrot.lane.b32.xlu1 %v682_v13, %s3440_s23  ;;  %v599_v13 = vld [vmem:[#allocation2 + $0x9] sm:$0xff] }
 0x14e   :  { %580 = vrot.lane.b32.xlu2 %v3634_v47, %s3438_s12  ;;  %v3790_v62 = vld [vmem:[#allocation2 + $0x67] sm:$0xff] }
 0x14f   :  { %v3758_v12 = vpop.permute.xlu1 %556 }
 0x150   :  { %v563_v11 = vpop.permute.xlu2 %562 }
 0x151   :  { %v589_v18 = vadd.f32 %v563_v11, %v3636_v48 }
 0x155   :  { %694 = vrot.lane.b32.xlu0 %v672_v51, %s3440_s23  ;;  %548 = vrot.lane.b32.xlu1 %v3552_v43, %s3438_s12  ;;  %v3773_v43 = vld [vmem:[%s4622_s3 + $0x28] sm:$0xff]  }
 0x156   :  { %648 = vrot.lane.b32.xlu2 %v615_v14, %s3439_s22  ;;  %4714 = vst [vmem:[#allocation19_spill] sm:$0xff] %v3773_v43  ;;  %v4630_v14 = vunpack.c.l.bf16 %v3768_v29 }
 0x158   :  { %v629_v28 = vpop.permute.xlu2 %628  ;;  %v1062_v36 = vmul.f32 %v4630_v14, %v3638_v49 }
 0x15d   :  { %622 = vrot.lane.b32.xlu0 %v602_v8, %s3439_s22  ;;  %690 = vrot.lane.b32.xlu1 %v670_v9, %s3440_s23  ;;  %v4631_v9 = vunpack.c.h.bf16 %v3773_v43 }
 0x15e   :  { %616 = vrot.lane.b32.xlu2 %v599_v13, %s3439_s22 }
 0x15f   :  { %v561_v47 = vpop.permute.xlu1 %560  ;;  %v1095_v39 = vmul.f32 %v4631_v9, %v3640_v50  ;;  %v3792_v13 = vpop.permute.xlu0 %624 }
 0x160   :  { %v588_v8 = vadd.f32 %v561_v47, %v520_v52  ;;  %v3788_v52 = vld [vmem:[#allocation2 + $0x5f] sm:$0xff] }
 0x161   :  { %v3785_v51 = vadd.f32 %v1095_v39, %v1062_v36  ;;  %v4644_v36 = vunpack.c.h.bf16 %v3768_v29 }
 0x162   :  { %v656_v32 = vadd.f32 %v629_v28, %v588_v8  ;;  %v567_v28 = vpop.permute.xlu2 %566  ;;  %v3811_v8 = vld [vmem:[%s4622_s3 + $0x30] sm:$0xff]  }
 0x163   :  { %1127 = vst [vmem:[#allocation2 + $0x60] sm:$0xff] %v3785_v51  ;;  %v4646_v9 = vunpack.c.l.bf16 %v3811_v8  ;;  %v1063_v20 = vmul.f32 %v4644_v36, %v3638_v49 }
 0x164   :  { %4717 = vst [vmem:[#allocation22_spill] sm:$0xff] %v3811_v8 }
 0x165   :  { %688 = vrot.lane.b32.xlu0 %v669_v24, %s3440_s23  ;;  %716 = vrot.lane.b32.xlu1 %v683_v16, %s3440_s23  ;;  %v3800_v24 = vld [vmem:[%s4621_s2 + $0x24] sm:$0xff]  }
 0x166   :  { %686 = vrot.lane.b32.xlu2 %v668_v63, %s3440_s23  ;;  %4715 = vst [vmem:[#allocation20_spill] sm:$0xff] %v3800_v24  ;;  %v3805_v16 = vld [vmem:[%s4622_s3 + $0x24] sm:$0xf]  ;;  %v4637_v63 = vunpack.c.l.bf16 %v3773_v43  ;;  %v4638_v39 = vunpack.c.l.bf16 %v3800_v24  ;;  %v4639_v44 = vunpack.c.h.bf16 %v3800_v24 }
 0x167   :  { %v3795_v47 = vpop.permute.xlu1 %626  ;;  %4716 = vst [vmem:[#allocation21_spill] sm:$0xff] %v3805_v16  ;;  %v4641_v42 = vunpack.c.l.bf16 %v3805_v16  ;;  %v529_v43 = vld [vmem:[#allocation2 + $0x7f] sm:$0xff] }
 0x168   :  { %v1094_v14 = vmul.f32 %v4637_v63, %v3640_v50  ;;  %v1060_v34 = vmul.f32 %v4638_v39, %v3638_v49  ;;  %v1061_v33 = vmul.f32 %v4639_v44, %v3638_v49  ;;  %v1096_v63 = vmul.f32 %v4646_v9, %v3640_v50 }
 0x169   :  { %v1093_v25 = vmul.f32 %v4641_v42, %v3640_v50  ;;  %v3843_v42 = vld [vmem:[#allocation2 + $0x57] sm:$0xff] }
 0x16a   :  { %v3840_v44 = vadd.f32 %v1094_v14, %v1061_v33  ;;  %v3846_v36 = vadd.f32 %v1096_v63, %v1063_v20  ;;  %v633_v33 = vpop.permute.xlu2 %632  ;;  %v590_v14 = vadd.f32 %v3707_v22, %v3632_v46  ;;  %v4651_v46 = vunpack.c.h.bf16 %v3863_v2  ;;  %v3875_v22 = vld [vmem:[%s4621_s2 + $0x34] sm:$0xff]  }
 0x16b   :  { %v3838_v39 = vadd.f32 %v1093_v25, %v1060_v34  ;;  %4720 = vst [vmem:[#allocation25_spill] sm:$0xff] %v3875_v22 }
 0x16c   :  { %1126 = vst [vmem:[#allocation2 + $0x58] sm:$0xff] %v3840_v44  ;;  %v658_v20 = vadd.f32 %v633_v33, %v590_v14  ;;  %v4654_v33 = vunpack.c.l.bf16 %v3875_v22 }
 0x16d   :  { %618 = vrot.lane.b32.xlu0 %v600_v4, %s3439_s22  ;;  %684 = vrot.lane.b32.xlu1 %v667_v21, %s3440_s23  ;;  %1125 = vst [vmem:[#allocation2 + $0x50] sm:$0xff] %v3838_v39  ;;  %v3849_v4 = vld [vmem:[#allocation2 + $0x6f] sm:$0xff] }
 0x16e   :  { %1128 = vst [vmem:[#allocation2 + $0x68] sm:$0xff] %v3846_v36 }
 0x16f   :  { %v631_v59 = vpop.permute.xlu0 %630 }
 0x170   :  { %v657_v3 = vadd.f32 %v631_v59, %v589_v18  ;;  %v699_v21 = vpop.permute.xlu1 %698 }
 0x172   :  { %v725_v34 = vadd.f32 %v699_v21, %v657_v3  ;;  %v3856_v9 = vpop.permute.xlu2 %570  ;;  %v3868_v3 = vld [vmem:[%s4622_s3] sm:$0xff]   ;;  %v4659_v21 = vunpack.c.h.bf16 %v3811_v8 }
 0x173   :  { %4719 = vst [vmem:[#allocation24_spill] sm:$0xff] %v3868_v3  ;;  %v4693_v16 = vunpack.c.l.bf16 %v3868_v3 }
 0x174   :  { %v1097_v14 = vmul.f32 %v4659_v21, %v3640_v50 }
 0x177   :  { %v697_v25 = vpop.permute.xlu0 %696 }
 0x178   :  { %v724_v48 = vadd.f32 %v697_v25, %v656_v32  ;;  %v4653_v32 = vunpack.c.h.bf16 %v3868_v3 }
 0x17a   :  { %v3852_v11 = vpack.c.bf16 %v725_v34, %v724_v48  ;;  %v1053_v34 = vmul.f32 %v4651_v46, %v3618_v37  ;;  %v1086_v25 = vmul.f32 %v4653_v32, %v3620_v38  ;;  %v1064_v48 = vmul.f32 %v4654_v33, %v3638_v49  ;;  %v3891_v27 = vpop.permute.xlu2 %636 }
 0x17c   :  { %v3895_v35 = vadd.f32 %v1097_v14, %v1064_v48 }
 0x17e   :  { %1129 = vst [vmem:[#allocation2 + $0x70] sm:$0xff] %v3895_v35 }
 0x17f   :  { %v701_v59 = vpop.permute.xlu0 %700  ;;  %v3858_v63 = vpop.permute.xlu1 %568 }
 0x180   :  { %v726_v18 = vadd.f32 %v701_v59, %v658_v20  ;;  %v1102_v20 = vadd.f32 %v1086_v25, %v1053_v34  ;;  %v591_v59 = vadd.f32 %v567_v28, %v523_v60  ;;  %v3908_v28 = vld [vmem:[%s4621_s2 + $0x3c] sm:$0xf] }
 0x181   :  { %4721 = vst [vmem:[#allocation26_spill] sm:$0xff] %v3908_v28 }
 0x182   :  { %1118 = vst [vmem:[#allocation2 + $0x10] sm:$0xff] %v1102_v20  ;;  %1169 = vrot.lane.b32.xlu1 %v1102_v20, %s3438_s12  ;;  %v573_v60 = vpop.permute.xlu2 %572 }
 0x187   :  { %v635_v46 = vpop.permute.xlu0 %634 }
 0x188   :  { %v659_v32 = vadd.f32 %v635_v46, %v591_v59  ;;  %v703_v33 = vpop.permute.xlu1 %702  ;;  %v3913_v46 = vld [vmem:[%s4622_s3 + $0x38] sm:$0xff]  }
 0x189   :  { %4722 = vst [vmem:[#allocation27_spill] sm:$0xff] %v3913_v46 }
 0x18a   :  { %v727_v29 = vadd.f32 %v703_v33, %v659_v32  ;;  %1171 = vrot.lane.b32.xlu1 %v3741_v57, %s3438_s12  ;;  %v4662_v32 = vunpack.c.h.bf16 %v3875_v22  ;;  %v4663_v33 = vunpack.c.l.bf16 %v3908_v28 }
 0x18c   :  { %v3899_v8 = vpack.c.bf16 %v727_v29, %v726_v18  ;;  %v4669_v29 = vunpack.c.l.bf16 %v3913_v46  ;;  %v4671_v18 = vunpack.c.h.bf16 %v3913_v46  ;;  %v1065_v57 = vmul.f32 %v4662_v32, %v3638_v49  ;;  %v575_v32 = vpop.permute.xlu2 %574 }
 0x18d   :  { %v1066_v25 = vmul.f32 %v4663_v33, %v3638_v49 }
 0x18e   :  { %v1098_v48 = vmul.f32 %v4669_v29, %v3640_v50  ;;  %v1099_v14 = vmul.f32 %v4671_v18, %v3640_v50  ;;  %v4686_v18 = vunpack.c.l.bf16 %v3863_v2 }
 0x18f   :  { %v3901_v34 = vpop.permute.xlu0 %704 }
 0x190   :  { %v3931_v59 = vadd.f32 %v1098_v48, %v1065_v57  ;;  %v3933_v21 = vadd.f32 %v1099_v14, %v1066_v25  ;;  %v1052_v57 = vmul.f32 %v4686_v18, %v3618_v37  ;;  %v1085_v25 = vmul.f32 %v4693_v16, %v3620_v38  ;;  %v3945_v14 = vld [vmem:[#allocation2 + $0x7] sm:$0xff] }
 0x191   :  { %v595_v18 = vadd.f32 %v575_v32, %v3849_v4  ;;  %v593_v38 = vadd.f32 %v3856_v9, %v3788_v52 }
 0x192   :  { %4723 = vst [vmem:[#allocation28_spill] sm:$0xff] %v3933_v21  ;;  %v1101_v48 = vadd.f32 %v1085_v25, %v1052_v57 }
 0x193   :  { %1130 = vst [vmem:[#allocation2 + $0x78] sm:$0xff] %v3931_v59 }
 0x194   :  { %1131 = vst [vmem:[#allocation2 + $0x80] sm:$0xff] %v3933_v21  ;;  %v641_v22 = vpop.permute.xlu2 %640  ;;  %1167 = vrot.lane.b32.xlu0 %v1101_v48, %s3438_s12  ;;  %v586_v21 = vadd.f32 %v3758_v12, %v3685_v5 }
 0x195   :  { %1117 = vst [vmem:[#allocation2 + $0x8] sm:$0xff] %v1101_v48  ;;  %v594_v48 = vadd.f32 %v573_v60, %v3790_v62 }
 0x197   :  { %v639_v20 = vpop.permute.xlu0 %638 }
 0x198   :  { %v707_v33 = vpop.permute.xlu1 %706 }
 0x19c   :  { %v621_v46 = vpop.permute.xlu2 %620 }
 0x19f   :  { %v709_v28 = vpop.permute.xlu0 %708 }
 0x1a4   :  { %v3948_v55 = vpop.permute.xlu2 %550 }
 0x1a5   :  { %v583_v32 = vadd.f32 %v3948_v55, %v3893_v26  ;;  %v2873_v55 = vld [vmem:[%s4623_s4 + $0x20] sm:$0xf]  ;;  %v3193_v26 = vld [vmem:[%s4623_s4 + $0x24] sm:$0xf0] }
 0x1a7   :  { %v577_v24 = vpop.permute.xlu0 %576  ;;  %v711_v29 = vpop.permute.xlu1 %710 }
 0x1a8   :  { %v596_v0 = vadd.f32 %v577_v24, %v528_v17  ;;  %v661_v17 = vadd.f32 %v639_v20, %v593_v38 }
 0x1aa   :  { %v729_v12 = vadd.f32 %v707_v33, %v661_v17 }
 0x1af   :  { %v643_v50 = vpop.permute.xlu0 %642  ;;  %v645_v49 = vpop.permute.xlu1 %644 }
 0x1b0   :  { %v663_v1 = vadd.f32 %v643_v50, %v595_v18  ;;  %v664_v2 = vadd.f32 %v645_v49, %v596_v0  ;;  %v581_v50 = vpop.permute.xlu2 %580  ;;  %v654_v0 = vadd.f32 %v3792_v13, %v586_v21 }
 0x1b1   :  { %v598_v4 = vadd.f32 %v581_v50, %v3705_v19  ;;  %v3188_v19 = vld [vmem:[%s4623_s4 + $0x4] sm:$0xf]  ;;  %v2874_v50 = vor.u32 %v3193_v26, %v2873_v55 }
 0x1b2   :  { %v731_v49 = vadd.f32 %v711_v29, %v663_v1 }
 0x1b7   :  { %v579_v30 = vpop.permute.xlu0 %578  ;;  %v647_v31 = vpop.permute.xlu1 %646 }
 0x1b8   :  { %v597_v56 = vadd.f32 %v579_v30, %v529_v43  ;;  %v592_v30 = vadd.f32 %v3858_v63, %v3843_v42  ;;  %v662_v43 = vadd.f32 %v641_v22, %v594_v48  ;;  %v649_v13 = vpop.permute.xlu2 %648 }
 0x1ba   :  { %v665_v16 = vadd.f32 %v647_v31, %v597_v56  ;;  %v587_v56 = vadd.f32 %v3665_v61, %v3689_v7  ;;  %v730_v9 = vadd.f32 %v709_v28, %v662_v43  ;;  %v660_v5 = vadd.f32 %v3891_v27, %v592_v30  ;;  %v3189_v30 = vld [vmem:[%s4623_s4 + $0x4] sm:$0xf0] }
 0x1bb   :  { %v585_v27 = vadd.f32 %v3750_v10, %v3711_v23  ;;  %v2859_v23 = vld [vmem:[%s4623_s4 + $0x8] sm:$0xf0] }
 0x1bc   :  { %v741_v52 = vpack.c.bf16 %v731_v49, %v730_v9  ;;  %v728_v38 = vadd.f32 %v3901_v34, %v660_v5  ;;  %v3190_v49 = vld [vmem:[%s4623_s4 + $0x14] sm:$0xf]  ;;  %v2865_v9 = vld [vmem:[%s4623_s4 + $0x10] sm:$0xf] }
 0x1bd   :  { %v2881_v5 = vld [vmem:[%s4623_s4 + $0x30] sm:$0xf] }
 0x1be   :  { %v740_v61 = vpack.c.bf16 %v729_v12, %v728_v38  ;;  %v3195_v12 = vld [vmem:[%s4623_s4 + $0x34] sm:$0xf0]  ;;  %v3201_v38 = vld [vmem:[%s4625_s6 + $0x68] sm:$0xff] }
 0x1bf   :  { %v713_v57 = vpop.permute.xlu0 %712  ;;  %v715_v25 = vpop.permute.xlu1 %714 }
 0x1c0   :  { %v732_v3 = vadd.f32 %v713_v57, %v664_v2  ;;  %v733_v37 = vadd.f32 %v715_v25, %v665_v16  ;;  %v655_v2 = vadd.f32 %v3795_v47, %v587_v56  ;;  %v584_v16 = vadd.f32 %v3763_v54, %v3743_v58  ;;  %v617_v22 = vpop.permute.xlu2 %616 }
 0x1c2   :  { %v742_v31 = vpack.c.bf16 %v733_v37, %v732_v3  ;;  %v722_v37 = vadd.f32 %v3737_v41, %v654_v0  ;;  %v652_v63 = vadd.f32 %v621_v46, %v584_v16  ;;  %v666_v3 = vadd.f32 %v649_v13, %v598_v4  ;;  %v3203_v0 = vld [vmem:[%s4625_s6 + $0x78] sm:$0xff]  ;;  %v3194_v13 = vld [vmem:[%s4623_s4 + $0x34] sm:$0xf]  ;;  %v3197_v4 = vld [vmem:[%s4625_s6 + $0x48] sm:$0xff] }
 0x1c3   :  { %v2862_v46 = vor.u32 %v3188_v19, %v2859_v23  ;;  %v3198_v16 = vld [vmem:[%s4625_s6 + $0x50] sm:$0xff] }
 0x1c4   :  { %805 = vmatpush.bf16.msra.mxu1 %v742_v31  ;;  %3278 = vmatpush.bf16.msra.mxu3 %v742_v31  ;;  %v2867_v31 = vld [vmem:[%s4623_s4 + $0x18] sm:$0xf0] }
 0x1c5   :  { %v2870_v56 = vor.u32 %v3190_v49, %v2867_v31  ;;  %v3217_v49 = vld [vmem:[%s4625_s6 + $0xe8] sm:$0xff]  ;;  %v3216_v31 = vld [vmem:[%s4625_s6 + $0xe0] sm:$0xff] }
 0x1c7   :  { %v695_v42 = vpop.permute.xlu0 %694  ;;  %v549_v62 = vpop.permute.xlu1 %548 }
 0x1c8   :  { %v723_v1 = vadd.f32 %v695_v42, %v655_v2  ;;  %806 = vmatpush.bf16.msra.mxu1 %v741_v52  ;;  %3279 = vmatpush.bf16.msra.mxu3 %v741_v52  ;;  %v582_v54 = vadd.f32 %v549_v62, %v3945_v14  ;;  %v687_v57 = vpop.permute.xlu2 %686  ;;  %v2857_v14 = vld [vmem:[%s4623_s4] sm:$0xf]  ;;  %v3191_v2 = vld [vmem:[%s4623_s4 + $0x14] sm:$0xf0]  ;;  %v3202_v52 = vld [vmem:[%s4625_s6 + $0x70] sm:$0xff]  ;;  %v2882_v62 = vor.u32 %v3195_v12, %v2881_v5 }
 0x1c9   :  { %v2858_v17 = vor.u32 %v3189_v30, %v2857_v14  ;;  %v2866_v42 = vor.u32 %v3191_v2, %v2865_v9  ;;  %v3213_v9 = vld [vmem:[%s4625_s6 + $0xc8] sm:$0xff]  ;;  %v4077_v2 = vld [vmem:[%s4626_s7 + $0x1] ss:$0 sm:$0xff] }
 0x1ca   :  { %v737_v7 = vpack.c.bf16 %v723_v1, %v722_v37  ;;  %v650_v20 = vadd.f32 %v617_v22, %v582_v54  ;;  %v3192_v1 = vld [vmem:[%s4623_s4 + $0x24] sm:$0xf]  ;;  %v2875_v37 = vld [vmem:[%s4623_s4 + $0x28] sm:$0xf0] }
 0x1cb   :  { %v3212_v12 = vld [vmem:[%s4625_s6 + $0xc0] sm:$0xff] }
 0x1cc   :  { %807 = vmatpush.bf16.msra.mxu1 %v740_v61  ;;  %3280 = vmatpush.bf16.msra.mxu3 %v740_v61  ;;  %v3200_v61 = vld [vmem:[%s4625_s6 + $0x60] sm:$0xff] }
 0x1cf   :  { %v623_v24 = vpop.permute.xlu0 %622  ;;  %v691_v47 = vpop.permute.xlu1 %690 }
 0x1d0   :  { %808 = vmatpush.bf16.msra.mxu1 %v3899_v8  ;;  %3281 = vmatpush.bf16.msra.mxu3 %v3899_v8  ;;  %v653_v41 = vadd.f32 %v623_v24, %v585_v27  ;;  %v2883_v24 = vld [vmem:[%s4623_s4 + $0x38] sm:$0xf0] }
 0x1d1   :  { %v3199_v27 = vld [vmem:[%s4625_s6 + $0x58] sm:$0xff] }
 0x1d2   :  { %v721_v60 = vadd.f32 %v691_v47, %v653_v41  ;;  %v2886_v47 = vor.u32 %v3194_v13, %v2883_v24  ;;  %v3196_v41 = vld [vmem:[%s4625_s6 + $0x40] sm:$0xff] }
 0x1d4   :  { %809 = vmatpush.bf16.msra.mxu1 %v3852_v11  ;;  %3282 = vmatpush.bf16.msra.mxu3 %v3852_v11 }
 0x1d7   :  { %v689_v21 = vpop.permute.xlu0 %688  ;;  %v717_v34 = vpop.permute.xlu1 %716 }
 0x1d8   :  { %v720_v8 = vadd.f32 %v689_v21, %v652_v63  ;;  %v734_v28 = vadd.f32 %v717_v34, %v666_v3  ;;  %810 = vmatpush.bf16.msra.mxu1 %v737_v7  ;;  %3283 = vmatpush.bf16.msra.mxu3 %v737_v7  ;;  %v2878_v7 = vor.u32 %v3192_v1, %v2875_v37 }
 0x1da   :  { %v743_v58 = vpack.c.bf16 %v734_v28, %v734_v28  ;;  %v736_v10 = vpack.c.bf16 %v721_v60, %v720_v8 }
 0x1dc   :  { %811 = vmatpush.bf16.msra.mxu1 %v736_v10  ;;  %3284 = vmatpush.bf16.msra.mxu3 %v736_v10  ;;  %v803_v11 = vsel %vm801_vm0, %v743_v58, 0 }
 0x1dd   :  { %841 = vmatpush.bf16.msra.mxu2 %v803_v11 }
 0x1df   :  { %v619_v29 = vpop.permute.xlu0 %618  ;;  %v685_v18 = vpop.permute.xlu1 %684 }
 0x1e0   :  { %v651_v33 = vadd.f32 %v619_v29, %v583_v32  ;;  %2887 = vmatmul.msk.bf16.vlgmr.msra.gmra.mxu2 %vm788_vm1, %v2862_v46  ;;  %v718_v48 = vadd.f32 %v685_v18, %v650_v20 }
 0x1e2   :  { %v719_v25 = vadd.f32 %v687_v57, %v651_v33 }
 0x1e4   :  { %v735_v43 = vpack.c.bf16 %v719_v25, %v718_v48 }
 0x1e6   :  { %812 = vmatpush.bf16.msra.mxu1 %v735_v43  ;;  %3285 = vmatpush.bf16.msra.mxu3 %v735_v43 }
 0x1e9   :  { %813 = vmatmul.bf16.vlgmr.msra.gmra.mxu1 %v2858_v17  ;;  %823 = vmatmul.bf16.vlgmr.msra.gmra.mxu3 %v2874_v50  ;;  %v3219_v17 = vld [vmem:[%s4625_s6 + $0xf8] sm:$0xff]  ;;  %v3218_v50 = vld [vmem:[%s4625_s6 + $0xf0] sm:$0xff] }
 0x1ea   :  { %934 = vmatpush.bf16.msrb.mxu3 %v3203_v0  ;;  %1629 = vmatpush.bf16.msrb.mxu1 %v3219_v17  ;;  %v3214_v0 = vld [vmem:[%s4625_s6 + $0xd0] sm:$0xff] }
 0x1ee   :  { %935 = vmatpush.bf16.msrb.mxu3 %v3202_v52  ;;  %1630 = vmatpush.bf16.msrb.mxu1 %v3218_v50 }
 0x1f0   :  { %2888 = vmatmul.msk.bf16.gmra.mxu2 %vm788_vm1, %v2870_v56  ;;  %v3215_v56 = vld [vmem:[%s4625_s6 + $0xd8] sm:$0xff] }
 0x1f2   :  { %936 = vmatpush.bf16.msrb.mxu3 %v3201_v38  ;;  %1631 = vmatpush.bf16.msrb.mxu1 %v3217_v49  ;;  %v1221_v49 = vld [vmem:[#allocation2 + $0x21] sm:$0xff] }
 0x1f3   :  { %1241 = vrot.lane.b32.xlu1 %v1221_v49, %s3439_s22  ;;  %v3211_v49 = vld [vmem:[%s4625_s6 + $0xb8] sm:$0xff] }
 0x1f4   :  { %1362 = vmatpush.bf16.msrb.mxu2 %v3211_v49 }
 0x1f6   :  { %937 = vmatpush.bf16.msrb.mxu3 %v3200_v61  ;;  %1632 = vmatpush.bf16.msrb.mxu1 %v3216_v31  ;;  %v1220_v31 = vld [vmem:[#allocation2 + $0x19] sm:$0xff] }
 0x1f9   :  { %818 = vmatmul.bf16.gmra.mxu1 %v2866_v42  ;;  %828 = vmatmul.bf16.gmra.mxu3 %v2882_v62 }
 0x1fa   :  { %938 = vmatpush.bf16.msrb.mxu3 %v3199_v27  ;;  %1633 = vmatpush.bf16.msrb.mxu1 %v3215_v56 }
 0x1fe   :  { %939 = vmatpush.bf16.msrb.mxu3 %v3198_v16  ;;  %1634 = vmatpush.bf16.msrb.mxu1 %v3214_v0 }
 0x200   :  { %2889 = vmatmul.msk.bf16.gmra.mxu2 %vm788_vm1, %v2878_v7 }
 0x202   :  { %940 = vmatpush.bf16.msrb.mxu3 %v3197_v4  ;;  %1635 = vmatpush.bf16.msrb.mxu1 %v3213_v9 }
 0x206   :  { %941 = vmatpush.bf16.msrb.mxu3 %v3196_v41  ;;  %1636 = vmatpush.bf16.msrb.mxu1 %v3212_v12 }
 0x210   :  { %2890 = vmatmul.msk.bf16.gmra.mxu2 %vm788_vm1, %v2886_v47 }
 0x263   :  { %v843_v63 = vpop.f32.mrf.mxu2 }
 0x266   :  { %v814_v3 = vpop.f32.mrf.mxu1 }
 0x267   :  { %v844_v34 = vadd.f32 %v843_v63, %v814_v3 }
 0x26b   :  { %v845_v22 = vpop.f32.mrf.mxu2 }
 0x26c   :  { %v824_v10 = vpop.f32.mrf.mxu3 }
 0x26e   :  { %v816_v21 = vpop.f32.mrf.mxu1 }
 0x26f   :  { %v846_v60 = vadd.f32 %v845_v22, %v816_v21 }
 0x271   :  { %v863_v8 = vpack.c.bf16 %v846_v60, %v844_v34 }
 0x273   :  { %v848_v28 = vpop.f32.mrf.mxu2  ;;  %942 = vmatmul.bf16.vlgmr.msrb.gmra.mxu3 %v863_v8  ;;  %v1219_v8 = vld [vmem:[#allocation2 + $0x11] sm:$0xff] }
 0x274   :  { %v826_v29 = vpop.f32.mrf.mxu3  ;;  %1237 = vrot.lane.b32.xlu0 %v1219_v8, %s3439_s22 }
 0x276   :  { %v819_v19 = vpop.f32.mrf.mxu1 }
 0x277   :  { %v849_v54 = vadd.f32 %v848_v28, %v819_v19 }
 0x27b   :  { %v850_v23 = vpop.f32.mrf.mxu2 }
 0x27c   :  { %v829_v14 = vpop.f32.mrf.mxu3  ;;  %1239 = vrot.lane.b32.xlu0 %v1220_v31, %s3439_s22  ;;  %v1229_v31 = vld [vmem:[#allocation2 + $0x61] sm:$0xff] }
 0x27e   :  { %v821_v58 = vpop.f32.mrf.mxu1 }
 0x27f   :  { %v851_v11 = vadd.f32 %v850_v23, %v821_v58 }
 0x281   :  { %v864_v46 = vpack.c.bf16 %v851_v11, %v849_v54 }
 0x283   :  { %v853_v32 = vpop.f32.mrf.mxu2  ;;  %947 = vmatmul.bf16.gmra.mxu3 %v864_v46 }
 0x284   :  { %v854_v20 = vadd.f32 %v853_v32, %v824_v10  ;;  %v831_v30 = vpop.f32.mrf.mxu3  ;;  %1177 = vrot.lane.b32.xlu0 %v3735_v40, %s3438_s12 }
 0x28b   :  { %v855_v18 = vpop.f32.mrf.mxu2 }
 0x28c   :  { %v856_v33 = vadd.f32 %v855_v18, %v826_v29  ;;  %1179 = vrot.lane.b32.xlu0 %v3739_v53, %s3438_s12 }
 0x28e   :  { %v865_v57 = vpack.c.bf16 %v856_v33, %v854_v20 }
 0x293   :  { %v858_v25 = vpop.f32.mrf.mxu2  ;;  %952 = vmatmul.bf16.gmra.mxu3 %v865_v57 }
 0x294   :  { %v859_v26 = vadd.f32 %v858_v25, %v829_v14 }
 0x29b   :  { %v860_v48 = vpop.f32.mrf.mxu2 }
 0x29c   :  { %v861_v55 = vadd.f32 %v860_v48, %v831_v30 }
 0x29e   :  { %v866_v43 = vpack.c.bf16 %v861_v55, %v859_v26 }
 0x2a3   :  { %957 = vmatmul.bf16.gmra.mxu3 %v866_v43 }
 0x2f6   :  { %v943_v5 = vpop.f32.mrf.mxu3 }
 0x2f7   :  { %v944_v52 = vadd.f32 %v4077_v2, %v943_v5 }
 0x2f9   :  { %v963_v42 = vmul.f32 %v944_v52, %v944_v52 }
 0x2fb   :  { %v971_v62 = vmul.f32 %v963_v42, %v944_v52 }
 0x2fd   :  { %v979_v38 = vmul.f32 0.044715, %v971_v62 }
 0x2fe   :  { %v945_v1 = vpop.f32.mrf.mxu3 }
 0x2ff   :  { %v987_v37 = vadd.f32 %v979_v38, %v944_v52  ;;  %v946_v61 = vadd.f32 %v4077_v2, %v945_v1 }
 0x301   :  { %v995_v7 = vmul.f32 0.7978846, %v987_v37  ;;  %v964_v13 = vmul.f32 %v946_v61, %v946_v61 }
 0x303   :  { %v972_v24 = vmul.f32 %v964_v13, %v946_v61  ;;  %3339 = vtanh.f32 %v995_v7  ;;  %v1218_v13 = vld [vmem:[#allocation2 + $0x9] sm:$0xff] }
 0x304   :  { %1235 = vrot.lane.b32.xlu2 %v1218_v13, %s3439_s22 }
 0x305   :  { %v980_v47 = vmul.f32 0.044715, %v972_v24 }
 0x306   :  { %v948_v27 = vpop.f32.mrf.mxu3 }
 0x307   :  { %v988_v16 = vadd.f32 %v980_v47, %v946_v61  ;;  %v949_v4 = vadd.f32 %v4077_v2, %v948_v27 }
 0x309   :  { %v996_v41 = vmul.f32 0.7978846, %v988_v16  ;;  %v965_v63 = vmul.f32 %v949_v4, %v949_v4  ;;  %v3340_v3 = vpop.eup %3339 }
 0x30a   :  { %v1011_v60 = vadd.f32 1.0, %v3340_v3 }
 0x30b   :  { %v973_v22 = vmul.f32 %v965_v63, %v949_v4  ;;  %3341 = vtanh.f32 %v996_v41  ;;  %v1222_v63 = vld [vmem:[#allocation2 + $0x29] sm:$0xff] }
 0x30c   :  { %v1019_v11 = vmul.f32 0.5, %v1011_v60  ;;  %1243 = vrot.lane.b32.xlu1 %v1222_v63, %s3439_s22  ;;  %1173 = vrot.lane.b32.xlu2 %v3700_v15, %s3438_s12 }
 0x30d   :  { %v981_v21 = vmul.f32 0.044715, %v973_v22 }
 0x30e   :  { %v950_v34 = vpop.f32.mrf.mxu3  ;;  %v1027_v33 = vmul.f32 %v1019_v11, %v944_v52  ;;  %v1225_v11 = vld [vmem:[#allocation2 + $0x41] sm:$0xff] }
 0x30f   :  { %v989_v28 = vadd.f32 %v981_v21, %v949_v4  ;;  %v951_v19 = vadd.f32 %v4077_v2, %v950_v34  ;;  %1249 = vrot.lane.b32.xlu0 %v1225_v11, %s3439_s22 }
 0x311   :  { %v3342_v23 = vpop.eup %3341  ;;  %v966_v58 = vmul.f32 %v951_v19, %v951_v19  ;;  %v997_v10 = vmul.f32 0.7978846, %v989_v28 }
 0x312   :  { %v1012_v54 = vadd.f32 1.0, %v3342_v23 }
 0x313   :  { %v974_v46 = vmul.f32 %v966_v58, %v951_v19  ;;  %3343 = vtanh.f32 %v997_v10 }
 0x314   :  { %v1020_v32 = vmul.f32 0.5, %v1012_v54  ;;  %1181 = vrot.lane.b32.xlu1 %v3630_v45, %s3438_s12  ;;  %1175 = vrot.lane.b32.xlu2 %v3687_v6, %s3438_s12  ;;  %v1223_v45 = vld [vmem:[#allocation2 + $0x31] sm:$0xff] }
 0x315   :  { %v982_v29 = vmul.f32 0.044715, %v974_v46  ;;  %v1227_v6 = vld [vmem:[#allocation2 + $0x51] sm:$0xff] }
 0x316   :  { %v953_v18 = vpop.f32.mrf.mxu3  ;;  %v1028_v20 = vmul.f32 %v1020_v32, %v946_v61 }
 0x317   :  { %v990_v57 = vadd.f32 %v982_v29, %v951_v19  ;;  %v954_v14 = vadd.f32 %v4077_v2, %v953_v18 }
 0x318   :  { %v1558_v25 = vpack.c.bf16 %v1028_v20, %v1027_v33  ;;  %v4106_v33 = vld [vmem:[#allocation2 + $0x48] sm:$0xff] }
 0x319   :  { %v967_v48 = vmul.f32 %v954_v14, %v954_v14  ;;  %v998_v30 = vmul.f32 0.7978846, %v990_v57  ;;  %v3344_v55 = vpop.eup %3343  ;;  %v1226_v20 = vld [vmem:[#allocation2 + $0x49] sm:$0xff] }
 0x31a   :  { %1637 = vmatmul.bf16.vlgmr.msrb.gmra.mxu1 %v1558_v25  ;;  %v1013_v50 = vadd.f32 1.0, %v3344_v55  ;;  %1251 = vrot.lane.b32.xlu0 %v1226_v20, %s3439_s22 }
 0x31b   :  { %v975_v26 = vmul.f32 %v967_v48, %v954_v14  ;;  %3345 = vtanh.f32 %v998_v30 }
 0x31c   :  { %v1021_v42 = vmul.f32 0.5, %v1013_v50  ;;  %1183 = vrot.lane.b32.xlu1 %v4106_v33, %s3438_s12  ;;  %1245 = vrot.lane.b32.xlu2 %v1223_v45, %s3439_s22  ;;  %v1228_v50 = vld [vmem:[#allocation2 + $0x59] sm:$0xff] }
 0x31d   :  { %v983_v43 = vmul.f32 0.044715, %v975_v26 }
 0x31e   :  { %v955_v17 = vpop.f32.mrf.mxu3  ;;  %v1029_v61 = vmul.f32 %v1021_v42, %v949_v4  ;;  %v1134_v42 = vld [vmem:[#allocation2 + $0xf] sm:$0xff] }
 0x31f   :  { %v991_v56 = vadd.f32 %v983_v43, %v954_v14  ;;  %v956_v0 = vadd.f32 %v4077_v2, %v955_v17  ;;  %v1224_v17 = vld [vmem:[#allocation2 + $0x39] sm:$0xff] }
 0x321   :  { %v3346_v9 = vpop.eup %3345  ;;  %v968_v5 = vmul.f32 %v956_v0, %v956_v0  ;;  %v999_v12 = vmul.f32 0.7978846, %v991_v56  ;;  %v1168_v56 = vpop.permute.xlu0 %1167 }
 0x322   :  { %v1014_v52 = vadd.f32 1.0, %v3346_v9  ;;  %1189 = vrot.lane.b32.xlu0 %v3785_v51, %s3438_s12  ;;  %v3210_v51 = vld [vmem:[%s4625_s6 + $0xb0] sm:$0xff]  ;;  %v1233_v9 = vld [vmem:[#allocation2 + $0x81] sm:$0xff] }
 0x323   :  { %v976_v62 = vmul.f32 %v968_v5, %v956_v0  ;;  %3347 = vtanh.f32 %v999_v12  ;;  %1363 = vmatpush.bf16.msrb.mxu2 %v3210_v51  ;;  %v1232_v5 = vld [vmem:[#allocation2 + $0x79] sm:$0xff]  ;;  %v1133_v12 = vld [vmem:[#allocation2 + $0x7] sm:$0xff] }
 0x324   :  { %v1022_v38 = vmul.f32 0.5, %v1014_v52  ;;  %1253 = vrot.lane.b32.xlu1 %v1227_v6, %s3439_s22  ;;  %1247 = vrot.lane.b32.xlu2 %v1224_v17, %s3439_s22  ;;  %v1170_v52 = vpop.permute.xlu1 %1169  ;;  %v1139_v6 = vld [vmem:[#allocation2 + $0x37] sm:$0xff] }
 0x325   :  { %v984_v1 = vmul.f32 0.044715, %v976_v62  ;;  %v1201_v62 = vadd.f32 %v1168_v56, %v1133_v12 }
 0x326   :  { %v958_v37 = vpop.f32.mrf.mxu3  ;;  %v1030_v7 = vmul.f32 %v1022_v38, %v951_v19  ;;  %v1202_v38 = vadd.f32 %v1170_v52, %v1134_v42 }
 0x327   :  { %v992_v24 = vadd.f32 %v984_v1, %v956_v0  ;;  %v959_v47 = vadd.f32 %v4077_v2, %v958_v37 }
 0x328   :  { %v1559_v27 = vpack.c.bf16 %v1030_v7, %v1029_v61  ;;  %v3204_v61 = vld [vmem:[%s4625_s6 + $0x80] sm:$0xff] }
 0x329   :  { %v969_v16 = vmul.f32 %v959_v47, %v959_v47  ;;  %v1000_v41 = vmul.f32 0.7978846, %v992_v24  ;;  %v3348_v3 = vpop.eup %3347  ;;  %v1238_v37 = vpop.permute.xlu0 %1237 }
 0x32a   :  { %1642 = vmatmul.bf16.gmra.mxu1 %v1559_v27  ;;  %v1015_v34 = vadd.f32 1.0, %v3348_v3  ;;  %1191 = vrot.lane.b32.xlu0 %v3846_v36, %s3438_s12  ;;  %v3209_v36 = vld [vmem:[%s4625_s6 + $0xa8] sm:$0xff]  ;;  %v1270_v13 = vadd.f32 %v1238_v37, %v1202_v38  ;;  %v3301_v38 = vld [vmem:[%s4626_s7 + $0x3] ss:$0 sm:$0xff]  ;;  %v1143_v37 = vld [vmem:[#allocation2 + $0x57] sm:$0xff] }
 0x32b   :  { %v977_v22 = vmul.f32 %v969_v16, %v959_v47  ;;  %3349 = vtanh.f32 %v1000_v41  ;;  %1364 = vmatpush.bf16.msrb.mxu2 %v3209_v36  ;;  %v1135_v16 = vld [vmem:[#allocation2 + $0x17] sm:$0xff]  ;;  %v1136_v41 = vld [vmem:[#allocation2 + $0x1f] sm:$0xff]  ;;  %v4724_v3 = vld [vmem:[#allocation28_spill] sm:$0xff] }
 0x32c   :  { %v1023_v58 = vmul.f32 0.5, %v1015_v34  ;;  %1255 = vrot.lane.b32.xlu1 %v1228_v50, %s3439_s22  ;;  %1185 = vrot.lane.b32.xlu2 %v3838_v39, %s3438_s12  ;;  %v1231_v39 = vld [vmem:[#allocation2 + $0x71] sm:$0xff]  ;;  %v1172_v27 = vpop.permute.xlu1 %1171 }
 0x32d   :  { %v985_v4 = vmul.f32 0.044715, %v977_v22  ;;  %v1203_v22 = vadd.f32 %v1172_v27, %v1135_v16 }
 0x32e   :  { %v960_v21 = vpop.f32.mrf.mxu3 }
 0x32f   :  { %v993_v60 = vadd.f32 %v985_v4, %v959_v47  ;;  %v961_v8 = vadd.f32 %v4077_v2, %v960_v21  ;;  %v1031_v2 = vmul.f32 %v1023_v58, %v954_v14 }
 0x331   :  { %v3350_v40 = vpop.eup %3349  ;;  %v970_v28 = vmul.f32 %v961_v8, %v961_v8  ;;  %v1001_v19 = vmul.f32 0.7978846, %v993_v60  ;;  %v1240_v34 = vpop.permute.xlu0 %1239 }
 0x332   :  { %v1016_v23 = vadd.f32 1.0, %v3350_v40  ;;  %1261 = vrot.lane.b32.xlu0 %v1231_v39, %s3439_s22 }
 0x333   :  { %v978_v10 = vmul.f32 %v970_v28, %v961_v8  ;;  %3351 = vtanh.f32 %v1001_v19  ;;  %v3420_v19 = vld [vmem:[#allocation2 + $0x88] sm:$0xff] }
 0x334   :  { %v1024_v54 = vmul.f32 0.5, %v1016_v23  ;;  %1193 = vrot.lane.b32.xlu1 %v3895_v35, %s3438_s12  ;;  %1187 = vrot.lane.b32.xlu2 %v3840_v44, %s3438_s12  ;;  %v3208_v35 = vld [vmem:[%s4625_s6 + $0xa0] sm:$0xff]  ;;  %v3207_v44 = vld [vmem:[%s4625_s6 + $0x98] sm:$0xff]  ;;  %v1242_v21 = vpop.permute.xlu1 %1241 }
 0x335   :  { %v986_v46 = vmul.f32 0.044715, %v978_v10  ;;  %1365 = vmatpush.bf16.msrb.mxu2 %v3208_v35  ;;  %v1137_v10 = vld [vmem:[#allocation2 + $0x27] sm:$0xff] }
 0x336   :  { %v1032_v32 = vmul.f32 %v1024_v54, %v956_v0  ;;  %v3206_v0 = vld [vmem:[%s4625_s6 + $0x90] sm:$0xff]  ;;  %v1141_v35 = vld [vmem:[#allocation2 + $0x47] sm:$0xff] }
 0x337   :  { %v994_v29 = vadd.f32 %v986_v46, %v961_v8  ;;  %v1138_v54 = vld [vmem:[#allocation2 + $0x2f] sm:$0xff] }
 0x338   :  { %v1560_v15 = vpack.c.bf16 %v1032_v32, %v1031_v2 }
 0x339   :  { %v1002_v53 = vmul.f32 0.7978846, %v994_v29  ;;  %v3352_v18 = vpop.eup %3351  ;;  %1366 = vmatpush.bf16.msrb.mxu2 %v3207_v44  ;;  %v1178_v11 = vpop.permute.xlu0 %1177  ;;  %v1142_v44 = vld [vmem:[#allocation2 + $0x4f] sm:$0xff] }
 0x33a   :  { %1647 = vmatmul.bf16.gmra.mxu1 %v1560_v15  ;;  %v1017_v57 = vadd.f32 1.0, %v3352_v18  ;;  %1263 = vrot.lane.b32.xlu0 %v1232_v5, %s3439_s22  ;;  %v1206_v2 = vadd.f32 %v1178_v11, %v1138_v54 }
 0x33b   :  { %3353 = vtanh.f32 %v1002_v53 }
 0x33c   :  { %v1025_v48 = vmul.f32 0.5, %v1017_v57  ;;  %1195 = vrot.lane.b32.xlu1 %v3931_v59, %s3438_s12  ;;  %1257 = vrot.lane.b32.xlu2 %v1229_v31, %s3439_s22  ;;  %v3205_v59 = vld [vmem:[%s4625_s6 + $0x88] sm:$0xff] }
 0x33d   :  { %1367 = vmatpush.bf16.msrb.mxu2 %v3206_v0 }
 0x33e   :  { %v1033_v55 = vmul.f32 %v1025_v48, %v959_v47  ;;  %v1230_v47 = vld [vmem:[#allocation2 + $0x69] sm:$0xff] }
 0x341   :  { %v3354_v14 = vpop.eup %3353  ;;  %1368 = vmatpush.bf16.msrb.mxu2 %v3205_v59  ;;  %v1180_v20 = vpop.permute.xlu0 %1179 }
 0x342   :  { %v1018_v25 = vadd.f32 1.0, %v3354_v14  ;;  %v1207_v48 = vadd.f32 %v1180_v20, %v1139_v6  ;;  %v3221_v6 = vld [vmem:[%s4624_s5 + $0x8] sm:$0xff] }
 0x344   :  { %v1026_v30 = vmul.f32 0.5, %v1018_v25  ;;  %1265 = vrot.lane.b32.xlu1 %v1233_v9, %s3439_s22  ;;  %1259 = vrot.lane.b32.xlu2 %v1230_v47, %s3439_s22  ;;  %v1140_v25 = vld [vmem:[#allocation2 + $0x3f] sm:$0xff] }
 0x345   :  { %1369 = vmatpush.bf16.msrb.mxu2 %v3204_v61  ;;  %v1144_v61 = vld [vmem:[#allocation2 + $0x5f] sm:$0xff] }
 0x346   :  { %v1034_v26 = vmul.f32 %v1026_v30, %v961_v8  ;;  %v1271_v8 = vadd.f32 %v1240_v34, %v1203_v22 }
 0x348   :  { %v1561_v43 = vpack.c.bf16 %v1034_v26, %v1033_v55  ;;  %v1234_v55 = vld [vmem:[#allocation2 + $0x89] sm:$0xff] }
 0x349   :  { %1267 = vrot.lane.b32.xlu0 %v1234_v55, %s3439_s22 }
 0x34a   :  { %1652 = vmatmul.bf16.gmra.mxu1 %v1561_v43 }
 0x34c   :  { %1197 = vrot.lane.b32.xlu2 %v4724_v3, %s3438_s12 }
 0x354   :  { %1199 = vrot.lane.b32.xlu2 %v3420_v19, %s3438_s12 }
 0x35e   :  { %v1236_v1 = vpop.permute.xlu2 %1235 }
 0x35f   :  { %v1269_v7 = vadd.f32 %v1236_v1, %v1201_v62 }
 0x361   :  { %v1286_v24 = vpack.c.bf16 %v1270_v13, %v1269_v7 }
 0x363   :  { %1370 = vmatmul.bf16.vlgmr.msrb.gmra.mxu2 %v1286_v24 }
 0x366   :  { %v1174_v63 = vpop.permute.xlu2 %1173 }
 0x367   :  { %v1204_v4 = vadd.f32 %v1174_v63, %v1136_v41 }
 0x369   :  { %v1272_v60 = vadd.f32 %v1242_v21, %v1204_v4 }
 0x36b   :  { %v1287_v40 = vpack.c.bf16 %v1272_v60, %v1271_v8 }
 0x36e   :  { %v1176_v23 = vpop.permute.xlu2 %1175 }
 0x36f   :  { %v1205_v46 = vadd.f32 %v1176_v23, %v1137_v10 }
 0x373   :  { %1375 = vmatmul.bf16.gmra.mxu2 %v1287_v40 }
 0x376   :  { %v1246_v29 = vpop.permute.xlu2 %1245 }
 0x377   :  { %v1274_v53 = vadd.f32 %v1246_v29, %v1206_v2  ;;  %v1145_v2 = vld [vmem:[#allocation2 + $0x67] sm:$0xff] }
 0x37e   :  { %v1244_v32 = vpop.permute.xlu1 %1243  ;;  %v1248_v26 = vpop.permute.xlu2 %1247 }
 0x37f   :  { %v1273_v15 = vadd.f32 %v1244_v32, %v1205_v46  ;;  %v1275_v17 = vadd.f32 %v1248_v26, %v1207_v48  ;;  %v3220_v46 = vld [vmem:[%s4624_s5] sm:$0xff]  ;;  %v1146_v32 = vld [vmem:[#allocation2 + $0x6f] sm:$0xff] }
 0x381   :  { %v1288_v18 = vpack.c.bf16 %v1274_v53, %v1273_v15  ;;  %v1250_v43 = vpop.permute.xlu0 %1249 }
 0x383   :  { %1380 = vmatmul.bf16.gmra.mxu2 %v1288_v18 }
 0x386   :  { %v1182_v14 = vpop.permute.xlu1 %1181  ;;  %v1186_v31 = vpop.permute.xlu2 %1185 }
 0x387   :  { %v1208_v30 = vadd.f32 %v1182_v14, %v1140_v25  ;;  %v1210_v0 = vadd.f32 %v1186_v31, %v1142_v44  ;;  %v1147_v14 = vld [vmem:[#allocation2 + $0x77] sm:$0xff]  ;;  %v1148_v25 = vld [vmem:[#allocation2 + $0x7f] sm:$0xff]  ;;  %v1149_v31 = vld [vmem:[#allocation2 + $0x87] sm:$0xff] }
 0x389   :  { %v1276_v50 = vadd.f32 %v1250_v43, %v1208_v30 }
 0x38b   :  { %v1289_v49 = vpack.c.bf16 %v1276_v50, %v1275_v17 }
 0x38c   :  { %v1252_v9 = vpop.permute.xlu0 %1251 }
 0x38e   :  { %v1184_v36 = vpop.permute.xlu1 %1183  ;;  %v1188_v62 = vpop.permute.xlu2 %1187 }
 0x38f   :  { %v1209_v56 = vadd.f32 %v1184_v36, %v1141_v35  ;;  %v1211_v47 = vadd.f32 %v1188_v62, %v1143_v37  ;;  %v3225_v62 = vld [vmem:[%s4624_s5 + $0x28] sm:$0xff] }
 0x391   :  { %v1277_v12 = vadd.f32 %v1252_v9, %v1209_v56 }
 0x393   :  { %1385 = vmatmul.bf16.gmra.mxu2 %v1289_v49 }
 0x394   :  { %v1190_v7 = vpop.permute.xlu0 %1189 }
 0x395   :  { %v1212_v27 = vadd.f32 %v1190_v7, %v1144_v61 }
 0x396   :  { %v1254_v59 = vpop.permute.xlu1 %1253  ;;  %v1258_v41 = vpop.permute.xlu2 %1257 }
 0x397   :  { %v4158_v28 = vpop.f32.mrf.mxu1  ;;  %v1278_v5 = vadd.f32 %v1254_v59, %v1210_v0  ;;  %v1280_v4 = vadd.f32 %v1258_v41, %v1212_v27  ;;  %v3224_v0 = vld [vmem:[%s4624_s5 + $0x20] sm:$0xff] }
 0x398   :  { %v1639_v54 = vadd.f32 %v3301_v38, %v4158_v28 }
 0x399   :  { %v1290_v52 = vpack.c.bf16 %v1278_v5, %v1277_v12 }
 0x39c   :  { %v1192_v19 = vpop.permute.xlu0 %1191 }
 0x39d   :  { %v1213_v15 = vadd.f32 %v1192_v19, %v1145_v2 }
 0x39e   :  { %v1256_v16 = vpop.permute.xlu1 %1255  ;;  %v1260_v18 = vpop.permute.xlu2 %1259 }
 0x39f   :  { %v4161_v58 = vpop.f32.mrf.mxu1  ;;  %v1279_v22 = vadd.f32 %v1256_v16, %v1211_v47  ;;  %v1281_v20 = vadd.f32 %v1260_v18, %v1213_v15 }
 0x3a0   :  { %v1641_v23 = vadd.f32 %v3301_v38, %v4161_v58 }
 0x3a1   :  { %v1291_v34 = vpack.c.bf16 %v1280_v4, %v1279_v22 }
 0x3a2   :  { %v1675_v11 = vpack.c.bf16 %v1641_v23, %v1639_v54 }
 0x3a3   :  { %1390 = vmatmul.bf16.gmra.mxu2 %v1290_v52 }
 0x3a6   :  { %v1194_v29 = vpop.permute.xlu1 %1193  ;;  %v1198_v48 = vpop.permute.xlu2 %1197 }
 0x3a7   :  { %v1643_v45 = vpop.f32.mrf.mxu1  ;;  %v1214_v53 = vadd.f32 %v1194_v29, %v1146_v32  ;;  %v1216_v55 = vadd.f32 %v1198_v48, %v1148_v25  ;;  %v1674_v29 = vld [vmem:[%s4624_s5 + $0x40] sm:$0xf] }
 0x3a8   :  { %v1644_v40 = vadd.f32 %v3301_v38, %v1643_v45  ;;  %v1262_v45 = vpop.permute.xlu0 %1261  ;;  %v1712_v18 = vunpack.c.l.b16 %v1674_v29 }
 0x3a9   :  { %v1282_v58 = vadd.f32 %v1262_v45, %v1214_v53 }
 0x3ab   :  { %v1292_v28 = vpack.c.bf16 %v1282_v58, %v1281_v20 }
 0x3ae   :  { %v1200_v56 = vpop.permute.xlu2 %1199 }
 0x3af   :  { %v1645_v57 = vpop.f32.mrf.mxu1  ;;  %v1217_v59 = vadd.f32 %v1200_v56, %v1149_v31 }
 0x3b0   :  { %v1646_v60 = vadd.f32 %v3301_v38, %v1645_v57  ;;  %v1196_v57 = vpop.permute.xlu1 %1195  ;;  %v1264_v17 = vpop.permute.xlu0 %1263 }
 0x3b1   :  { %v1215_v30 = vadd.f32 %v1196_v57, %v1147_v14 }
 0x3b2   :  { %v1676_v10 = vpack.c.bf16 %v1646_v60, %v1644_v40 }
 0x3b3   :  { %1394 = vmatmul.bf16.gmra.mxu2 %v1291_v34  ;;  %v1283_v50 = vadd.f32 %v1264_v17, %v1215_v30 }
 0x3b7   :  { %v1648_v51 = vpop.f32.mrf.mxu1 }
 0x3b8   :  { %v1649_v21 = vadd.f32 %v3301_v38, %v1648_v51  ;;  %v1266_v26 = vpop.permute.xlu1 %1265  ;;  %v3222_v51 = vld [vmem:[%s4624_s5 + $0x10] sm:$0xff] }
 0x3b9   :  { %v1284_v43 = vadd.f32 %v1266_v26, %v1216_v55  ;;  %v4239_v55 = vld [vmem:[%s4620_s1] ss:$0 sm:$0xff] }
 0x3bb   :  { %v1293_v49 = vpack.c.bf16 %v1284_v43, %v1283_v50  ;;  %v1268_v5 = vpop.permute.xlu0 %1267 }
 0x3bc   :  { %v1285_v12 = vadd.f32 %v1268_v5, %v1217_v59 }
 0x3be   :  { %v1294_v52 = vpack.c.bf16 %v1285_v12, %v1285_v12 }
 0x3bf   :  { %v1650_v39 = vpop.f32.mrf.mxu1 }
 0x3c0   :  { %v1651_v63 = vadd.f32 %v3301_v38, %v1650_v39  ;;  %v3223_v39 = vld [vmem:[%s4624_s5 + $0x18] sm:$0xff] }
 0x3c2   :  { %v1677_v8 = vpack.c.bf16 %v1651_v63, %v1649_v21 }
 0x3c3   :  { %1399 = vmatmul.bf16.gmra.mxu2 %v1292_v28 }
 0x3c7   :  { %v1653_v42 = vpop.f32.mrf.mxu1 }
 0x3c8   :  { %v1654_v13 = vadd.f32 %v3301_v38, %v1653_v42 }
 0x3cf   :  { %v1655_v1 = vpop.f32.mrf.mxu1 }
 0x3d0   :  { %v1656_v24 = vadd.f32 %v3301_v38, %v1655_v1  ;;  %v4196_v1 = vld [vmem:[%s4626_s7 + $0x2] ss:$0 sm:$0xff] }
 0x3d2   :  { %v1678_v3 = vpack.c.bf16 %v1656_v24, %v1654_v13  ;;  %v3226_v13 = vld [vmem:[%s4624_s5 + $0x30] sm:$0xff] }
 0x3d3   :  { %1404 = vmatmul.bf16.gmra.mxu2 %v1293_v49 }
 0x3d4   :  { %1754 = vmatpush.bf16.msra.mxu3 %v1678_v3 }
 0x3d8   :  { %1755 = vmatpush.bf16.msra.mxu3 %v1677_v8  ;;  %v3227_v8 = vld [vmem:[%s4624_s5 + $0x38] sm:$0xff] }
 0x3dc   :  { %1756 = vmatpush.bf16.msra.mxu3 %v1676_v10 }
 0x3e0   :  { %1757 = vmatpush.bf16.msra.mxu3 %v1675_v11 }
 0x3e3   :  { %3067 = vmatmul.msk.bf16.vlgmr.msra.gmra.mxu3 %vm1722_vm2, %v3220_v46  ;;  %1409 = vmatmul.bf16.gmra.mxu2 %v1294_v52 }
 0x3e6   :  { %v1371_v36 = vpop.f32.mrf.mxu2 }
 0x3e7   :  { %v1372_v37 = vadd.f32 %v4196_v1, %v1371_v36 }
 0x3e9   :  { %v1414_v7 = vmul.f32 %v1372_v37, %v1372_v37 }
 0x3eb   :  { %v1430_v24 = vmul.f32 %v1414_v7, %v1372_v37 }
 0x3ed   :  { %v1446_v16 = vmul.f32 0.044715, %v1430_v24 }
 0x3ee   :  { %v1373_v35 = vpop.f32.mrf.mxu2 }
 0x3ef   :  { %v1374_v47 = vadd.f32 %v4196_v1, %v1373_v35  ;;  %v1462_v63 = vadd.f32 %v1446_v16, %v1372_v37 }
 0x3f1   :  { %v1415_v41 = vmul.f32 %v1374_v47, %v1374_v47  ;;  %v1478_v21 = vmul.f32 0.7978846, %v1462_v63 }
 0x3f3   :  { %3068 = vmatmul.msk.bf16.gmra.mxu3 %vm1722_vm2, %v3221_v6  ;;  %v1431_v3 = vmul.f32 %v1415_v41, %v1374_v47  ;;  %3355 = vtanh.f32 %v1478_v21  ;;  %v1721_v6 = vpack.c.b16 %v1712_v18, %v1712_v18 }
 0x3f5   :  { %v1447_v34 = vmul.f32 0.044715, %v1431_v3 }
 0x3f6   :  { %v1376_v44 = vpop.f32.mrf.mxu2 }
 0x3f7   :  { %v4207_v22 = vadd.f32 %v4196_v1, %v1376_v44  ;;  %v1463_v40 = vadd.f32 %v1447_v34, %v1374_v47 }
 0x3f9   :  { %v1416_v60 = vmul.f32 %v4207_v22, %v4207_v22  ;;  %v1479_v10 = vmul.f32 0.7978846, %v1463_v40  ;;  %v3356_v46 = vpop.eup %3355 }
 0x3fa   :  { %v1510_v53 = vadd.f32 1.0, %v3356_v46 }
 0x3fb   :  { %v1432_v19 = vmul.f32 %v1416_v60, %v4207_v22  ;;  %3357 = vtanh.f32 %v1479_v10 }
 0x3fc   :  { %v1526_v28 = vmul.f32 0.5, %v1510_v53 }
 0x3fd   :  { %v1448_v54 = vmul.f32 0.044715, %v1432_v19 }
 0x3fe   :  { %v1378_v9 = vpop.f32.mrf.mxu2  ;;  %v1542_v30 = vmul.f32 %v1526_v28, %v1372_v37 }
 0x3ff   :  { %v4216_v23 = vadd.f32 %v4196_v1, %v1378_v9  ;;  %v1464_v2 = vadd.f32 %v1448_v54, %v4207_v22 }
 0x400   :  { %v1854_v49 = vadd.f32 %v4239_v55, %v1542_v30 }
 0x401   :  { %v1417_v11 = vmul.f32 %v4216_v23, %v4216_v23  ;;  %v1480_v45 = vmul.f32 0.7978846, %v1464_v2  ;;  %v3358_v57 = vpop.eup %3357 }
 0x402   :  { %v1511_v26 = vadd.f32 1.0, %v3358_v57 }
 0x403   :  { %3069 = vmatmul.msk.bf16.gmra.mxu3 %vm1722_vm2, %v3222_v51  ;;  %v1433_v32 = vmul.f32 %v1417_v11, %v4216_v23  ;;  %3359 = vtanh.f32 %v1480_v45 }
 0x404   :  { %v1527_v51 = vmul.f32 0.5, %v1511_v26 }
 0x405   :  { %v1449_v20 = vmul.f32 0.044715, %v1433_v32 }
 0x406   :  { %v1381_v42 = vpop.f32.mrf.mxu2  ;;  %v1543_v59 = vmul.f32 %v1527_v51, %v1374_v47 }
 0x407   :  { %v4227_v15 = vadd.f32 %v4196_v1, %v1381_v42  ;;  %v1465_v14 = vadd.f32 %v1449_v20, %v4216_v23 }
 0x408   :  { %v1855_v42 = vadd.f32 %v4239_v55, %v1543_v59 }
 0x409   :  { %v1418_v58 = vmul.f32 %v4227_v15, %v4227_v15  ;;  %v1481_v43 = vmul.f32 0.7978846, %v1465_v14  ;;  %v3360_v36 = vpop.eup %3359 }
 0x40a   :  { %v1512_v9 = vadd.f32 1.0, %v3360_v36 }
 0x40b   :  { %v1434_v25 = vmul.f32 %v1418_v58, %v4227_v15  ;;  %3361 = vtanh.f32 %v1481_v43 }
 0x40d   :  { %v1450_v17 = vmul.f32 0.044715, %v1434_v25 }
 0x40e   :  { %v1383_v38 = vpop.f32.mrf.mxu2 }
 0x40f   :  { %v4234_v48 = vadd.f32 %v4196_v1, %v1383_v38  ;;  %v1466_v44 = vadd.f32 %v1450_v17, %v4227_v15 }
 0x411   :  { %v1419_v50 = vmul.f32 %v4234_v48, %v4234_v48  ;;  %v1482_v5 = vmul.f32 0.7978846, %v1466_v44  ;;  %v3362_v38 = vpop.eup %3361 }
 0x412   :  { %v1513_v16 = vadd.f32 1.0, %v3362_v38 }
 0x413   :  { %3070 = vmatmul.msk.bf16.gmra.mxu3 %vm1722_vm2, %v3223_v39  ;;  %v1435_v31 = vmul.f32 %v1419_v50, %v4234_v48  ;;  %3363 = vtanh.f32 %v1482_v5 }
 0x414   :  { %v1529_v34 = vmul.f32 0.5, %v1513_v16 }
 0x415   :  { %v1451_v12 = vmul.f32 0.044715, %v1435_v31 }
 0x416   :  { %v1386_v61 = vpop.f32.mrf.mxu2  ;;  %v1545_v10 = vmul.f32 %v1529_v34, %v4216_v23 }
 0x417   :  { %v4248_v56 = vadd.f32 %v4196_v1, %v1386_v61  ;;  %v1467_v61 = vadd.f32 %v1451_v12, %v4234_v48 }
 0x418   :  { %v1857_v32 = vadd.f32 %v4239_v55, %v1545_v10 }
 0x419   :  { %v1420_v52 = vmul.f32 %v4248_v56, %v4248_v56  ;;  %v1483_v63 = vmul.f32 0.7978846, %v1467_v61  ;;  %v3364_v60 = vpop.eup %3363 }
 0x41a   :  { %v1514_v54 = vadd.f32 1.0, %v3364_v60 }
 0x41b   :  { %3365 = vtanh.f32 %v1483_v63 }
 0x41c   :  { %v1530_v29 = vmul.f32 0.5, %v1514_v54 }
 0x41e   :  { %v4203_v27 = vpop.f32.mrf.mxu2  ;;  %v1546_v23 = vmul.f32 %v1530_v29, %v4227_v15 }
 0x41f   :  { %v4258_v24 = vadd.f32 %v4196_v1, %v4203_v27 }
 0x420   :  { %v1858_v25 = vadd.f32 %v4239_v55, %v1546_v23 }
 0x421   :  { %v3366_v53 = vpop.eup %3365 }
 0x422   :  { %v1515_v57 = vadd.f32 1.0, %v3366_v53 }
 0x423   :  { %3071 = vmatmul.msk.bf16.gmra.mxu3 %vm1722_vm2, %v3224_v0 }
 0x424   :  { %v1531_v30 = vmul.f32 0.5, %v1515_v57 }
 0x426   :  { %v1391_v4 = vpop.f32.mrf.mxu2  ;;  %v1547_v15 = vmul.f32 %v1531_v30, %v4234_v48 }
 0x427   :  { %v1421_v4 = vmul.f32 %v4258_v24, %v4258_v24 }
 0x428   :  { %v1859_v31 = vadd.f32 %v4239_v55, %v1547_v15 }
 0x42e   :  { %v1392_v0 = vpop.f32.mrf.mxu2 }
 0x42f   :  { %v4273_v28 = vadd.f32 %v4196_v1, %v1392_v0 }
 0x431   :  { %v1422_v14 = vmul.f32 %v4273_v28, %v4273_v28 }
 0x433   :  { %3072 = vmatmul.msk.bf16.gmra.mxu3 %vm1722_vm2, %v3225_v62  ;;  %v1528_v62 = vmul.f32 0.5, %v1512_v9  ;;  %v1438_v51 = vmul.f32 %v1422_v14, %v4273_v28 }
 0x435   :  { %v1544_v47 = vmul.f32 %v1528_v62, %v4207_v22  ;;  %v1437_v22 = vmul.f32 %v1421_v4, %v4258_v24 }
 0x436   :  { %v1395_v41 = vpop.f32.mrf.mxu2 }
 0x437   :  { %v1856_v21 = vadd.f32 %v4239_v55, %v1544_v47  ;;  %v1453_v46 = vmul.f32 0.044715, %v1437_v22  ;;  %v4283_v36 = vadd.f32 %v4196_v1, %v1395_v41 }
 0x439   :  { %v1469_v58 = vadd.f32 %v1453_v46, %v4258_v24  ;;  %v1423_v44 = vmul.f32 %v4283_v36, %v4283_v36 }
 0x43e   :  { %v1397_v2 = vpop.f32.mrf.mxu2 }
 0x43f   :  { %v4294_v48 = vadd.f32 %v4196_v1, %v1397_v2 }
 0x443   :  { %3073 = vmatmul.msk.bf16.gmra.mxu3 %vm1722_vm2, %v3226_v13  ;;  %v1436_v13 = vmul.f32 %v1420_v52, %v4248_v56 }
 0x445   :  { %v1452_v3 = vmul.f32 0.044715, %v1436_v13  ;;  %v1424_v13 = vmul.f32 %v4294_v48, %v4294_v48 }
 0x446   :  { %v1400_v17 = vpop.f32.mrf.mxu2 }
 0x447   :  { %v1468_v19 = vadd.f32 %v1452_v3, %v4248_v56 }
 0x449   :  { %v1484_v11 = vmul.f32 0.7978846, %v1468_v19 }
 0x44b   :  { %3367 = vtanh.f32 %v1484_v11 }
 0x44e   :  { %v1402_v62 = vpop.f32.mrf.mxu2 }
 0x44f   :  { %v4316_v2 = vadd.f32 %v4196_v1, %v1402_v62 }
 0x451   :  { %v3368_v26 = vpop.eup %3367  ;;  %v1426_v53 = vmul.f32 %v4316_v2, %v4316_v2 }
 0x453   :  { %3074 = vmatmul.msk.bf16.gmra.mxu3 %vm1722_vm2, %v3227_v8  ;;  %v1442_v14 = vmul.f32 %v1426_v53, %v4316_v2 }
 0x456   :  { %v1405_v60 = vpop.f32.mrf.mxu2 }
 0x463   :  { %3075 = vmatmul.msk.bf16.gmra.mxu3 %vm1722_vm2, %v1721_v6  ;;  %v1485_v6 = vmul.f32 0.7978846, %v1469_v58 }
 0x465   :  { %3369 = vtanh.f32 %v1485_v6 }
 0x466   :  { %v1759_v39 = vpop.f32.mrf.mxu3 }
 0x467   :  { %v1870_v35 = vadd.f32 %v1854_v49, %v1759_v39  ;;  %v1516_v39 = vadd.f32 1.0, %v3368_v26  ;;  %v4333_v26 = vld [vmem:[%s4620_s1 + $0x1] ss:$0 sm:$0xff] }
 0x469   :  { %1886 = vst [vmem:[#allocation2 + $0x8] sm:$0xff] %v1870_v35  ;;  %1936 = vrot.lane.b32.xlu1 %v1870_v35, %s3438_s12  ;;  %v1454_v35 = vmul.f32 0.044715, %v1438_v51  ;;  %v1532_v0 = vmul.f32 0.5, %v1516_v39 }
 0x46b   :  { %v3370_v59 = vpop.eup %3369  ;;  %v1470_v12 = vadd.f32 %v1454_v35, %v4273_v28  ;;  %v1548_v38 = vmul.f32 %v1532_v0, %v4248_v56  ;;  %v1440_v56 = vmul.f32 %v1424_v13, %v4294_v48 }
 0x46d   :  { %v1860_v47 = vadd.f32 %v4239_v55, %v1548_v38 }
 0x46e   :  { %v1761_v37 = vpop.f32.mrf.mxu3 }
 0x46f   :  { %v1871_v7 = vadd.f32 %v1855_v42, %v1761_v37  ;;  %v1439_v42 = vmul.f32 %v1423_v44, %v4283_v36  ;;  %v1517_v37 = vadd.f32 1.0, %v3370_v59 }
 0x471   :  { %1887 = vst [vmem:[#allocation2 + $0x10] sm:$0xff] %v1871_v7  ;;  %1938 = vrot.lane.b32.xlu2 %v1871_v7, %s3438_s12  ;;  %v1486_v7 = vmul.f32 0.7978846, %v1470_v12  ;;  %v1455_v61 = vmul.f32 0.044715, %v1439_v42  ;;  %v1533_v16 = vmul.f32 0.5, %v1517_v37 }
 0x473   :  { %v1471_v3 = vadd.f32 %v1455_v61, %v4283_v36  ;;  %3371 = vtanh.f32 %v1486_v7  ;;  %v1549_v34 = vmul.f32 %v1533_v16, %v4258_v24 }
 0x475   :  { %v1861_v19 = vadd.f32 %v4239_v55, %v1549_v34 }
 0x476   :  { %v1764_v8 = vpop.f32.mrf.mxu3 }
 0x477   :  { %v1872_v27 = vadd.f32 %v1856_v21, %v1764_v8  ;;  %v4305_v21 = vadd.f32 %v4196_v1, %v1400_v17  ;;  %v1487_v8 = vmul.f32 0.7978846, %v1471_v3 }
 0x478   :  { %v1987_v40 = vld [vmem:[#allocation2 + $0x9] sm:$0xff] }
 0x479   :  { %1888 = vst [vmem:[#allocation2 + $0x18] sm:$0xff] %v1872_v27  ;;  %2004 = vrot.lane.b32.xlu0 %v1987_v40, %s3439_s22  ;;  %1940 = vrot.lane.b32.xlu2 %v1872_v27, %s3438_s12  ;;  %v1456_v27 = vmul.f32 0.044715, %v1440_v56  ;;  %v1425_v40 = vmul.f32 %v4305_v21, %v4305_v21  ;;  %v3372_v22 = vpop.eup %3371  ;;  %3373 = vtanh.f32 %v1487_v8 }
 0x47b   :  { %v1472_v46 = vadd.f32 %v1456_v27, %v4294_v48  ;;  %v1441_v24 = vmul.f32 %v1425_v40, %v4305_v21 }
 0x47d   :  { %v1488_v29 = vmul.f32 0.7978846, %v1472_v46  ;;  %v1457_v55 = vmul.f32 0.044715, %v1441_v24 }
 0x47e   :  { %v1766_v18 = vpop.f32.mrf.mxu3 }
 0x47f   :  { %v1873_v45 = vadd.f32 %v1857_v32, %v1766_v18  ;;  %v1518_v32 = vadd.f32 1.0, %v3372_v22  ;;  %v1407_v18 = vpop.f32.mrf.mxu2  ;;  %v1473_v6 = vadd.f32 %v1457_v55, %v4305_v21  ;;  %3375 = vtanh.f32 %v1488_v29 }
 0x480   :  { %v1988_v20 = vld [vmem:[#allocation2 + $0x11] sm:$0xff]  ;;  %v4343_v59 = vadd.f32 %v4196_v1, %v1407_v18 }
 0x481   :  { %1889 = vst [vmem:[#allocation2 + $0x20] sm:$0xff] %v1873_v45  ;;  %2006 = vrot.lane.b32.xlu1 %v1988_v20, %s3439_s22  ;;  %1942 = vrot.lane.b32.xlu0 %v1873_v45, %s3438_s12  ;;  %v1534_v45 = vmul.f32 0.5, %v1518_v32  ;;  %v3374_v20 = vpop.eup %3373  ;;  %v1489_v17 = vmul.f32 0.7978846, %v1473_v6  ;;  %v3232_v32 = vld [vmem:[%s4625_s6 + $0x120] sm:$0xff] }
 0x483   :  { %v1550_v30 = vmul.f32 %v1534_v45, %v4273_v28  ;;  %3377 = vtanh.f32 %v1489_v17 }
 0x485   :  { %v1862_v15 = vadd.f32 %v4333_v26, %v1550_v30  ;;  %v3376_v35 = vpop.eup %3375  ;;  %v3230_v30 = vld [vmem:[%s4625_s6 + $0x110] sm:$0xff] }
 0x486   :  { %v1769_v43 = vpop.f32.mrf.mxu3 }
 0x487   :  { %v1874_v50 = vadd.f32 %v1858_v25, %v1769_v43  ;;  %v4325_v25 = vadd.f32 %v4196_v1, %v1405_v60  ;;  %v1519_v43 = vadd.f32 1.0, %v3374_v20  ;;  %v1410_v51 = vpop.f32.mrf.mxu2 }
 0x488   :  { %v1989_v49 = vld [vmem:[#allocation2 + $0x19] sm:$0xff]  ;;  %v4351_v61 = vadd.f32 %v4196_v1, %v1410_v51 }
 0x489   :  { %1890 = vst [vmem:[#allocation2 + $0x28] sm:$0xff] %v1874_v50  ;;  %2008 = vrot.lane.b32.xlu1 %v1989_v49, %s3439_s22  ;;  %1944 = vrot.lane.b32.xlu0 %v1874_v50, %s3438_s12  ;;  %v1458_v50 = vmul.f32 0.044715, %v1442_v14  ;;  %v1427_v49 = vmul.f32 %v4325_v25, %v4325_v25  ;;  %v1535_v39 = vmul.f32 0.5, %v1519_v43  ;;  %v3378_v37 = vpop.eup %3377 }
 0x48a   :  { %v1521_v1 = vadd.f32 1.0, %v3378_v37  ;;  %v1429_v3 = vmul.f32 %v4351_v61, %v4351_v61 }
 0x48b   :  { %v1443_v0 = vmul.f32 %v1427_v49, %v4325_v25 }
 0x48c   :  { %v1537_v8 = vmul.f32 0.5, %v1521_v1 }
 0x48d   :  { %v1459_v12 = vmul.f32 0.044715, %v1443_v0 }
 0x48e   :  { %v1771_v9 = vpop.f32.mrf.mxu3 }
 0x48f   :  { %v1875_v5 = vadd.f32 %v1859_v31, %v1771_v9  ;;  %v1474_v31 = vadd.f32 %v1458_v50, %v4316_v2  ;;  %v1520_v9 = vadd.f32 1.0, %v3376_v35  ;;  %v1412_v42 = vpop.f32.mrf.mxu2 }
 0x490   :  { %v1990_v52 = vld [vmem:[#allocation2 + $0x21] sm:$0xff] }
 0x491   :  { %1891 = vst [vmem:[#allocation2 + $0x30] sm:$0xff] %v1875_v5  ;;  %2010 = vrot.lane.b32.xlu2 %v1990_v52, %s3439_s22  ;;  %1946 = vrot.lane.b32.xlu1 %v1875_v5, %s3438_s12  ;;  %v1490_v5 = vmul.f32 0.7978846, %v1474_v31  ;;  %v1428_v52 = vmul.f32 %v4343_v59, %v4343_v59  ;;  %v1536_v38 = vmul.f32 0.5, %v1520_v9 }
 0x493   :  { %v1444_v16 = vmul.f32 %v1428_v52, %v4343_v59  ;;  %3379 = vtanh.f32 %v1490_v5 }
 0x495   :  { %v1460_v34 = vmul.f32 0.044715, %v1444_v16 }
 0x496   :  { %v1774_v41 = vpop.f32.mrf.mxu3 }
 0x497   :  { %v1876_v63 = vadd.f32 %v1860_v47, %v1774_v41  ;;  %v3235_v41 = vld [vmem:[%s4625_s6 + $0x138] sm:$0xff]  ;;  %v1476_v22 = vadd.f32 %v1460_v34, %v4343_v59 }
 0x498   :  { %v1991_v4 = vld [vmem:[#allocation2 + $0x29] sm:$0xff]  ;;  %2131 = vmatpush.bf16.msra.mxu1 %v3235_v41 }
 0x499   :  { %1892 = vst [vmem:[#allocation2 + $0x38] sm:$0xff] %v1876_v63  ;;  %2012 = vrot.lane.b32.xlu2 %v1991_v4, %s3439_s22  ;;  %1948 = vrot.lane.b32.xlu1 %v1876_v63, %s3438_s12  ;;  %v1552_v63 = vmul.f32 %v1536_v38, %v4294_v48  ;;  %v3234_v4 = vld [vmem:[%s4625_s6 + $0x130] sm:$0xff]  ;;  %v3380_v27 = vpop.eup %3379  ;;  %v1445_v48 = vmul.f32 %v1429_v3, %v4351_v61  ;;  %v1492_v29 = vmul.f32 0.7978846, %v1476_v22 }
 0x49a   :  { %v1522_v46 = vadd.f32 1.0, %v3380_v27  ;;  %v1903_v3 = vld [vmem:[#allocation2 + $0xf] sm:$0xff]  ;;  %v1904_v22 = vld [vmem:[#allocation2 + $0x17] sm:$0xff] }
 0x49b   :  { %v1864_v60 = vadd.f32 %v4333_v26, %v1552_v63  ;;  %v1461_v24 = vmul.f32 0.044715, %v1445_v48 }
 0x49c   :  { %2132 = vmatpush.bf16.msra.mxu1 %v3234_v4  ;;  %v1538_v53 = vmul.f32 0.5, %v1522_v46  ;;  %v1902_v4 = vld [vmem:[#allocation2 + $0x7] sm:$0xff] }
 0x49d   :  { %v1477_v20 = vadd.f32 %v1461_v24, %v4351_v61 }
 0x49e   :  { %v1776_v10 = vpop.f32.mrf.mxu3 }
 0x49f   :  { %v1877_v54 = vadd.f32 %v1861_v19, %v1776_v10  ;;  %v1493_v14 = vmul.f32 0.7978846, %v1477_v20 }
 0x4a0   :  { %v1992_v11 = vld [vmem:[#allocation2 + $0x31] sm:$0xff] }
 0x4a1   :  { %1893 = vst [vmem:[#allocation2 + $0x40] sm:$0xff] %v1877_v54  ;;  %2014 = vrot.lane.b32.xlu0 %v1992_v11, %s3439_s22  ;;  %1950 = vrot.lane.b32.xlu2 %v1877_v54, %s3438_s12  ;;  %v3233_v54 = vld [vmem:[%s4625_s6 + $0x128] sm:$0xff]  ;;  %v1553_v11 = vmul.f32 %v1537_v8, %v4305_v21 }
 0x4a2   :  { %2133 = vmatpush.bf16.msra.mxu1 %v3233_v54  ;;  %v1905_v54 = vld [vmem:[#allocation2 + $0x1f] sm:$0xff] }
 0x4a3   :  { %v1865_v55 = vadd.f32 %v4333_v26, %v1553_v11 }
 0x4a6   :  { %v1779_v58 = vpop.f32.mrf.mxu3  ;;  %2134 = vmatpush.bf16.msra.mxu1 %v3232_v32 }
 0x4a8   :  { %v1994_v23 = vld [vmem:[#allocation2 + $0x41] sm:$0xff]  ;;  %v1993_v57 = vld [vmem:[#allocation2 + $0x39] sm:$0xff] }
 0x4a9   :  { %2018 = vrot.lane.b32.xlu1 %v1994_v23, %s3439_s22  ;;  %2016 = vrot.lane.b32.xlu0 %v1993_v57, %s3439_s22  ;;  %v3231_v23 = vld [vmem:[%s4625_s6 + $0x118] sm:$0xff]  ;;  %v1554_v57 = vmul.f32 %v1538_v53, %v4316_v2  ;;  %v3229_v2 = vld [vmem:[%s4625_s6 + $0x108] sm:$0xff] }
 0x4aa   :  { %1952 = vrot.lane.b32.xlu2 %v4106_v33, %s3438_s12  ;;  %v1551_v33 = vmul.f32 %v1535_v39, %v4283_v36  ;;  %v1475_v36 = vadd.f32 %v1459_v12, %v4325_v25  ;;  %2135 = vmatpush.bf16.msra.mxu1 %v3231_v23 }
 0x4ab   :  { %v1866_v43 = vadd.f32 %v4333_v26, %v1554_v57 }
 0x4ac   :  { %v1863_v62 = vadd.f32 %v4333_v26, %v1551_v33  ;;  %v1491_v56 = vmul.f32 0.7978846, %v1475_v36 }
 0x4ae   :  { %v1780_v28 = vpop.f32.mrf.mxu3  ;;  %3381 = vtanh.f32 %v1491_v56  ;;  %2136 = vmatpush.bf16.msra.mxu1 %v3230_v30 }
 0x4af   :  { %v1878_v44 = vadd.f32 %v1862_v15, %v1780_v28  ;;  %3383 = vtanh.f32 %v1492_v29 }
 0x4b0   :  { %3385 = vtanh.f32 %v1493_v14 }
 0x4b1   :  { %1894 = vst [vmem:[#allocation2 + $0x50] sm:$0xff] %v1878_v44  ;;  %1954 = vrot.lane.b32.xlu0 %v1878_v44, %s3438_s12  ;;  %v3228_v44 = vld [vmem:[%s4625_s6 + $0x100] sm:$0xff] }
 0x4b2   :  { %2137 = vmatpush.bf16.msra.mxu1 %v3229_v2 }
 0x4b4   :  { %v3382_v18 = vpop.eup %3381 }
 0x4b5   :  { %v1523_v6 = vadd.f32 1.0, %v3382_v18  ;;  %v3384_v50 = vpop.eup %3383 }
 0x4b6   :  { %v1783_v7 = vpop.f32.mrf.mxu3  ;;  %v1524_v35 = vadd.f32 1.0, %v3384_v50  ;;  %v3386_v28 = vpop.eup %3385  ;;  %2138 = vmatpush.bf16.msra.mxu1 %v3228_v44  ;;  %v1909_v50 = vld [vmem:[#allocation2 + $0x3f] sm:$0xff] }
 0x4b7   :  { %v1879_v13 = vadd.f32 %v1863_v62, %v1783_v7  ;;  %v1539_v17 = vmul.f32 0.5, %v1523_v6  ;;  %v1525_v5 = vadd.f32 1.0, %v3386_v28 }
 0x4b8   :  { %v1995_v47 = vld [vmem:[#allocation2 + $0x49] sm:$0xff]  ;;  %v1540_v0 = vmul.f32 0.5, %v1524_v35 }
 0x4b9   :  { %1895 = vst [vmem:[#allocation2 + $0x58] sm:$0xff] %v1879_v13  ;;  %2020 = vrot.lane.b32.xlu1 %v1995_v47, %s3439_s22  ;;  %1956 = vrot.lane.b32.xlu0 %v1879_v13, %s3438_s12  ;;  %v1555_v39 = vmul.f32 %v1539_v17, %v4325_v25  ;;  %v1541_v52 = vmul.f32 0.5, %v1525_v5  ;;  %v1911_v5 = vld [vmem:[#allocation2 + $0x4f] sm:$0xff] }
 0x4ba   :  { %v1556_v25 = vmul.f32 %v1540_v0, %v4343_v59 }
 0x4bb   :  { %v1867_v31 = vadd.f32 %v4333_v26, %v1555_v39  ;;  %v1557_v37 = vmul.f32 %v1541_v52, %v4351_v61 }
 0x4bc   :  { %v1868_v42 = vadd.f32 %v4333_v26, %v1556_v25 }
 0x4bd   :  { %v1869_v13 = vadd.f32 %v4333_v26, %v1557_v37 }
 0x4be   :  { %v1785_v40 = vpop.f32.mrf.mxu3 }
 0x4bf   :  { %v1880_v19 = vadd.f32 %v1864_v60, %v1785_v40 }
 0x4c0   :  { %v1996_v10 = vld [vmem:[#allocation2 + $0x51] sm:$0xff] }
 0x4c1   :  { %1896 = vst [vmem:[#allocation2 + $0x60] sm:$0xff] %v1880_v19  ;;  %2022 = vrot.lane.b32.xlu2 %v1996_v10, %s3439_s22  ;;  %1958 = vrot.lane.b32.xlu1 %v1880_v19, %s3438_s12 }
 0x4c6   :  { %v1788_v45 = vpop.f32.mrf.mxu3 }
 0x4c7   :  { %v1881_v21 = vadd.f32 %v1865_v55, %v1788_v45  ;;  %v1906_v45 = vld [vmem:[#allocation2 + $0x27] sm:$0xff] }
 0x4c8   :  { %v1997_v58 = vld [vmem:[#allocation2 + $0x59] sm:$0xff] }
 0x4c9   :  { %1897 = vst [vmem:[#allocation2 + $0x68] sm:$0xff] %v1881_v21  ;;  %2024 = vrot.lane.b32.xlu2 %v1997_v58, %s3439_s22  ;;  %1960 = vrot.lane.b32.xlu1 %v1881_v21, %s3438_s12  ;;  %v1907_v21 = vld [vmem:[#allocation2 + $0x2f] sm:$0xff] }
 0x4cb   :  { %v1939_v63 = vpop.permute.xlu2 %1938 }
 0x4cc   :  { %v1971_v26 = vadd.f32 %v1939_v63, %v1903_v3 }
 0x4ce   :  { %v1790_v49 = vpop.f32.mrf.mxu3 }
 0x4cf   :  { %v1882_v51 = vadd.f32 %v1866_v43, %v1790_v49  ;;  %v1908_v49 = vld [vmem:[#allocation2 + $0x37] sm:$0xff] }
 0x4d0   :  { %v1998_v15 = vld [vmem:[#allocation2 + $0x61] sm:$0xff] }
 0x4d1   :  { %1898 = vst [vmem:[#allocation2 + $0x70] sm:$0xff] %v1882_v51  ;;  %2026 = vrot.lane.b32.xlu0 %v1998_v15, %s3439_s22  ;;  %1962 = vrot.lane.b32.xlu2 %v1882_v51, %s3438_s12 }
 0x4d3   :  { %v1941_v48 = vpop.permute.xlu2 %1940 }
 0x4d4   :  { %v1972_v11 = vadd.f32 %v1941_v48, %v1904_v22 }
 0x4d6   :  { %v1793_v33 = vpop.f32.mrf.mxu3 }
 0x4d7   :  { %v1883_v9 = vadd.f32 %v1867_v31, %v1793_v33  ;;  %v1910_v33 = vld [vmem:[#allocation2 + $0x47] sm:$0xff] }
 0x4d8   :  { %v1999_v12 = vld [vmem:[#allocation2 + $0x69] sm:$0xff] }
 0x4d9   :  { %1899 = vst [vmem:[#allocation2 + $0x78] sm:$0xff] %v1883_v9  ;;  %2028 = vrot.lane.b32.xlu0 %v1999_v12, %s3439_s22  ;;  %1964 = vrot.lane.b32.xlu2 %v1883_v9, %s3438_s12 }
 0x4db   :  { %v1937_v16 = vpop.permute.xlu1 %1936 }
 0x4dc   :  { %v1970_v34 = vadd.f32 %v1937_v16, %v1902_v4 }
 0x4de   :  { %v1795_v62 = vpop.f32.mrf.mxu3 }
 0x4df   :  { %v1884_v38 = vadd.f32 %v1868_v42, %v1795_v62 }
 0x4e0   :  { %v2000_v7 = vld [vmem:[#allocation2 + $0x71] sm:$0xff] }
 0x4e1   :  { %1900 = vst [vmem:[#allocation2 + $0x80] sm:$0xff] %v1884_v38  ;;  %2030 = vrot.lane.b32.xlu1 %v2000_v7, %s3439_s22  ;;  %1966 = vrot.lane.b32.xlu0 %v1884_v38, %s3438_s12  ;;  %v1912_v7 = vld [vmem:[#allocation2 + $0x57] sm:$0xff] }
 0x4e6   :  { %v1798_v47 = vpop.f32.mrf.mxu3 }
 0x4e7   :  { %v1885_v36 = vadd.f32 %v1869_v13, %v1798_v47 }
 0x4e8   :  { %v2001_v59 = vld [vmem:[#allocation2 + $0x79] sm:$0xff] }
 0x4e9   :  { %1901 = vst [vmem:[#allocation2 + $0x88] sm:$0xff] %v1885_v36  ;;  %2032 = vrot.lane.b32.xlu1 %v2001_v59, %s3439_s22  ;;  %1968 = vrot.lane.b32.xlu0 %v1885_v36, %s3438_s12  ;;  %v1913_v36 = vld [vmem:[#allocation2 + $0x5f] sm:$0xff] }
 0x4eb   :  { %v2005_v56 = vpop.permute.xlu0 %2004  ;;  %v2011_v32 = vpop.permute.xlu2 %2010 }
 0x4ec   :  { %v2038_v8 = vadd.f32 %v2005_v56, %v1970_v34  ;;  %v1915_v56 = vld [vmem:[#allocation2 + $0x6f] sm:$0xff] }
 0x4ee   :  { %v1800_v41 = vpop.f32.mrf.mxu3 }
 0x4f0   :  { %v2003_v61 = vld [vmem:[#allocation2 + $0x89] sm:$0xff]  ;;  %v2002_v1 = vld [vmem:[#allocation2 + $0x81] sm:$0xff] }
 0x4f1   :  { %2036 = vrot.lane.b32.xlu1 %v2003_v61, %s3439_s22  ;;  %2034 = vrot.lane.b32.xlu2 %v2002_v1, %s3439_s22 }
 0x4f3   :  { %v2007_v60 = vpop.permute.xlu1 %2006  ;;  %v1943_v19 = vpop.permute.xlu0 %1942 }
 0x4f4   :  { %v2039_v27 = vadd.f32 %v2007_v60, %v1971_v26  ;;  %v1973_v46 = vadd.f32 %v1943_v19, %v1905_v54  ;;  %v2013_v23 = vpop.permute.xlu2 %2012  ;;  %v1914_v26 = vld [vmem:[#allocation2 + $0x67] sm:$0xff]  ;;  %v1916_v54 = vld [vmem:[#allocation2 + $0x77] sm:$0xff] }
 0x4f6   :  { %v2055_v40 = vpack.c.bf16 %v2039_v27, %v2038_v8  ;;  %v2041_v29 = vadd.f32 %v2011_v32, %v1973_v46  ;;  %v1917_v46 = vld [vmem:[#allocation2 + $0x7f] sm:$0xff] }
 0x4f8   :  { %2139 = vmatmul.bf16.vlgmr.msra.gmra.mxu1 %v2055_v40 }
 0x4fb   :  { %v2009_v10 = vpop.permute.xlu1 %2008  ;;  %v1945_v53 = vpop.permute.xlu0 %1944 }
 0x4fc   :  { %v2040_v24 = vadd.f32 %v2009_v10, %v1972_v11  ;;  %v1974_v20 = vadd.f32 %v1945_v53, %v1906_v45  ;;  %v1951_v17 = vpop.permute.xlu2 %1950 }
 0x4fd   :  { %v1977_v15 = vadd.f32 %v1951_v17, %v1909_v50 }
 0x4fe   :  { %v2056_v55 = vpack.c.bf16 %v2041_v29, %v2040_v24  ;;  %v2042_v6 = vadd.f32 %v2013_v23, %v1974_v20  ;;  %v1918_v20 = vld [vmem:[#allocation2 + $0x87] sm:$0xff] }
 0x503   :  { %v1947_v18 = vpop.permute.xlu1 %1946 }
 0x504   :  { %v1975_v58 = vadd.f32 %v1947_v18, %v1907_v21  ;;  %v1953_v31 = vpop.permute.xlu2 %1952 }
 0x505   :  { %v1978_v12 = vadd.f32 %v1953_v31, %v1910_v33 }
 0x508   :  { %2144 = vmatmul.bf16.gmra.mxu1 %v2056_v55 }
 0x50b   :  { %v1949_v43 = vpop.permute.xlu1 %1948 }
 0x50c   :  { %v1976_v39 = vadd.f32 %v1949_v43, %v1908_v49 }
 0x513   :  { %v2015_v57 = vpop.permute.xlu0 %2014 }
 0x514   :  { %v2043_v14 = vadd.f32 %v2015_v57, %v1975_v58  ;;  %v4415_v57 = vld [vmem:[%s4626_s7 + $0x4] ss:$0 sm:$0xff] }
 0x516   :  { %v2057_v30 = vpack.c.bf16 %v2043_v14, %v2042_v6 }
 0x518   :  { %2149 = vmatmul.bf16.gmra.mxu1 %v2057_v30 }
 0x51b   :  { %v2019_v2 = vpop.permute.xlu1 %2018  ;;  %v2017_v51 = vpop.permute.xlu0 %2016 }
 0x51c   :  { %v2045_v35 = vadd.f32 %v2019_v2, %v1977_v15  ;;  %v2044_v28 = vadd.f32 %v2017_v51, %v1976_v39  ;;  %v2023_v42 = vpop.permute.xlu2 %2022 }
 0x51e   :  { %v2058_v44 = vpack.c.bf16 %v2045_v35, %v2044_v28 }
 0x523   :  { %v1955_v0 = vpop.permute.xlu0 %1954 }
 0x524   :  { %v1979_v25 = vadd.f32 %v1955_v0, %v1911_v5  ;;  %v2025_v16 = vpop.permute.xlu2 %2024 }
 0x526   :  { %v2047_v62 = vadd.f32 %v2023_v42, %v1979_v25 }
 0x528   :  { %2154 = vmatmul.bf16.gmra.mxu1 %v2058_v44 }
 0x52b   :  { %v2021_v9 = vpop.permute.xlu1 %2020  ;;  %v1957_v37 = vpop.permute.xlu0 %1956 }
 0x52c   :  { %v2046_v52 = vadd.f32 %v2021_v9, %v1978_v12  ;;  %v1980_v47 = vadd.f32 %v1957_v37, %v1912_v7  ;;  %v1963_v4 = vpop.permute.xlu2 %1962 }
 0x52d   :  { %v1983_v60 = vadd.f32 %v1963_v4, %v1915_v56 }
 0x52e   :  { %v2059_v38 = vpack.c.bf16 %v2047_v62, %v2046_v52  ;;  %v2048_v63 = vadd.f32 %v2025_v16, %v1980_v47 }
 0x533   :  { %v1959_v13 = vpop.permute.xlu1 %1958 }
 0x534   :  { %v1981_v59 = vadd.f32 %v1959_v13, %v1913_v36  ;;  %v1965_v22 = vpop.permute.xlu2 %1964 }
 0x535   :  { %v1984_v24 = vadd.f32 %v1965_v22, %v1916_v54 }
 0x538   :  { %2159 = vmatmul.bf16.gmra.mxu1 %v2059_v38 }
 0x53b   :  { %v1961_v3 = vpop.permute.xlu1 %1960 }
 0x53c   :  { %v1982_v8 = vadd.f32 %v1961_v3, %v1914_v26 }
 0x543   :  { %v2027_v41 = vpop.permute.xlu0 %2026 }
 0x544   :  { %v2049_v61 = vadd.f32 %v2027_v41, %v1981_v59 }
 0x546   :  { %v2060_v1 = vpack.c.bf16 %v2049_v61, %v2048_v63 }
 0x548   :  { %2163 = vmatmul.bf16.gmra.mxu1 %v2060_v1 }
 0x54b   :  { %v2029_v34 = vpop.permute.xlu0 %2028  ;;  %v2035_v55 = vpop.permute.xlu2 %2034 }
 0x54c   :  { %v2050_v40 = vadd.f32 %v2029_v34, %v1982_v8 }
 0x553   :  { %v2031_v27 = vpop.permute.xlu1 %2030  ;;  %v1967_v10 = vpop.permute.xlu0 %1966 }
 0x554   :  { %v2051_v48 = vadd.f32 %v2031_v27, %v1983_v60  ;;  %v1985_v32 = vadd.f32 %v1967_v10, %v1917_v46 }
 0x556   :  { %v2061_v19 = vpack.c.bf16 %v2051_v48, %v2050_v40  ;;  %v2053_v53 = vadd.f32 %v2035_v55, %v1985_v32 }
 0x558   :  { %2168 = vmatmul.bf16.gmra.mxu1 %v2061_v19 }
 0x55b   :  { %v2033_v11 = vpop.permute.xlu1 %2032  ;;  %v1969_v45 = vpop.permute.xlu0 %1968 }
 0x55c   :  { %v2052_v29 = vadd.f32 %v2033_v11, %v1984_v24  ;;  %v1986_v58 = vadd.f32 %v1969_v45, %v1918_v20 }
 0x55e   :  { %v2062_v18 = vpack.c.bf16 %v2053_v53, %v2052_v29 }
 0x563   :  { %v2037_v21 = vpop.permute.xlu1 %2036 }
 0x564   :  { %v2054_v23 = vadd.f32 %v2037_v21, %v1986_v58 }
 0x566   :  { %v2063_v14 = vpack.c.bf16 %v2054_v23, %v2054_v23 }
 0x568   :  { %2173 = vmatmul.bf16.gmra.mxu1 %v2062_v18 }
 0x575   :  { %v2140_v6 = vpop.f32.mrf.mxu1 }
 0x576   :  { %v2141_v30 = vadd.f32 %v4415_v57, %v2140_v6 }
 0x578   :  { %v2183_v43 = vmul.f32 %v2141_v30, %v2141_v30  ;;  %2178 = vmatmul.bf16.gmra.mxu1 %v2063_v14 }
 0x57a   :  { %v2199_v17 = vmul.f32 %v2183_v43, %v2141_v30 }
 0x57c   :  { %v2215_v50 = vmul.f32 0.044715, %v2199_v17 }
 0x57d   :  { %v2142_v49 = vpop.f32.mrf.mxu1 }
 0x57e   :  { %v2231_v2 = vadd.f32 %v2215_v50, %v2141_v30  ;;  %v2143_v51 = vadd.f32 %v4415_v57, %v2142_v49 }
 0x580   :  { %v2247_v15 = vmul.f32 0.7978846, %v2231_v2  ;;  %v2184_v39 = vmul.f32 %v2143_v51, %v2143_v51 }
 0x582   :  { %3387 = vtanh.f32 %v2247_v15  ;;  %v2200_v35 = vmul.f32 %v2184_v39, %v2143_v51 }
 0x584   :  { %v2216_v28 = vmul.f32 0.044715, %v2200_v35 }
 0x585   :  { %v2145_v44 = vpop.f32.mrf.mxu1 }
 0x586   :  { %v2232_v31 = vadd.f32 %v2216_v28, %v2143_v51  ;;  %v2146_v0 = vadd.f32 %v4415_v57, %v2145_v44 }
 0x588   :  { %v3388_v33 = vpop.eup %3387  ;;  %v2248_v9 = vmul.f32 0.7978846, %v2232_v31  ;;  %v2185_v5 = vmul.f32 %v2146_v0, %v2146_v0 }
 0x589   :  { %v2279_v12 = vadd.f32 1.0, %v3388_v33 }
 0x58a   :  { %3389 = vtanh.f32 %v2248_v9  ;;  %v2201_v25 = vmul.f32 %v2185_v5, %v2146_v0 }
 0x58b   :  { %v2295_v52 = vmul.f32 0.5, %v2279_v12 }
 0x58c   :  { %v2217_v42 = vmul.f32 0.044715, %v2201_v25 }
 0x58d   :  { %v2311_v62 = vmul.f32 %v2295_v52, %v2141_v30  ;;  %v2147_v38 = vpop.f32.mrf.mxu1 }
 0x58e   :  { %v2233_v37 = vadd.f32 %v2217_v42, %v2146_v0  ;;  %v2148_v7 = vadd.f32 %v4415_v57, %v2147_v38 }
 0x58f   :  { %2327 = vst [vmem:[#allocation2 + $0x8] sm:$0xff] %v2311_v62  ;;  %2377 = vrot.lane.b32.xlu2 %v2311_v62, %s3438_s12 }
 0x590   :  { %v3390_v13 = vpop.eup %3389  ;;  %v2249_v47 = vmul.f32 0.7978846, %v2233_v37  ;;  %v2186_v36 = vmul.f32 %v2148_v7, %v2148_v7 }
 0x591   :  { %v2280_v59 = vadd.f32 1.0, %v3390_v13 }
 0x592   :  { %3391 = vtanh.f32 %v2249_v47  ;;  %v2202_v16 = vmul.f32 %v2186_v36, %v2148_v7 }
 0x593   :  { %v2296_v41 = vmul.f32 0.5, %v2280_v59 }
 0x594   :  { %v2218_v63 = vmul.f32 0.044715, %v2202_v16 }
 0x595   :  { %v2312_v61 = vmul.f32 %v2296_v41, %v2143_v51  ;;  %v2150_v1 = vpop.f32.mrf.mxu1 }
 0x596   :  { %v2234_v3 = vadd.f32 %v2218_v63, %v2148_v7  ;;  %v2151_v4 = vadd.f32 %v4415_v57, %v2150_v1 }
 0x597   :  { %2328 = vst [vmem:[#allocation2 + $0x10] sm:$0xff] %v2312_v61  ;;  %2379 = vrot.lane.b32.xlu0 %v2312_v61, %s3438_s12 }
 0x598   :  { %v3392_v56 = vpop.eup %3391  ;;  %v2250_v26 = vmul.f32 0.7978846, %v2234_v3  ;;  %v2187_v34 = vmul.f32 %v2151_v4, %v2151_v4 }
 0x599   :  { %v2281_v60 = vadd.f32 1.0, %v3392_v56 }
 0x59a   :  { %3393 = vtanh.f32 %v2250_v26  ;;  %v2203_v8 = vmul.f32 %v2187_v34, %v2151_v4 }
 0x59b   :  { %v2297_v27 = vmul.f32 0.5, %v2281_v60 }
 0x59c   :  { %v2219_v40 = vmul.f32 0.044715, %v2203_v8 }
 0x59d   :  { %v2313_v48 = vmul.f32 %v2297_v27, %v2146_v0  ;;  %v2152_v19 = vpop.f32.mrf.mxu1 }
 0x59e   :  { %v2235_v22 = vadd.f32 %v2219_v40, %v2151_v4  ;;  %v2153_v10 = vadd.f32 %v4415_v57, %v2152_v19  ;;  %v2428_v54 = vld [vmem:[#allocation2 + $0x9] sm:$0xff] }
 0x59f   :  { %2329 = vst [vmem:[#allocation2 + $0x18] sm:$0xff] %v2313_v48  ;;  %2445 = vrot.lane.b32.xlu1 %v2428_v54, %s3439_s22  ;;  %2381 = vrot.lane.b32.xlu0 %v2313_v48, %s3438_s12  ;;  %v3421_v54 = vld [vmem:[#allocation2 + $0x48] sm:$0xff] }
 0x5a0   :  { %v3394_v11 = vpop.eup %3393  ;;  %v2251_v46 = vmul.f32 0.7978846, %v2235_v22  ;;  %v2188_v24 = vmul.f32 %v2153_v10, %v2153_v10 }
 0x5a1   :  { %v2282_v32 = vadd.f32 1.0, %v3394_v11 }
 0x5a2   :  { %3395 = vtanh.f32 %v2251_v46  ;;  %v2204_v29 = vmul.f32 %v2188_v24, %v2153_v10 }
 0x5a3   :  { %v2298_v55 = vmul.f32 0.5, %v2282_v32 }
 0x5a4   :  { %v2220_v53 = vmul.f32 0.044715, %v2204_v29 }
 0x5a5   :  { %v2314_v18 = vmul.f32 %v2298_v55, %v2148_v7  ;;  %v2155_v45 = vpop.f32.mrf.mxu1 }
 0x5a6   :  { %v2236_v20 = vadd.f32 %v2220_v53, %v2153_v10  ;;  %v2156_v21 = vadd.f32 %v4415_v57, %v2155_v45  ;;  %v2429_v58 = vld [vmem:[#allocation2 + $0x11] sm:$0xff] }
 0x5a7   :  { %2330 = vst [vmem:[#allocation2 + $0x20] sm:$0xff] %v2314_v18  ;;  %2447 = vrot.lane.b32.xlu2 %v2429_v58, %s3439_s22  ;;  %2383 = vrot.lane.b32.xlu1 %v2314_v18, %s3438_s12 }
 0x5a8   :  { %v3396_v23 = vpop.eup %3395  ;;  %v2252_v6 = vmul.f32 0.7978846, %v2236_v20  ;;  %v2189_v14 = vmul.f32 %v2156_v21, %v2156_v21 }
 0x5a9   :  { %v2283_v30 = vadd.f32 1.0, %v3396_v23  ;;  %v3243_v23 = vld [vmem:[%s4625_s6 + $0x178] sm:$0xff] }
 0x5aa   :  { %3397 = vtanh.f32 %v2252_v6  ;;  %v2205_v43 = vmul.f32 %v2189_v14, %v2156_v21  ;;  %2572 = vmatpush.bf16.msrb.mxu0 %v3243_v23  ;;  %3286 = vmatpush.bf16.msra.mxu2 %v3243_v23 }
 0x5ab   :  { %v2299_v17 = vmul.f32 0.5, %v2283_v30 }
 0x5ac   :  { %v2221_v50 = vmul.f32 0.044715, %v2205_v43 }
 0x5ad   :  { %v2315_v49 = vmul.f32 %v2299_v17, %v2151_v4  ;;  %v2157_v2 = vpop.f32.mrf.mxu1 }
 0x5ae   :  { %v2237_v51 = vadd.f32 %v2221_v50, %v2156_v21  ;;  %v2158_v15 = vadd.f32 %v4415_v57, %v2157_v2  ;;  %v2430_v39 = vld [vmem:[#allocation2 + $0x19] sm:$0xff]  ;;  %v3242_v50 = vld [vmem:[%s4625_s6 + $0x170] sm:$0xff] }
 0x5af   :  { %2331 = vst [vmem:[#allocation2 + $0x28] sm:$0xff] %v2315_v49  ;;  %2449 = vrot.lane.b32.xlu2 %v2430_v39, %s3439_s22  ;;  %2385 = vrot.lane.b32.xlu1 %v2315_v49, %s3438_s12 }
 0x5b0   :  { %v3398_v35 = vpop.eup %3397  ;;  %v2253_v28 = vmul.f32 0.7978846, %v2237_v51  ;;  %v2190_v44 = vmul.f32 %v2158_v15, %v2158_v15  ;;  %2573 = vmatpush.bf16.msrb.mxu0 %v3242_v50  ;;  %3287 = vmatpush.bf16.msra.mxu2 %v3242_v50 }
 0x5b1   :  { %v2284_v31 = vadd.f32 1.0, %v3398_v35 }
 0x5b2   :  { %3399 = vtanh.f32 %v2253_v28  ;;  %v2206_v0 = vmul.f32 %v2190_v44, %v2158_v15  ;;  %v3241_v44 = vld [vmem:[%s4625_s6 + $0x168] sm:$0xff] }
 0x5b3   :  { %v2300_v33 = vmul.f32 0.5, %v2284_v31 }
 0x5b4   :  { %v2222_v9 = vmul.f32 0.044715, %v2206_v0  ;;  %2574 = vmatpush.bf16.msrb.mxu0 %v3241_v44  ;;  %3288 = vmatpush.bf16.msra.mxu2 %v3241_v44  ;;  %v2344_v44 = vld [vmem:[#allocation2 + $0xf] sm:$0xff] }
 0x5b5   :  { %v2316_v5 = vmul.f32 %v2300_v33, %v2153_v10  ;;  %v2160_v12 = vpop.f32.mrf.mxu1 }
 0x5b6   :  { %v2238_v25 = vadd.f32 %v2222_v9, %v2158_v15  ;;  %v2431_v52 = vld [vmem:[#allocation2 + $0x21] sm:$0xff] }
 0x5b7   :  { %2332 = vst [vmem:[#allocation2 + $0x30] sm:$0xff] %v2316_v5  ;;  %2451 = vrot.lane.b32.xlu0 %v2431_v52, %s3439_s22  ;;  %2387 = vrot.lane.b32.xlu2 %v2316_v5, %s3438_s12  ;;  %v3240_v12 = vld [vmem:[%s4625_s6 + $0x160] sm:$0xff] }
 0x5b8   :  { %v3400_v42 = vpop.eup %3399  ;;  %v2254_v62 = vmul.f32 0.7978846, %v2238_v25  ;;  %2575 = vmatpush.bf16.msrb.mxu0 %v3240_v12  ;;  %3289 = vmatpush.bf16.msra.mxu2 %v3240_v12 }
 0x5b9   :  { %v2285_v38 = vadd.f32 1.0, %v3400_v42 }
 0x5ba   :  { %3401 = vtanh.f32 %v2254_v62 }
 0x5bb   :  { %v2301_v37 = vmul.f32 0.5, %v2285_v38 }
 0x5bd   :  { %v2317_v7 = vmul.f32 %v2301_v37, %v2156_v21  ;;  %v2161_v13 = vpop.f32.mrf.mxu1 }
 0x5be   :  { %v2162_v47 = vadd.f32 %v4415_v57, %v2161_v13  ;;  %v2432_v36 = vld [vmem:[#allocation2 + $0x29] sm:$0xff] }
 0x5bf   :  { %2333 = vst [vmem:[#allocation2 + $0x38] sm:$0xff] %v2317_v7  ;;  %2453 = vrot.lane.b32.xlu0 %v2432_v36, %s3439_s22  ;;  %2389 = vrot.lane.b32.xlu2 %v2317_v7, %s3438_s12  ;;  %v3239_v7 = vld [vmem:[%s4625_s6 + $0x158] sm:$0xff] }
 0x5c0   :  { %v3402_v59 = vpop.eup %3401  ;;  %v2191_v16 = vmul.f32 %v2162_v47, %v2162_v47  ;;  %2576 = vmatpush.bf16.msrb.mxu0 %v3239_v7  ;;  %3290 = vmatpush.bf16.msra.mxu2 %v3239_v7 }
 0x5c1   :  { %v2286_v41 = vadd.f32 1.0, %v3402_v59 }
 0x5c2   :  { %v2207_v63 = vmul.f32 %v2191_v16, %v2162_v47 }
 0x5c3   :  { %v2302_v61 = vmul.f32 0.5, %v2286_v41  ;;  %v3238_v41 = vld [vmem:[%s4625_s6 + $0x150] sm:$0xff] }
 0x5c4   :  { %v2223_v1 = vmul.f32 0.044715, %v2207_v63  ;;  %2577 = vmatpush.bf16.msrb.mxu0 %v3238_v41  ;;  %3291 = vmatpush.bf16.msra.mxu2 %v3238_v41 }
 0x5c5   :  { %v2318_v3 = vmul.f32 %v2302_v61, %v2158_v15  ;;  %v2164_v4 = vpop.f32.mrf.mxu1 }
 0x5c6   :  { %v2239_v56 = vadd.f32 %v2223_v1, %v2162_v47  ;;  %v2165_v26 = vadd.f32 %v4415_v57, %v2164_v4  ;;  %v2433_v34 = vld [vmem:[#allocation2 + $0x31] sm:$0xff] }
 0x5c7   :  { %2334 = vst [vmem:[#allocation2 + $0x40] sm:$0xff] %v2318_v3  ;;  %2455 = vrot.lane.b32.xlu1 %v2433_v34, %s3439_s22  ;;  %2391 = vrot.lane.b32.xlu0 %v2318_v3, %s3438_s12 }
 0x5c8   :  { %v2255_v60 = vmul.f32 0.7978846, %v2239_v56  ;;  %v2192_v8 = vmul.f32 %v2165_v26, %v2165_v26 }
 0x5ca   :  { %3403 = vtanh.f32 %v2255_v60  ;;  %v2208_v27 = vmul.f32 %v2192_v8, %v2165_v26 }
 0x5cc   :  { %v2224_v40 = vmul.f32 0.044715, %v2208_v27 }
 0x5cd   :  { %v2166_v48 = vpop.f32.mrf.mxu1 }
 0x5ce   :  { %v2240_v19 = vadd.f32 %v2224_v40, %v2165_v26  ;;  %v2167_v22 = vadd.f32 %v4415_v57, %v2166_v48  ;;  %v2435_v10 = vld [vmem:[#allocation2 + $0x41] sm:$0xff]  ;;  %v2434_v58 = vld [vmem:[#allocation2 + $0x39] sm:$0xff] }
 0x5cf   :  { %2393 = vrot.lane.b32.xlu1 %v3421_v54, %s3438_s12  ;;  %2459 = vrot.lane.b32.xlu2 %v2435_v10, %s3439_s22  ;;  %v3236_v48 = vld [vmem:[%s4625_s6 + $0x140] sm:$0xff] }
 0x5d0   :  { %v3404_v11 = vpop.eup %3403  ;;  %v2256_v46 = vmul.f32 0.7978846, %v2240_v19  ;;  %v2193_v24 = vmul.f32 %v2167_v22, %v2167_v22 }
 0x5d1   :  { %v2287_v32 = vadd.f32 1.0, %v3404_v11 }
 0x5d2   :  { %3405 = vtanh.f32 %v2256_v46  ;;  %v2209_v29 = vmul.f32 %v2193_v24, %v2167_v22 }
 0x5d3   :  { %v2303_v55 = vmul.f32 0.5, %v2287_v32 }
 0x5d4   :  { %v2225_v53 = vmul.f32 0.044715, %v2209_v29 }
 0x5d5   :  { %v2319_v18 = vmul.f32 %v2303_v55, %v2162_v47  ;;  %v2169_v45 = vpop.f32.mrf.mxu1 }
 0x5d6   :  { %v2241_v20 = vadd.f32 %v2225_v53, %v2167_v22  ;;  %v2170_v21 = vadd.f32 %v4415_v57, %v2169_v45 }
 0x5d7   :  { %2335 = vst [vmem:[#allocation2 + $0x50] sm:$0xff] %v2319_v18  ;;  %2457 = vrot.lane.b32.xlu1 %v2434_v58, %s3439_s22  ;;  %2395 = vrot.lane.b32.xlu2 %v2319_v18, %s3438_s12 }
 0x5d8   :  { %v3406_v6 = vpop.eup %3405  ;;  %v2257_v14 = vmul.f32 0.7978846, %v2241_v20  ;;  %v2194_v30 = vmul.f32 %v2170_v21, %v2170_v21 }
 0x5d9   :  { %v2288_v43 = vadd.f32 1.0, %v3406_v6 }
 0x5da   :  { %3407 = vtanh.f32 %v2257_v14  ;;  %v2210_v17 = vmul.f32 %v2194_v30, %v2170_v21 }
 0x5db   :  { %v2304_v49 = vmul.f32 0.5, %v2288_v43 }
 0x5dc   :  { %v2226_v2 = vmul.f32 0.044715, %v2210_v17 }
 0x5dd   :  { %v4453_v51 = vmul.f32 %v2304_v49, %v2165_v26  ;;  %v2171_v15 = vpop.f32.mrf.mxu1  ;;  %v3237_v26 = vld [vmem:[%s4625_s6 + $0x148] sm:$0xff] }
 0x5de   :  { %v2242_v39 = vadd.f32 %v2226_v2, %v2170_v21  ;;  %v2172_v35 = vadd.f32 %v4415_v57, %v2171_v15  ;;  %v2436_v28 = vld [vmem:[#allocation2 + $0x49] sm:$0xff]  ;;  %2578 = vmatpush.bf16.msrb.mxu0 %v3237_v26  ;;  %3292 = vmatpush.bf16.msra.mxu2 %v3237_v26 }
 0x5df   :  { %2336 = vst [vmem:[#allocation2 + $0x58] sm:$0xff] %v4453_v51  ;;  %2461 = vrot.lane.b32.xlu0 %v2436_v28, %s3439_s22  ;;  %v2348_v26 = vld [vmem:[#allocation2 + $0x2f] sm:$0xff] }
 0x5e0   :  { %v3408_v31 = vpop.eup %3407  ;;  %v2258_v0 = vmul.f32 0.7978846, %v2242_v39  ;;  %v2195_v33 = vmul.f32 %v2172_v35, %v2172_v35 }
 0x5e1   :  { %v2289_v9 = vadd.f32 1.0, %v3408_v31 }
 0x5e2   :  { %3409 = vtanh.f32 %v2258_v0  ;;  %v2211_v5 = vmul.f32 %v2195_v33, %v2172_v35  ;;  %2579 = vmatpush.bf16.msrb.mxu0 %v3236_v48  ;;  %3293 = vmatpush.bf16.msra.mxu2 %v3236_v48  ;;  %v2343_v33 = vld [vmem:[#allocation2 + $0x7] sm:$0xff] }
 0x5e3   :  { %v2305_v25 = vmul.f32 0.5, %v2289_v9 }
 0x5e4   :  { %v2227_v52 = vmul.f32 0.044715, %v2211_v5 }
 0x5e5   :  { %v4464_v42 = vmul.f32 %v2305_v25, %v2167_v22  ;;  %v2174_v62 = vpop.f32.mrf.mxu1 }
 0x5e6   :  { %v2243_v38 = vadd.f32 %v2227_v52, %v2172_v35  ;;  %v2175_v37 = vadd.f32 %v4415_v57, %v2174_v62  ;;  %v2437_v6 = vld [vmem:[#allocation2 + $0x51] sm:$0xff] }
 0x5e7   :  { %2337 = vst [vmem:[#allocation2 + $0x60] sm:$0xff] %v4464_v42 }
 0x5e8   :  { %v3410_v13 = vpop.eup %3409  ;;  %v2259_v47 = vmul.f32 0.7978846, %v2243_v38  ;;  %v2196_v36 = vmul.f32 %v2175_v37, %v2175_v37 }
 0x5e9   :  { %v2290_v59 = vadd.f32 1.0, %v3410_v13  ;;  %v2378_v2 = vpop.permute.xlu2 %2377  ;;  %v2345_v13 = vld [vmem:[#allocation2 + $0x17] sm:$0xff] }
 0x5ea   :  { %3411 = vtanh.f32 %v2259_v47  ;;  %v2212_v16 = vmul.f32 %v2196_v36, %v2175_v37  ;;  %v2411_v9 = vadd.f32 %v2378_v2, %v2343_v33 }
 0x5eb   :  { %v2306_v63 = vmul.f32 0.5, %v2290_v59  ;;  %v2346_v59 = vld [vmem:[#allocation2 + $0x1f] sm:$0xff] }
 0x5ec   :  { %v2228_v61 = vmul.f32 0.044715, %v2212_v16 }
 0x5ed   :  { %v2322_v1 = vmul.f32 %v2306_v63, %v2170_v21  ;;  %v2176_v3 = vpop.f32.mrf.mxu1 }
 0x5ee   :  { %v2244_v4 = vadd.f32 %v2228_v61, %v2175_v37  ;;  %v2177_v56 = vadd.f32 %v4415_v57, %v2176_v3 }
 0x5ef   :  { %2338 = vst [vmem:[#allocation2 + $0x68] sm:$0xff] %v2322_v1  ;;  %2401 = vrot.lane.b32.xlu0 %v2322_v1, %s3438_s12 }
 0x5f0   :  { %v3412_v34 = vpop.eup %3411  ;;  %v2260_v60 = vmul.f32 0.7978846, %v2244_v4  ;;  %v2197_v8 = vmul.f32 %v2177_v56, %v2177_v56 }
 0x5f1   :  { %v2291_v27 = vadd.f32 1.0, %v3412_v34  ;;  %v2347_v34 = vld [vmem:[#allocation2 + $0x27] sm:$0xff] }
 0x5f2   :  { %3413 = vtanh.f32 %v2260_v60  ;;  %v2213_v40 = vmul.f32 %v2197_v8, %v2177_v56 }
 0x5f3   :  { %v2307_v19 = vmul.f32 0.5, %v2291_v27 }
 0x5f4   :  { %v2229_v22 = vmul.f32 0.044715, %v2213_v40 }
 0x5f5   :  { %v2323_v10 = vmul.f32 %v2307_v19, %v2172_v35  ;;  %v2179_v54 = vpop.f32.mrf.mxu1 }
 0x5f6   :  { %v2245_v11 = vadd.f32 %v2229_v22, %v2177_v56  ;;  %v2180_v46 = vadd.f32 %v4415_v57, %v2179_v54 }
 0x5f7   :  { %2339 = vst [vmem:[#allocation2 + $0x70] sm:$0xff] %v2323_v10  ;;  %2403 = vrot.lane.b32.xlu1 %v2323_v10, %s3438_s12 }
 0x5f8   :  { %v3414_v24 = vpop.eup %3413  ;;  %v2261_v32 = vmul.f32 0.7978846, %v2245_v11  ;;  %v2198_v29 = vmul.f32 %v2180_v46, %v2180_v46 }
 0x5f9   :  { %v2292_v55 = vadd.f32 1.0, %v3414_v24 }
 0x5fa   :  { %3415 = vtanh.f32 %v2261_v32  ;;  %v2214_v53 = vmul.f32 %v2198_v29, %v2180_v46  ;;  %v2349_v32 = vld [vmem:[#allocation2 + $0x37] sm:$0xff] }
 0x5fb   :  { %v2308_v18 = vmul.f32 0.5, %v2292_v55 }
 0x5fc   :  { %v2230_v45 = vmul.f32 0.044715, %v2214_v53 }
 0x5fd   :  { %v2324_v20 = vmul.f32 %v2308_v18, %v2175_v37  ;;  %v2181_v21 = vpop.f32.mrf.mxu1  ;;  %v2439_v37 = vld [vmem:[#allocation2 + $0x61] sm:$0xff] }
 0x5fe   :  { %v2246_v58 = vadd.f32 %v2230_v45, %v2180_v46  ;;  %v2440_v23 = vld [vmem:[#allocation2 + $0x69] sm:$0xff] }
 0x5ff   :  { %2340 = vst [vmem:[#allocation2 + $0x78] sm:$0xff] %v2324_v20  ;;  %2469 = vrot.lane.b32.xlu2 %v2440_v23, %s3439_s22  ;;  %2463 = vrot.lane.b32.xlu1 %v2437_v6, %s3439_s22  ;;  %v2352_v6 = vld [vmem:[#allocation2 + $0x4f] sm:$0xff] }
 0x600   :  { %v3416_v57 = vpop.eup %3415  ;;  %v2262_v14 = vmul.f32 0.7978846, %v2246_v58 }
 0x601   :  { %v2293_v30 = vadd.f32 1.0, %v3416_v57  ;;  %v2448_v5 = vpop.permute.xlu2 %2447  ;;  %v2351_v57 = vld [vmem:[#allocation2 + $0x47] sm:$0xff] }
 0x602   :  { %3417 = vtanh.f32 %v2262_v14 }
 0x603   :  { %v2309_v43 = vmul.f32 0.5, %v2293_v30 }
 0x605   :  { %v2325_v17 = vmul.f32 %v2309_v43, %v2177_v56 }
 0x606   :  { %v2441_v50 = vld [vmem:[#allocation2 + $0x71] sm:$0xff] }
 0x607   :  { %2341 = vst [vmem:[#allocation2 + $0x80] sm:$0xff] %v2325_v17  ;;  %2405 = vrot.lane.b32.xlu2 %v2324_v20, %s3438_s12  ;;  %2471 = vrot.lane.b32.xlu0 %v2441_v50, %s3439_s22 }
 0x608   :  { %v3418_v49 = vpop.eup %3417 }
 0x609   :  { %v2294_v15 = vadd.f32 1.0, %v3418_v49  ;;  %v2380_v35 = vpop.permute.xlu0 %2379 }
 0x60a   :  { %v2412_v0 = vadd.f32 %v2380_v35, %v2344_v44 }
 0x60b   :  { %v2310_v39 = vmul.f32 0.5, %v2294_v15 }
 0x60c   :  { %v2480_v52 = vadd.f32 %v2448_v5, %v2412_v0 }
 0x60d   :  { %v2326_v28 = vmul.f32 %v2310_v39, %v2180_v46  ;;  %v2350_v46 = vld [vmem:[#allocation2 + $0x3f] sm:$0xff]  ;;  %v2355_v39 = vld [vmem:[#allocation2 + $0x67] sm:$0xff] }
 0x60e   :  { %v2442_v31 = vld [vmem:[#allocation2 + $0x79] sm:$0xff] }
 0x60f   :  { %2342 = vst [vmem:[#allocation2 + $0x88] sm:$0xff] %v2326_v28  ;;  %2397 = vrot.lane.b32.xlu0 %v4453_v51, %s3438_s12  ;;  %2473 = vrot.lane.b32.xlu1 %v2442_v31, %s3439_s22  ;;  %v2438_v51 = vld [vmem:[#allocation2 + $0x59] sm:$0xff] }
 0x611   :  { %v2446_v12 = vpop.permute.xlu1 %2445  ;;  %v2382_v7 = vpop.permute.xlu0 %2381 }
 0x612   :  { %v2479_v25 = vadd.f32 %v2446_v12, %v2411_v9  ;;  %v2413_v36 = vadd.f32 %v2382_v7, %v2345_v13 }
 0x614   :  { %v2496_v62 = vpack.c.bf16 %v2480_v52, %v2479_v25 }
 0x616   :  { %v2443_v38 = vld [vmem:[#allocation2 + $0x81] sm:$0xff]  ;;  %2580 = vmatmul.bf16.vlgmr.msrb.gmra.mxu0 %v2496_v62  ;;  %v2444_v16 = vld [vmem:[#allocation2 + $0x89] sm:$0xff]  ;;  %v2357_v62 = vld [vmem:[#allocation2 + $0x77] sm:$0xff] }
 0x617   :  { %2399 = vrot.lane.b32.xlu1 %v4464_v42, %s3438_s12  ;;  %2407 = vrot.lane.b32.xlu0 %v2325_v17, %s3438_s12  ;;  %v2450_v42 = vpop.permute.xlu2 %2449 }
 0x618   :  { %2475 = vrot.lane.b32.xlu2 %v2443_v38, %s3439_s22  ;;  %v2481_v61 = vadd.f32 %v2450_v42, %v2413_v36 }
 0x619   :  { %v2384_v47 = vpop.permute.xlu1 %2383 }
 0x61a   :  { %v2414_v41 = vadd.f32 %v2384_v47, %v2346_v59  ;;  %v2353_v59 = vld [vmem:[#allocation2 + $0x57] sm:$0xff] }
 0x61f   :  { %2467 = vrot.lane.b32.xlu0 %v2439_v37, %s3439_s22  ;;  %2409 = vrot.lane.b32.xlu1 %v2326_v28, %s3438_s12  ;;  %v2388_v56 = vpop.permute.xlu2 %2387  ;;  %v2356_v28 = vld [vmem:[#allocation2 + $0x6f] sm:$0xff] }
 0x620   :  { %2465 = vrot.lane.b32.xlu2 %v2438_v51, %s3439_s22  ;;  %v2416_v8 = vadd.f32 %v2388_v56, %v2348_v26  ;;  %v2358_v51 = vld [vmem:[#allocation2 + $0x7f] sm:$0xff] }
 0x621   :  { %v2386_v4 = vpop.permute.xlu1 %2385 }
 0x622   :  { %v2415_v27 = vadd.f32 %v2386_v4, %v2347_v34 }
 0x627   :  { %v2390_v10 = vpop.permute.xlu2 %2389 }
 0x628   :  { %2477 = vrot.lane.b32.xlu2 %v2444_v16, %s3439_s22  ;;  %v2417_v29 = vadd.f32 %v2390_v10, %v2349_v32 }
 0x629   :  { %v2452_v63 = vpop.permute.xlu0 %2451 }
 0x62a   :  { %v2482_v1 = vadd.f32 %v2452_v63, %v2414_v41  ;;  %v2354_v63 = vld [vmem:[#allocation2 + $0x5f] sm:$0xff] }
 0x62c   :  { %v2497_v3 = vpack.c.bf16 %v2482_v1, %v2481_v61 }
 0x62e   :  { %2585 = vmatmul.bf16.gmra.mxu0 %v2497_v3 }
 0x62f   :  { %v2460_v55 = vpop.permute.xlu2 %2459 }
 0x631   :  { %v2454_v60 = vpop.permute.xlu0 %2453 }
 0x632   :  { %v2483_v48 = vadd.f32 %v2454_v60, %v2415_v27  ;;  %v4502_v60 = vld [vmem:[%s4626_s7 + $0x5] ss:$0 sm:$0xff]  ;;  %v4726_v27 = vld [vmem:[#allocation24_spill] sm:$0xff] }
 0x637   :  { %v2396_v23 = vpop.permute.xlu2 %2395 }
 0x638   :  { %v2420_v14 = vadd.f32 %v2396_v23, %v2352_v6 }
 0x639   :  { %v2456_v40 = vpop.permute.xlu1 %2455  ;;  %v2392_v11 = vpop.permute.xlu0 %2391 }
 0x63a   :  { %v2484_v19 = vadd.f32 %v2456_v40, %v2416_v8  ;;  %v2418_v24 = vadd.f32 %v2392_v11, %v2350_v46  ;;  %v4725_v8 = vld [vmem:[#allocation10_spill] sm:$0xff]  ;;  %v4727_v40 = vunpack.c.l.bf16 %v4726_v27  ;;  %v2359_v11 = vld [vmem:[#allocation2 + $0x87] sm:$0xff] }
 0x63c   :  { %v2498_v22 = vpack.c.bf16 %v2484_v19, %v2483_v48  ;;  %v2486_v18 = vadd.f32 %v2460_v55, %v2418_v24  ;;  %v2625_v48 = vmul.f32 %v4727_v40, %v4725_v8  ;;  %v4728_v19 = vld [vmem:[#allocation11_spill] sm:$0xff]  ;;  %v4731_v24 = vunpack.c.h.bf16 %v4726_v27 }
 0x63e   :  { %2590 = vmatmul.bf16.gmra.mxu0 %v2498_v22  ;;  %v4729_v22 = vld [vmem:[#allocation23_spill] sm:$0xff]  ;;  %v2626_v32 = vmul.f32 %v4731_v24, %v4725_v8 }
 0x63f   :  { %v4730_v10 = vunpack.c.l.bf16 %v4729_v22 }
 0x641   :  { %v2394_v54 = vpop.permute.xlu1 %2393 }
 0x642   :  { %v2419_v30 = vadd.f32 %v2394_v54, %v2351_v57  ;;  %v2642_v54 = vmul.f32 %v4730_v10, %v4728_v19 }
 0x649   :  { %v2458_v53 = vpop.permute.xlu1 %2457 }
 0x64a   :  { %v2485_v45 = vadd.f32 %v2458_v53, %v2417_v29  ;;  %v4732_v29 = vunpack.c.h.bf16 %v4729_v22 }
 0x64c   :  { %v2499_v20 = vpack.c.bf16 %v2486_v18, %v2485_v45  ;;  %v2643_v55 = vmul.f32 %v4732_v29, %v4728_v19  ;;  %v2659_v18 = vsub.f32 %v2625_v48, %v2642_v54  ;;  %v4745_v48 = vld [vmem:[#allocation8_spill] sm:$0xff]  ;;  %v4747_v54 = vld [vmem:[#allocation7_spill] sm:$0xff] }
 0x64d   :  { %v4746_v22 = vunpack.c.l.bf16 %v4745_v48 }
 0x64e   :  { %2595 = vmatmul.bf16.gmra.mxu0 %v2499_v20 }
 0x64f   :  { %v2631_v10 = vmul.f32 %v4746_v22, %v4725_v8 }
 0x651   :  { %v2462_v21 = vpop.permute.xlu0 %2461 }
 0x652   :  { %v2487_v50 = vadd.f32 %v2462_v21, %v2419_v30  ;;  %v2660_v21 = vsub.f32 %v2626_v32, %v2643_v55 }
 0x659   :  { %v2470_v2 = vpop.permute.xlu2 %2469 }
 0x661   :  { %v2402_v43 = vpop.permute.xlu0 %2401  ;;  %v2406_v5 = vpop.permute.xlu2 %2405 }
 0x662   :  { %v2423_v35 = vadd.f32 %v2402_v43, %v2355_v39  ;;  %v2425_v7 = vadd.f32 %v2406_v5, %v2357_v62 }
 0x664   :  { %v2491_v0 = vadd.f32 %v2470_v2, %v2423_v35 }
 0x669   :  { %v2404_v58 = vpop.permute.xlu1 %2403 }
 0x66a   :  { %v2424_v44 = vadd.f32 %v2404_v58, %v2356_v28 }
 0x671   :  { %v2464_v17 = vpop.permute.xlu1 %2463 }
 0x672   :  { %v2488_v49 = vadd.f32 %v2464_v17, %v2420_v14  ;;  %v2476_v52 = vpop.permute.xlu2 %2475 }
 0x674   :  { %v2500_v15 = vpack.c.bf16 %v2488_v49, %v2487_v50  ;;  %v4733_v50 = vld [vmem:[#allocation17_spill] sm:$0xff] }
 0x675   :  { %v4734_v49 = vunpack.c.l.bf16 %v4733_v50 }
 0x676   :  { %2600 = vmatmul.bf16.gmra.mxu0 %v2500_v15  ;;  %v4735_v15 = vld [vmem:[#allocation16_spill] sm:$0xff] }
 0x677   :  { %v2627_v2 = vmul.f32 %v4734_v49, %v4725_v8  ;;  %v4736_v39 = vunpack.c.l.bf16 %v4735_v15  ;;  %v4738_v5 = vunpack.c.h.bf16 %v4735_v15  ;;  %v4755_v49 = vld [vmem:[#allocation20_spill] sm:$0xff] }
 0x679   :  { %v2472_v31 = vpop.permute.xlu0 %2471  ;;  %v2644_v35 = vmul.f32 %v4736_v39, %v4728_v19 }
 0x67a   :  { %v2492_v33 = vadd.f32 %v2472_v31, %v2424_v44  ;;  %v2466_v42 = vpop.permute.xlu2 %2465 }
 0x67b   :  { %v2661_v28 = vsub.f32 %v2627_v2, %v2644_v35  ;;  %v4756_v2 = vunpack.c.l.bf16 %v4755_v49 }
 0x67c   :  { %v2502_v9 = vpack.c.bf16 %v2492_v33, %v2491_v0  ;;  %v4737_v33 = vunpack.c.h.bf16 %v4733_v50  ;;  %v4754_v50 = vld [vmem:[#allocation13_spill] sm:$0xff] }
 0x67d   :  { %v2651_v15 = vmul.f32 %v4756_v2, %v4754_v50 }
 0x67e   :  { %2610 = vmatmul.bf16.vlgmr.msra.gmra.mxu2 %v2502_v9  ;;  %v2628_v9 = vmul.f32 %v4737_v33, %v4725_v8 }
 0x681   :  { %v2398_v12 = vpop.permute.xlu0 %2397  ;;  %v2474_v25 = vpop.permute.xlu1 %2473 }
 0x682   :  { %v2493_v47 = vadd.f32 %v2474_v25, %v2425_v7  ;;  %v2421_v16 = vadd.f32 %v2398_v12, %v2353_v59  ;;  %v2478_v45 = vpop.permute.xlu2 %2477  ;;  %v2645_v12 = vmul.f32 %v4738_v5, %v4728_v19 }
 0x684   :  { %v2489_v3 = vadd.f32 %v2466_v42, %v2421_v16  ;;  %v2662_v62 = vsub.f32 %v2628_v9, %v2645_v12 }
 0x689   :  { %v2400_v38 = vpop.permute.xlu1 %2399  ;;  %v2408_v37 = vpop.permute.xlu0 %2407 }
 0x68a   :  { %v2426_v13 = vadd.f32 %v2408_v37, %v2358_v51  ;;  %v2422_v61 = vadd.f32 %v2400_v38, %v2354_v63  ;;  %v4739_v63 = vld [vmem:[#allocation15_spill] sm:$0xff] }
 0x68c   :  { %v2494_v36 = vadd.f32 %v2476_v52, %v2426_v13 }
 0x68e   :  { %v2503_v41 = vpack.c.bf16 %v2494_v36, %v2493_v47 }
 0x690   :  { %2615 = vmatmul.bf16.gmra.mxu2 %v2503_v41 }
 0x691   :  { %v2468_v1 = vpop.permute.xlu0 %2467  ;;  %v2410_v56 = vpop.permute.xlu1 %2409 }
 0x692   :  { %v2490_v4 = vadd.f32 %v2468_v1, %v2422_v61  ;;  %v2427_v46 = vadd.f32 %v2410_v56, %v2359_v11  ;;  %v4740_v61 = vunpack.c.l.bf16 %v4739_v63  ;;  %v4748_v11 = vunpack.c.l.bf16 %v4747_v54 }
 0x693   :  { %v2581_v26 = vpop.f32.mrf.mxu0 }
 0x694   :  { %v2501_v34 = vpack.c.bf16 %v2490_v4, %v2489_v3  ;;  %v2582_v53 = vadd.f32 %v4502_v60, %v2581_v26  ;;  %v2495_v20 = vadd.f32 %v2478_v45, %v2427_v46  ;;  %v2629_v1 = vmul.f32 %v4740_v61, %v4725_v8  ;;  %v4741_v3 = vld [vmem:[#allocation14_spill] sm:$0xff] }
 0x695   :  { %v4742_v4 = vunpack.c.l.bf16 %v4741_v3  ;;  %v4743_v26 = vunpack.c.h.bf16 %v4739_v63  ;;  %v4744_v27 = vunpack.c.h.bf16 %v4741_v3  ;;  %v2648_v46 = vmul.f32 %v4748_v11, %v4728_v19  ;;  %v4762_v63 = vld [vmem:[#allocation18_spill] sm:$0xff] }
 0x696   :  { %2605 = vmatmul.bf16.gmra.mxu0 %v2501_v34  ;;  %v2676_v23 = vsub.f32 %v2582_v53, %v2659_v18  ;;  %v2504_v57 = vpack.c.bf16 %v2495_v20, %v2495_v20  ;;  %v4749_v53 = vunpack.c.h.bf16 %v4745_v48  ;;  %v4750_v45 = vunpack.c.h.bf16 %v4747_v54  ;;  %v4767_v48 = vld [vmem:[#allocation25_spill] sm:$0xff] }
 0x697   :  { %v2646_v56 = vmul.f32 %v4742_v4, %v4728_v19  ;;  %v2630_v34 = vmul.f32 %v4743_v26, %v4725_v8  ;;  %v2647_v40 = vmul.f32 %v4744_v27, %v4728_v19  ;;  %v4763_v61 = vunpack.c.h.bf16 %v4762_v63 }
 0x698   :  { %v2744_v30 = vmul.f32 %v2676_v23, %v2676_v23  ;;  %v2632_v18 = vmul.f32 %v4749_v53, %v4725_v8  ;;  %v2649_v20 = vmul.f32 %v4750_v45, %v4728_v19  ;;  %v2665_v23 = vsub.f32 %v2631_v10, %v2648_v46  ;;  %v4757_v19 = vld [vmem:[#allocation19_spill] sm:$0xff] }
 0x699   :  { %v2663_v32 = vsub.f32 %v2629_v1, %v2646_v56  ;;  %v2664_v55 = vsub.f32 %v2630_v34, %v2647_v40  ;;  %v2654_v1 = vmul.f32 %v4763_v61, %v4754_v50  ;;  %v4764_v3 = vunpack.c.h.bf16 %v4757_v19 }
 0x69a   :  { %v2666_v35 = vsub.f32 %v2632_v18, %v2649_v20  ;;  %v4765_v56 = vunpack.c.l.bf16 %v4762_v63  ;;  %v4768_v22 = vunpack.c.l.bf16 %v4767_v48 }
 0x69b   :  { %v2583_v58 = vpop.f32.mrf.mxu0 }
 0x69c   :  { %v2584_v6 = vadd.f32 %v4502_v60, %v2583_v58  ;;  %v2653_v26 = vmul.f32 %v4765_v56, %v4754_v50  ;;  %v2655_v10 = vmul.f32 %v4768_v22, %v4754_v50 }
 0x69e   :  { %v2677_v14 = vsub.f32 %v2584_v6, %v2660_v21 }
 0x6a0   :  { %v2745_v43 = vmul.f32 %v2677_v14, %v2677_v14  ;;  %2620 = vmatmul.bf16.gmra.mxu2 %v2504_v57  ;;  %v4751_v14 = vld [vmem:[#allocation12_spill] sm:$0xff] }
 0x6a1   :  { %v2636_v4 = vmul.f32 %v4764_v3, %v4751_v14 }
 0x6a2   :  { %v2761_v17 = vadd.f32 %v2745_v43, %v2744_v30  ;;  %v4752_v30 = vld [vmem:[#allocation21_spill] sm:$0xff] }
 0x6a3   :  { %v4753_v43 = vunpack.c.l.bf16 %v4752_v30  ;;  %v2670_v20 = vsub.f32 %v2636_v4, %v2653_v26 }
 0x6ab   :  { %v2586_v44 = vpop.f32.mrf.mxu0 }
 0x6ac   :  { %v2587_v31 = vadd.f32 %v4502_v60, %v2586_v44 }
 0x6ae   :  { %v2678_v0 = vsub.f32 %v2587_v31, %v2661_v28  ;;  %v4758_v28 = vunpack.c.l.bf16 %v4757_v19  ;;  %v4759_v31 = vunpack.c.h.bf16 %v4755_v49 }
 0x6b0   :  { %v2746_v25 = vmul.f32 %v2678_v0, %v2678_v0  ;;  %v2635_v44 = vmul.f32 %v4758_v28, %v4751_v14  ;;  %v2652_v0 = vmul.f32 %v4759_v31, %v4754_v50 }
 0x6b2   :  { %v2762_v52 = vadd.f32 %v2761_v17, %v2746_v25  ;;  %v2634_v17 = vmul.f32 %v4753_v43, %v4751_v14  ;;  %v4773_v43 = vld [vmem:[#allocation26_spill] sm:$0xff] }
 0x6b3   :  { %v2588_v38 = vpop.f32.mrf.mxu0 }
 0x6b4   :  { %v2589_v37 = vadd.f32 %v4502_v60, %v2588_v38  ;;  %v2668_v12 = vsub.f32 %v2634_v17, %v2651_v15  ;;  %v4774_v17 = vunpack.c.l.bf16 %v4773_v43 }
 0x6b6   :  { %v2679_v51 = vsub.f32 %v2589_v37, %v2662_v62  ;;  %v2657_v49 = vmul.f32 %v4774_v17, %v4754_v50 }
 0x6b8   :  { %v2747_v7 = vmul.f32 %v2679_v51, %v2679_v51  ;;  %v2669_v51 = vsub.f32 %v2635_v44, %v2652_v0 }
 0x6ba   :  { %v2763_v13 = vadd.f32 %v2762_v52, %v2747_v7 }
 0x6bb   :  { %v2591_v47 = vpop.f32.mrf.mxu0 }
 0x6bc   :  { %v2592_v24 = vadd.f32 %v4502_v60, %v2591_v47 }
 0x6be   :  { %v2680_v6 = vsub.f32 %v2592_v24, %v2663_v32  ;;  %v4769_v24 = vld [vmem:[#allocation27_spill] sm:$0xff] }
 0x6bf   :  { %v4770_v32 = vunpack.c.l.bf16 %v4769_v24 }
 0x6c0   :  { %v2748_v33 = vmul.f32 %v2680_v6, %v2680_v6 }
 0x6c2   :  { %v2764_v7 = vadd.f32 %v2763_v13, %v2748_v33 }
 0x6c3   :  { %v2593_v36 = vpop.f32.mrf.mxu0 }
 0x6c4   :  { %v2594_v29 = vadd.f32 %v4502_v60, %v2593_v36 }
 0x6c6   :  { %v2681_v39 = vsub.f32 %v2594_v29, %v2664_v55  ;;  %v2639_v29 = vmul.f32 %v4770_v32, %v4751_v14  ;;  %v4771_v55 = vunpack.c.h.bf16 %v4767_v48 }
 0x6c8   :  { %v2749_v25 = vmul.f32 %v2681_v39, %v2681_v39  ;;  %v2656_v53 = vmul.f32 %v4771_v55, %v4754_v50 }
 0x6ca   :  { %v2765_v34 = vadd.f32 %v2764_v7, %v2749_v25  ;;  %v2673_v44 = vsub.f32 %v2639_v29, %v2656_v53 }
 0x6cb   :  { %v2596_v59 = vpop.f32.mrf.mxu0 }
 0x6cc   :  { %v2597_v57 = vadd.f32 %v4502_v60, %v2596_v59  ;;  %v4760_v59 = vld [vmem:[#allocation22_spill] sm:$0xff] }
 0x6cd   :  { %v4766_v27 = vunpack.c.h.bf16 %v4760_v59 }
 0x6ce   :  { %v2682_v9 = vsub.f32 %v2597_v57, %v2665_v23  ;;  %v4772_v57 = vunpack.c.h.bf16 %v4769_v24 }
 0x6cf   :  { %v2638_v40 = vmul.f32 %v4766_v27, %v4751_v14 }
 0x6d0   :  { %v2750_v47 = vmul.f32 %v2682_v9, %v2682_v9  ;;  %v2640_v30 = vmul.f32 %v4772_v57, %v4751_v14  ;;  %v4777_v9 = vld [vmem:[#allocation9_spill] sm:$0xff] }
 0x6d1   :  { %v2672_v15 = vsub.f32 %v2638_v40, %v2655_v10 }
 0x6d2   :  { %v2766_v11 = vadd.f32 %v2765_v34, %v2750_v47  ;;  %v2674_v25 = vsub.f32 %v2640_v30, %v2657_v49 }
 0x6d3   :  { %v2598_v16 = vpop.f32.mrf.mxu0 }
 0x6d4   :  { %v2599_v8 = vadd.f32 %v4502_v60, %v2598_v16  ;;  %v4761_v16 = vunpack.c.l.bf16 %v4760_v59 }
 0x6d6   :  { %v2683_v52 = vsub.f32 %v2599_v8, %v2666_v35 }
 0x6d8   :  { %v2751_v13 = vmul.f32 %v2683_v52, %v2683_v52 }
 0x6f3   :  { %v2601_v41 = vpop.f32.mrf.mxu0 }
 0x6f4   :  { %v2637_v41 = vmul.f32 %v4761_v16, %v4751_v14 }
 0x6f6   :  { %v2671_v45 = vsub.f32 %v2637_v41, %v2654_v1 }
 0x6fb   :  { %v2603_v21 = vpop.f32.mrf.mxu0 }
 0x6fc   :  { %v2604_v5 = vadd.f32 %v4502_v60, %v2603_v21  ;;  %v2767_v21 = vadd.f32 %v2766_v11, %v2751_v13 }
 0x6fe   :  { %v2685_v36 = vsub.f32 %v2604_v5, %v2668_v12  ;;  %v4778_v5 = vunpack.c.l.bf16 %v4777_v9 }
 0x700   :  { %v2753_v46 = vmul.f32 %v2685_v36, %v2685_v36  ;;  %v2641_v12 = vmul.f32 %v4778_v5, %v4751_v14 }
 0x701   :  { %v2611_v42 = vpop.f32.mrf.mxu2 }
 0x702   :  { %v2612_v18 = vadd.f32 %v4502_v60, %v2611_v42  ;;  %v4775_v42 = vld [vmem:[#allocation6_spill] sm:$0xff]  ;;  %v2769_v28 = vadd.f32 %v2767_v21, %v2753_v46 }
 0x703   :  { %v4776_v35 = vunpack.c.l.bf16 %v4775_v42 }
 0x704   :  { %v2688_v31 = vsub.f32 %v2612_v18, %v2671_v45 }
 0x705   :  { %v2658_v19 = vmul.f32 %v4776_v35, %v4754_v50 }
 0x707   :  { %v2675_v50 = vsub.f32 %v2641_v12, %v2658_v19 }
 0x709   :  { %v2613_v58 = vpop.f32.mrf.mxu2 }
 0x70a   :  { %v2614_v2 = vadd.f32 %v4502_v60, %v2613_v58 }
 0x70c   :  { %v2689_v58 = vsub.f32 %v2614_v2, %v2672_v15 }
 0x70e   :  { %v2757_v59 = vmul.f32 %v2689_v58, %v2689_v58 }
 0x713   :  { %v2606_v62 = vpop.f32.mrf.mxu0  ;;  %v2616_v38 = vpop.f32.mrf.mxu2 }
 0x714   :  { %v2607_v37 = vadd.f32 %v4502_v60, %v2606_v62  ;;  %v2617_v0 = vadd.f32 %v4502_v60, %v2616_v38 }
 0x716   :  { %v2686_v54 = vsub.f32 %v2607_v37, %v2669_v51  ;;  %v2756_v51 = vmul.f32 %v2688_v31, %v2688_v31  ;;  %v2690_v7 = vsub.f32 %v2617_v0, %v2673_v44 }
 0x718   :  { %v2754_v39 = vmul.f32 %v2686_v54, %v2686_v54  ;;  %v2758_v63 = vmul.f32 %v2690_v7, %v2690_v7 }
 0x71a   :  { %v2770_v52 = vadd.f32 %v2769_v28, %v2754_v39 }
 0x71b   :  { %v2608_v23 = vpop.f32.mrf.mxu0  ;;  %v2618_v6 = vpop.f32.mrf.mxu2 }
 0x71c   :  { %v2609_v8 = vadd.f32 %v4502_v60, %v2608_v23  ;;  %v2619_v37 = vadd.f32 %v4502_v60, %v2618_v6 }
 0x71e   :  { %v2687_v33 = vsub.f32 %v2609_v8, %v2670_v20  ;;  %v2691_v41 = vsub.f32 %v2619_v37, %v2674_v25 }
 0x720   :  { %v2755_v62 = vmul.f32 %v2687_v33, %v2687_v33  ;;  %v2759_v14 = vmul.f32 %v2691_v41, %v2691_v41 }
 0x722   :  { %v2771_v47 = vadd.f32 %v2770_v52, %v2755_v62 }
 0x723   :  { %v2621_v36 = vpop.f32.mrf.mxu2 }
 0x724   :  { %v2772_v16 = vadd.f32 %v2771_v47, %v2756_v51  ;;  %v2622_v38 = vadd.f32 %v4502_v60, %v2621_v36 }
 0x726   :  { %v2773_v61 = vadd.f32 %v2772_v16, %v2757_v59  ;;  %v2692_v1 = vsub.f32 %v2622_v38, %v2675_v50 }
 0x728   :  { %v2774_v3 = vadd.f32 %v2773_v61, %v2758_v63  ;;  %v2760_v56 = vmul.f32 %v2692_v1, %v2692_v1 }
 0x72a   :  { %v2775_v4 = vadd.f32 %v2774_v3, %v2759_v14 }
 0x72b   :  { %v2623_v26 = vpop.f32.mrf.mxu2 }
 0x72c   :  { %v2776_v34 = vadd.f32 %v2775_v4, %v2760_v56 }
 0x72e   :  { %v2777_v13 = vrot.slane %v2776_v34, 4 }
 0x730   :  { %v2778_v27 = vadd.f32 %v2777_v13, %v2776_v34 }
 0x732   :  { %v2779_v40 = vrot.slane %v2778_v27, 2 }
 0x734   :  { %v2780_v48 = vadd.f32 %v2779_v40, %v2778_v27 }
 0x736   :  { %v2781_v22 = vrot.slane %v2780_v48, 1 }
 0x738   :  { %v2782_v10 = vadd.f32 %v2781_v22, %v2780_v48 }
 0x73a   :  { %2783 = vst [vmem:[%s4627_s8] sm:$0x1] %v2782_v10 }

</bundles_post_ra>
